<compile_context>
chip_gen: v5e
topology: v5e:2x2
jax: 0.10.0
libtpu: 0.0.40
codegen_flags: <defaults>
</compile_context>

<pallas_src>
import functools

import jax
import jax.numpy as jnp
from jax import lax
from jax.experimental import pallas as pl
from jax.experimental.pallas import tpu as pltpu


def _residual_block_kernel(xp_ref, w1_ref, b1_ref, w2_ref, b2_ref, o_ref,
                           *, res_scale, compute_dtype, th, h_total):
    """Grid = (batch, H // th); one (th x W) output slab per step.

    xp_ref : (1, H+4, W+2, C)  zero-padded input (2 rows / 1 col each side),
                               batch-resident; halo tile sliced with pl.ds.
    w*_ref : (3, 3C, C)        per-kx weight slabs ((ky, cin) flattened),
                               already in compute_dtype.
    b*_ref : (1, C)            float32 biases.
    o_ref  : (1, th, W*C)      lane-dense output slab (NHWC memory layout).
    """
    _, _, wp, c = xp_ref.shape          # wp = W + 2
    w_len = wp - 2

    h = pl.program_id(1)
    row0 = h * th

    # (th+4, W+2, C) halo tile of the doubly-row-padded input.
    tile = xp_ref[:, pl.ds(pl.multiple_of(row0, th), th + 4), :, :][0]
    identity = tile[2:th + 2, 1:w_len + 1, :].astype(jnp.float32)  # (th, W, C)
    tile_c = tile.astype(compute_dtype)

    def conv3x3(src, w_ref, b_ref, out_rows):
        # src: (out_rows+2, W+2, C) in compute_dtype -> (out_rows, W, C) f32.
        # 3-tap im2col: ky row-shifts concatenated on lanes (rows, 3C), one
        # MXU matmul per kx against a (3C, C) slab, kx results combined by
        # column-shifted adds of the small outputs.
        taps = [src[ky:ky + out_rows, :, :] for ky in range(3)]
        patches = jnp.concatenate(taps, axis=-1).reshape(out_rows * wp, 3 * c)
        acc = None
        for kx in range(3):
            q = jnp.dot(patches, w_ref[kx], preferred_element_type=jnp.float32)
            q = q.reshape(out_rows, wp, c)[:, kx:kx + w_len, :]
            acc = q if acc is None else acc + q
        return acc + b_ref[...]                       # f32

    # ---- conv1 + ReLU over the halo rows [row0-1, row0+th+1)
    mid = jnp.maximum(conv3x3(tile_c, w1_ref, b1_ref, th + 2), 0.0)

    # Halo rows outside the real image must be zero (SAME-pad semantics for
    # conv2), not conv1-of-the-zero-padding.
    r = lax.broadcasted_iota(jnp.int32, (th + 2, 1, 1), 0) + (row0 - 1)
    mid = jnp.where((r >= 0) & (r < h_total), mid, 0.0).astype(compute_dtype)

    # ---- re-pad width by one zero column on each side (in registers)
    zcol = jnp.zeros((th + 2, 1, c), compute_dtype)
    mid_p = jnp.concatenate([zcol, mid, zcol], axis=1)    # (th+2, W+2, C)

    # ---- conv2
    out = conv3x3(mid_p, w2_ref, b2_ref, th)              # (th, W, C) f32

    # ---- residual add + lane-dense store
    res = identity + jnp.float32(res_scale) * out
    o_ref[0] = res.reshape(th, w_len * c).astype(o_ref.dtype)


def _pick_tile_h(h, th_tile=None, target=32):
    """Pick a spatial tile height: divides H, multiple of 8 (sublane-aligned
    output slabs) unless it equals H; capped at `target` rows."""
    if th_tile is not None:
        if h % th_tile != 0:
            raise ValueError(f"th_tile={th_tile} must divide H={h}")
        if th_tile != h and th_tile % 8 != 0:
            raise ValueError("th_tile must be a multiple of 8 (or equal H)")
        return th_tile
    if h <= target:
        return h
    for th in range(target, 7, -1):
        if h % th == 0 and th % 8 == 0:
            return th
    return h


def residual_block_nhwc(x, w1_hwio, b1, w2_hwio, b2, *, res_scale=1.0,
                        compute_dtype=jnp.bfloat16, th_tile=None,
                        vmem_limit_bytes=None):
    """x: (B, H, W, C) NHWC; weights HWIO (3, 3, C, C); biases (C,)."""
    B, H, W, C = x.shape
    TH = _pick_tile_h(H, th_tile)
    n_h = H // TH

    # Zero-pad host-side: 2 rows (conv1+conv2 halo) and 1 col (conv width).
    x_pad = jnp.pad(x, ((0, 0), (2, 2), (1, 1), (0, 0)))

    # Matmul-ready weights: per-kx (3C, C) slabs with (ky, cin) flattened,
    # pre-cast to compute_dtype so there is no per-step cast in the kernel.
    def prep_w(w_hwio):
        return (jnp.transpose(w_hwio, (1, 0, 2, 3))
                .reshape(3, 3 * C, C).astype(compute_dtype))

    w1_r, w2_r = prep_w(w1_hwio), prep_w(w2_hwio)
    b1_r = b1.reshape(1, C).astype(jnp.float32)
    b2_r = b2.reshape(1, C).astype(jnp.float32)

    kernel = functools.partial(_residual_block_kernel, res_scale=res_scale,
                               compute_dtype=compute_dtype, th=TH, h_total=H)

    cp_kwargs = dict(dimension_semantics=("parallel", "parallel"))
    if vmem_limit_bytes is not None:
        cp_kwargs["vmem_limit_bytes"] = vmem_limit_bytes

    out_flat = pl.pallas_call(
        kernel,
        out_shape=jax.ShapeDtypeStruct((B, H, W * C), x.dtype),
        grid=(B, n_h),
        in_specs=[
            # Batch-resident padded image (re-DMA'd only when b changes).
            pl.BlockSpec((1, H + 4, W + 2, C), lambda b, h: (b, 0, 0, 0)),
            # Grid-invariant weights / biases stay VMEM-resident.
            pl.BlockSpec((3, 3 * C, C), lambda b, h: (0, 0, 0)),
            pl.BlockSpec((1, C), lambda b, h: (0, 0)),
            pl.BlockSpec((3, 3 * C, C), lambda b, h: (0, 0, 0)),
            pl.BlockSpec((1, C), lambda b, h: (0, 0)),
        ],
        out_specs=pl.BlockSpec((1, TH, W * C), lambda b, h: (b, h, 0)),
        compiler_params=pltpu.CompilerParams(**cp_kwargs),
    )(x_pad, w1_r, b1_r, w2_r, b2_r)

    # Same memory layout; reshape back to NHWC is free.
    return out_flat.reshape(B, H, W, C)


# ---------------- pure-JAX reference (same math) ----------------
def _conv3x3_ref(x_nhwc, w_hwio, b):
    out = lax.conv_general_dilated(
        x_nhwc, w_hwio, window_strides=(1, 1), padding="SAME",
        dimension_numbers=("NHWC", "HWIO", "NHWC"))
    return out + b[None, None, None, :]


def residual_block_ref(x_nhwc, w1, b1, w2, b2, res_scale=1.0):
    mid = jnp.maximum(_conv3x3_ref(x_nhwc, w1, b1), 0.0)
    return x_nhwc + res_scale * _conv3x3_ref(mid, w2, b2)


if __name__ == "__main__":
    # Small shapes consistent with the module (num_feat channels, square imgs).
    B, C, H, W = 2, 8, 16, 16          # synthetic num_feat = 8
    res_scale = 1.0

    key = jax.random.PRNGKey(0)
    kx_, kw1, kb1, kw2, kb2 = jax.random.split(key, 5)

    # PyTorch-style NCHW input.
    x_nchw = jax.random.normal(kx_, (B, C, H, W), dtype=jnp.float32)

    # Synthetic params mirroring default_init_weights([conv1, conv2], 0.1);
    # OIHW like nn.Conv2d.
    fan_in = C * 3 * 3
    std = 0.1 * (2.0 / fan_in) ** 0.5
    w1_oihw = std * jax.random.normal(kw1, (C, C, 3, 3), dtype=jnp.float32)
    w2_oihw = std * jax.random.normal(kw2, (C, C, 3, 3), dtype=jnp.float32)
    b1 = 0.01 * jax.random.normal(kb1, (C,), dtype=jnp.float32)
    b2 = 0.01 * jax.random.normal(kb2, (C,), dtype=jnp.float32)

    # Layout conversion: NCHW -> NHWC, OIHW -> HWIO.
    x_nhwc = jnp.transpose(x_nchw, (0, 2, 3, 1))
    w1_hwio = jnp.transpose(w1_oihw, (2, 3, 1, 0))
    w2_hwio = jnp.transpose(w2_oihw, (2, 3, 1, 0))

    # th_tile=8 exercises the halo-tiled spatial grid (2 row tiles per image).
    out_nhwc = residual_block_nhwc(x_nhwc, w1_hwio, b1, w2_hwio, b2,
                                   res_scale=res_scale, th_tile=8)
    out_nhwc = jax.block_until_ready(out_nhwc)

    # Correctness check against a pure-JAX f32 reference.  Matmul operands are
    # bf16 (f32 accumulation / identity), so use a bf16-appropriate tolerance.
    ref_nhwc = residual_block_ref(x_nhwc, w1_hwio, b1, w2_hwio, b2, res_scale)
    assert out_nhwc.shape == (B, H, W, C)
    max_err = float(jnp.max(jnp.abs(out_nhwc - ref_nhwc)))
    assert max_err < 1e-2, max_err

    # Back to PyTorch's NCHW convention for the final result.
    out_nchw = jnp.transpose(out_nhwc, (0, 3, 1, 2))
    assert out_nchw.shape == x_nchw.shape

    print("KERNEL_OK")
</pallas_src>

<mosaic_0001>
module attributes {stable_mosaic.version = 11 : i64} {
  func.func @_residual_block_kernel(%arg0: i32, %arg1: i32, %arg2: memref<1x20x18x8xf32, #tpu.memory_space<vmem>>, %arg3: memref<3x24x8xbf16, #tpu.memory_space<vmem>>, %arg4: memref<1x8xf32, #tpu.memory_space<vmem>>, %arg5: memref<3x24x8xbf16, #tpu.memory_space<vmem>>, %arg6: memref<1x8xf32, #tpu.memory_space<vmem>>, %arg7: memref<1x8x128xf32, #tpu.memory_space<vmem>>) attributes {dimension_semantics = [#tpu.dimension_semantics<parallel>, #tpu.dimension_semantics<parallel>], iteration_bounds = array<i64: 2, 2>, scalar_prefetch = 0 : i64, scratch_operands = 0 : i64, tpu.core_type = #tpu.core_type<tc>, window_params = [{transform_indices = @transform_0, window_bounds = array<i64: 1, 20, 18, 8>}, {pipeline_mode = #tpu.pipeline_mode<synchronous>, transform_indices = @transform_1, window_bounds = array<i64: 3, 24, 8>}, {pipeline_mode = #tpu.pipeline_mode<synchronous>, transform_indices = @transform_2, window_bounds = array<i64: 1, 8>}, {pipeline_mode = #tpu.pipeline_mode<synchronous>, transform_indices = @transform_3, window_bounds = array<i64: 3, 24, 8>}, {pipeline_mode = #tpu.pipeline_mode<synchronous>, transform_indices = @transform_4, window_bounds = array<i64: 1, 8>}, {transform_indices = @transform_5, window_bounds = array<i64: 1, 8, 128>}]} {
    %c8_i32 = arith.constant 8 : i32
    %0 = arith.muli %arg1, %c8_i32 : i32
    %1 = tpu.assume_multiple %0, 8 : i32
    %c0 = arith.constant 0 : index
    %2 = arith.index_cast %1 : i32 to index
    %c0_0 = arith.constant 0 : index
    %c0_1 = arith.constant 0 : index
    %3 = vector.load %arg2[%c0, %2, %c0_0, %c0_1] : memref<1x20x18x8xf32, #tpu.memory_space<vmem>>, vector<1x12x18x8xf32>
    %4 = vector.shape_cast %3 : vector<1x12x18x8xf32> to vector<12x18x8xf32>
    %5 = vector.extract_strided_slice %4 {offsets = [2, 1, 0], sizes = [8, 16, 8], strides = [1, 1, 1]} : vector<12x18x8xf32> to vector<8x16x8xf32>
    %6 = arith.truncf %4 : vector<12x18x8xf32> to vector<12x18x8xbf16>
    %7 = vector.extract_strided_slice %6 {offsets = [0, 0, 0], sizes = [10, 18, 8], strides = [1, 1, 1]} : vector<12x18x8xbf16> to vector<10x18x8xbf16>
    %8 = vector.extract_strided_slice %6 {offsets = [1, 0, 0], sizes = [10, 18, 8], strides = [1, 1, 1]} : vector<12x18x8xbf16> to vector<10x18x8xbf16>
    %9 = vector.extract_strided_slice %6 {offsets = [2, 0, 0], sizes = [10, 18, 8], strides = [1, 1, 1]} : vector<12x18x8xbf16> to vector<10x18x8xbf16>
    %10 = tpu.concatenate %7, %8, %9 in 2 : vector<10x18x8xbf16>, vector<10x18x8xbf16>, vector<10x18x8xbf16> -> vector<10x18x24xbf16>
    %11 = vector.shape_cast %10 : vector<10x18x24xbf16> to vector<180x24xbf16>
    %c0_2 = arith.constant 0 : index
    %c0_3 = arith.constant 0 : index
    %c0_4 = arith.constant 0 : index
    %12 = vector.load %arg3[%c0_2, %c0_3, %c0_4] : memref<3x24x8xbf16, #tpu.memory_space<vmem>>, vector<1x24x8xbf16>
    %13 = vector.shape_cast %12 : vector<1x24x8xbf16> to vector<24x8xbf16>
    %cst = arith.constant dense<0.000000e+00> : vector<180x8xf32>
    %14 = tpu.matmul %11, %13, %cst {dimension_numbers = #tpu.dot_dimension_numbers<[1], [0], [0], [1], [0, 0, 1, 1], [], []>} : vector<180x24xbf16>, vector<24x8xbf16>, vector<180x8xf32> -> vector<180x8xf32>
    %15 = vector.shape_cast %14 : vector<180x8xf32> to vector<10x18x8xf32>
    %16 = vector.extract_strided_slice %15 {offsets = [0, 0, 0], sizes = [10, 16, 8], strides = [1, 1, 1]} : vector<10x18x8xf32> to vector<10x16x8xf32>
    %c1 = arith.constant 1 : index
    %c0_5 = arith.constant 0 : index
    %c0_6 = arith.constant 0 : index
    %17 = vector.load %arg3[%c1, %c0_5, %c0_6] : memref<3x24x8xbf16, #tpu.memory_space<vmem>>, vector<1x24x8xbf16>
    %18 = vector.shape_cast %17 : vector<1x24x8xbf16> to vector<24x8xbf16>
    %cst_7 = arith.constant dense<0.000000e+00> : vector<180x8xf32>
    %19 = tpu.matmul %11, %18, %cst_7 {dimension_numbers = #tpu.dot_dimension_numbers<[1], [0], [0], [1], [0, 0, 1, 1], [], []>} : vector<180x24xbf16>, vector<24x8xbf16>, vector<180x8xf32> -> vector<180x8xf32>
    %20 = vector.shape_cast %19 : vector<180x8xf32> to vector<10x18x8xf32>
    %21 = vector.extract_strided_slice %20 {offsets = [0, 1, 0], sizes = [10, 16, 8], strides = [1, 1, 1]} : vector<10x18x8xf32> to vector<10x16x8xf32>
    %22 = arith.addf %16, %21 : vector<10x16x8xf32>
    %c2 = arith.constant 2 : index
    %c0_8 = arith.constant 0 : index
    %c0_9 = arith.constant 0 : index
    %23 = vector.load %arg3[%c2, %c0_8, %c0_9] : memref<3x24x8xbf16, #tpu.memory_space<vmem>>, vector<1x24x8xbf16>
    %24 = vector.shape_cast %23 : vector<1x24x8xbf16> to vector<24x8xbf16>
    %cst_10 = arith.constant dense<0.000000e+00> : vector<180x8xf32>
    %25 = tpu.matmul %11, %24, %cst_10 {dimension_numbers = #tpu.dot_dimension_numbers<[1], [0], [0], [1], [0, 0, 1, 1], [], []>} : vector<180x24xbf16>, vector<24x8xbf16>, vector<180x8xf32> -> vector<180x8xf32>
    %26 = vector.shape_cast %25 : vector<180x8xf32> to vector<10x18x8xf32>
    %27 = vector.extract_strided_slice %26 {offsets = [0, 2, 0], sizes = [10, 16, 8], strides = [1, 1, 1]} : vector<10x18x8xf32> to vector<10x16x8xf32>
    %28 = arith.addf %22, %27 : vector<10x16x8xf32>
    %c0_11 = arith.constant 0 : index
    %c0_12 = arith.constant 0 : index
    %29 = vector.load %arg4[%c0_11, %c0_12] : memref<1x8xf32, #tpu.memory_space<vmem>>, vector<1x8xf32>
    %30 = vector.shape_cast %29 : vector<1x8xf32> to vector<1x1x8xf32>
    %31 = vector.broadcast %30 : vector<1x1x8xf32> to vector<10x16x8xf32>
    %32 = arith.addf %28, %31 : vector<10x16x8xf32>
    %cst_13 = arith.constant 0.000000e+00 : f32
    %33 = vector.broadcast %cst_13 : f32 to vector<10x16x8xf32>
    %34 = arith.maximumf %32, %33 : vector<10x16x8xf32>
    %35 = tpu.iota {dimensions = array<i32: 0>} : vector<10x1x1xi32>
    %c1_i32 = arith.constant 1 : i32
    %36 = arith.subi %0, %c1_i32 : i32
    %37 = vector.broadcast %36 : i32 to vector<10x1x1xi32>
    %38 = arith.addi %35, %37 : vector<10x1x1xi32>
    %c0_i32 = arith.constant 0 : i32
    %39 = vector.broadcast %c0_i32 : i32 to vector<10x1x1xi32>
    %40 = arith.cmpi sge, %38, %39 : vector<10x1x1xi32>
    %c16_i32 = arith.constant 16 : i32
    %41 = vector.broadcast %c16_i32 : i32 to vector<10x1x1xi32>
    %42 = arith.cmpi slt, %38, %41 : vector<10x1x1xi32>
    %43 = arith.andi %40, %42 : vector<10x1x1xi1>
    %cst_14 = arith.constant 0.000000e+00 : f32
    %44 = vector.shape_cast %43 : vector<10x1x1xi1> to vector<10x1x1xi1>
    %45 = vector.broadcast %44 : vector<10x1x1xi1> to vector<10x16x8xi1>
    %46 = vector.broadcast %cst_14 : f32 to vector<10x16x8xf32>
    %47 = arith.select %45, %34, %46 : vector<10x16x8xi1>, vector<10x16x8xf32>
    %48 = arith.truncf %47 : vector<10x16x8xf32> to vector<10x16x8xbf16>
    %cst_15 = arith.constant 0.000000e+00 : bf16
    %49 = vector.broadcast %cst_15 : bf16 to vector<10x1x8xbf16>
    %50 = tpu.concatenate %49, %48, %49 in 1 : vector<10x1x8xbf16>, vector<10x16x8xbf16>, vector<10x1x8xbf16> -> vector<10x18x8xbf16>
    %51 = vector.extract_strided_slice %50 {offsets = [0, 0, 0], sizes = [8, 18, 8], strides = [1, 1, 1]} : vector<10x18x8xbf16> to vector<8x18x8xbf16>
    %52 = vector.extract_strided_slice %50 {offsets = [1, 0, 0], sizes = [8, 18, 8], strides = [1, 1, 1]} : vector<10x18x8xbf16> to vector<8x18x8xbf16>
    %53 = vector.extract_strided_slice %50 {offsets = [2, 0, 0], sizes = [8, 18, 8], strides = [1, 1, 1]} : vector<10x18x8xbf16> to vector<8x18x8xbf16>
    %54 = tpu.concatenate %51, %52, %53 in 2 : vector<8x18x8xbf16>, vector<8x18x8xbf16>, vector<8x18x8xbf16> -> vector<8x18x24xbf16>
    %55 = vector.shape_cast %54 : vector<8x18x24xbf16> to vector<144x24xbf16>
    %c0_16 = arith.constant 0 : index
    %c0_17 = arith.constant 0 : index
    %c0_18 = arith.constant 0 : index
    %56 = vector.load %arg5[%c0_16, %c0_17, %c0_18] : memref<3x24x8xbf16, #tpu.memory_space<vmem>>, vector<1x24x8xbf16>
    %57 = vector.shape_cast %56 : vector<1x24x8xbf16> to vector<24x8xbf16>
    %cst_19 = arith.constant dense<0.000000e+00> : vector<144x8xf32>
    %58 = tpu.matmul %55, %57, %cst_19 {dimension_numbers = #tpu.dot_dimension_numbers<[1], [0], [0], [1], [0, 0, 1, 1], [], []>} : vector<144x24xbf16>, vector<24x8xbf16>, vector<144x8xf32> -> vector<144x8xf32>
    %59 = vector.shape_cast %58 : vector<144x8xf32> to vector<8x18x8xf32>
    %60 = vector.extract_strided_slice %59 {offsets = [0, 0, 0], sizes = [8, 16, 8], strides = [1, 1, 1]} : vector<8x18x8xf32> to vector<8x16x8xf32>
    %c1_20 = arith.constant 1 : index
    %c0_21 = arith.constant 0 : index
    %c0_22 = arith.constant 0 : index
    %61 = vector.load %arg5[%c1_20, %c0_21, %c0_22] : memref<3x24x8xbf16, #tpu.memory_space<vmem>>, vector<1x24x8xbf16>
    %62 = vector.shape_cast %61 : vector<1x24x8xbf16> to vector<24x8xbf16>
    %cst_23 = arith.constant dense<0.000000e+00> : vector<144x8xf32>
    %63 = tpu.matmul %55, %62, %cst_23 {dimension_numbers = #tpu.dot_dimension_numbers<[1], [0], [0], [1], [0, 0, 1, 1], [], []>} : vector<144x24xbf16>, vector<24x8xbf16>, vector<144x8xf32> -> vector<144x8xf32>
    %64 = vector.shape_cast %63 : vector<144x8xf32> to vector<8x18x8xf32>
    %65 = vector.extract_strided_slice %64 {offsets = [0, 1, 0], sizes = [8, 16, 8], strides = [1, 1, 1]} : vector<8x18x8xf32> to vector<8x16x8xf32>
    %66 = arith.addf %60, %65 : vector<8x16x8xf32>
    %c2_24 = arith.constant 2 : index
    %c0_25 = arith.constant 0 : index
    %c0_26 = arith.constant 0 : index
    %67 = vector.load %arg5[%c2_24, %c0_25, %c0_26] : memref<3x24x8xbf16, #tpu.memory_space<vmem>>, vector<1x24x8xbf16>
    %68 = vector.shape_cast %67 : vector<1x24x8xbf16> to vector<24x8xbf16>
    %cst_27 = arith.constant dense<0.000000e+00> : vector<144x8xf32>
    %69 = tpu.matmul %55, %68, %cst_27 {dimension_numbers = #tpu.dot_dimension_numbers<[1], [0], [0], [1], [0, 0, 1, 1], [], []>} : vector<144x24xbf16>, vector<24x8xbf16>, vector<144x8xf32> -> vector<144x8xf32>
    %70 = vector.shape_cast %69 : vector<144x8xf32> to vector<8x18x8xf32>
    %71 = vector.extract_strided_slice %70 {offsets = [0, 2, 0], sizes = [8, 16, 8], strides = [1, 1, 1]} : vector<8x18x8xf32> to vector<8x16x8xf32>
    %72 = arith.addf %66, %71 : vector<8x16x8xf32>
    %c0_28 = arith.constant 0 : index
    %c0_29 = arith.constant 0 : index
    %73 = vector.load %arg6[%c0_28, %c0_29] : memref<1x8xf32, #tpu.memory_space<vmem>>, vector<1x8xf32>
    %74 = vector.shape_cast %73 : vector<1x8xf32> to vector<1x1x8xf32>
    %75 = vector.broadcast %74 : vector<1x1x8xf32> to vector<8x16x8xf32>
    %76 = arith.addf %72, %75 : vector<8x16x8xf32>
    %cst_30 = arith.constant 1.000000e+00 : f32
    %77 = vector.broadcast %cst_30 : f32 to vector<8x16x8xf32>
    %78 = arith.mulf %77, %76 : vector<8x16x8xf32>
    %79 = arith.addf %5, %78 : vector<8x16x8xf32>
    %80 = vector.shape_cast %79 : vector<8x16x8xf32> to vector<8x128xf32>
    %c0_31 = arith.constant 0 : index
    %c0_32 = arith.constant 0 : index
    %c0_33 = arith.constant 0 : index
    %81 = vector.load %arg7[%c0_31, %c0_32, %c0_33] : memref<1x8x128xf32, #tpu.memory_space<vmem>>, vector<1x8x128xf32>
    %82 = vector.shape_cast %81 : vector<1x8x128xf32> to vector<8x128xf32>
    %83 = vector.shape_cast %80 : vector<8x128xf32> to vector<1x8x128xf32>
    tpu.vector_store %arg7[%c0_31, %c0_32, %c0_33], %83 {strides = array<i32>} : memref<1x8x128xf32, #tpu.memory_space<vmem>>, vector<1x8x128xf32>,
    return
  }
  func.func @transform_0(%arg0: i32, %arg1: i32) -> (i32, i32, i32, i32) {
    %c0_i32 = arith.constant 0 : i32
    %c0_i32_0 = arith.constant 0 : i32
    %c0_i32_1 = arith.constant 0 : i32
    %c0_i32_2 = arith.constant 0 : i32
    return %arg0, %c0_i32, %c0_i32_0, %c0_i32_1 : i32, i32, i32, i32
  }
  func.func @transform_1(%arg0: i32, %arg1: i32) -> (i32, i32, i32) {
    %c0_i32 = arith.constant 0 : i32
    %c0_i32_0 = arith.constant 0 : i32
    %c0_i32_1 = arith.constant 0 : i32
    %c0_i32_2 = arith.constant 0 : i32
    return %c0_i32, %c0_i32_0, %c0_i32_1 : i32, i32, i32
  }
  func.func @transform_2(%arg0: i32, %arg1: i32) -> (i32, i32) {
    %c0_i32 = arith.constant 0 : i32
    %c0_i32_0 = arith.constant 0 : i32
    %c0_i32_1 = arith.constant 0 : i32
    return %c0_i32, %c0_i32_0 : i32, i32
  }
  func.func @transform_3(%arg0: i32, %arg1: i32) -> (i32, i32, i32) {
    %c0_i32 = arith.constant 0 : i32
    %c0_i32_0 = arith.constant 0 : i32
    %c0_i32_1 = arith.constant 0 : i32
    %c0_i32_2 = arith.constant 0 : i32
    return %c0_i32, %c0_i32_0, %c0_i32_1 : i32, i32, i32
  }
  func.func @transform_4(%arg0: i32, %arg1: i32) -> (i32, i32) {
    %c0_i32 = arith.constant 0 : i32
    %c0_i32_0 = arith.constant 0 : i32
    %c0_i32_1 = arith.constant 0 : i32
    return %c0_i32, %c0_i32_0 : i32, i32
  }
  func.func @transform_5(%arg0: i32, %arg1: i32) -> (i32, i32, i32) {
    %c0_i32 = arith.constant 0 : i32
    %c0_i32_0 = arith.constant 0 : i32
    return %arg0, %arg1, %c0_i32 : i32, i32, i32
  }
}

</mosaic_0001>

<bundles_post_ra>
// kernel: tpu_custom_call.1
= control target key start
LH: loop header
LB: loop body
LE: loop exit
PB: predicated region body
PF: predicated region fallthrough
CT: control target
= control target key end

     0   :  { %10 = vsyncpa [#allocation3], 0  ;;  %s9636_s0 = inlined_call_operand.vmem [shape: f32[2,20,18,8], index: 0, kind: input, shape index: {}]   ;;  %s9637_s1 = inlined_call_operand.vmem [shape: bf16[3,24,8], index: 1, kind: input, shape index: {}]   ;;  %s9638_s2 = inlined_call_operand.vmem [shape: f32[1,8], index: 2, kind: input, shape index: {}]   ;;  %s9639_s3 = inlined_call_operand.vmem [shape: bf16[3,24,8], index: 3, kind: input, shape index: {}]   ;;  %s9640_s4 = inlined_call_operand.vmem [shape: f32[1,8], index: 4, kind: input, shape index: {}]   ;;  %s9641_s5 = inlined_call_operand.hbm [shape: f32[2,16,128], index: 5, kind: output, shape index: {}]  }
   0x1   :  { %12 = vsyncpa [#allocation3 + $0x1], 0  ;;  %s5680_s18 = smov 0   ;;  %s5682_s19 = smov 0  }
   0x2   :  { %s5684_s20 = smov 0   ;;  %s5686_s21 = smov 0  }
   0x3   :  { %s5688_s22 = smov 0   ;;  %s5690_s23 = smov 0  }
   0x4   :  { %s5692_s24 = smov 0   ;;  %s5694_s25 = smov 0  }
   0x5 LB: > { %s5250_s26 = sadd.s32 4294967295, %s5631_s25   ;;  %s5251_s27 = sadd.s32 4294967294, %s5631_s25   ;;  %s5631_s25 = sphi %s5694_s25, %s18_s25   ;;  %s5627_s24 = sphi %s5692_s24, %s10205_s24   ;;  %s5623_s23 = sphi %s5690_s23, %s10204_s23   ;;  %s5619_s22 = sphi %s5688_s22, %s10203_s22   ;;  %s5615_s21 = sphi %s5686_s21, %s10202_s21   ;;  %s5611_s20 = sphi %s5684_s20, %s10201_s20   ;;  %s5607_s19 = sphi %s5682_s19, %s10200_s19   ;;  %s5603_s18 = sphi %s5680_s18, %s10199_s18  }
   0x6   : > { %s27_s28 = sadd.s32 1, %s5623_s23  ;;  %s30_s29 = sadd.s32 1, %s5627_s24 }
   0x7   : > { %p28_p0 = scmp.ge.s32.totalorder %s27_s28, 2  ;;  %p159_p1 = scmp.ne.s32.totalorder %s5611_s20, %s5607_s19 }
   0x8   : > { %p160_p2 = scmp.eq.s32.totalorder %s5250_s26, 3  ;;  %p165_p5 = scmp.ne.s32.totalorder %s5607_s19, %s5603_s18 }
   0x9   : > { %s10207_s28 = smov (%p28_p0, %s27_s28), 0  ;;  %s10209_s29 = smov (!%p28_p0, %s30_s29), %s5627_s24 }
   0xa   : > { %s145_s30 = ssub.s32 %s5623_s23, %s10207_s28  ;;  %p5731_p3 = por %p160_p2, %p159_p1 }
   0xb   : > { %p32_p4 = scmp.ge.s32.totalorder %s10209_s29, 2  ;;  %p166_p6 = scmp.eq.s32.totalorder %s5251_s27, 3 }
   0xc   : > { %p5254_p7 = scmp.ge.s32.totalorder %s5631_s25, 1  ;;  %p204_p9 = scmp.lt.s32.totalorder %s5631_s25, 5 }
   0xd   : > { %s10211_s29 = smov (%p32_p4, %s10209_s29), 0  ;;  %p5740_p8 = por %p166_p6, %p165_p5 }
   0xe   : > { %s144_s8 = ssub.s32 %s5627_s24, %s10211_s29  ;;  %s149_s9 = sadd.s32 1, %s5611_s20 }
   0xf   : > { %s146_s10 = sor.u32 %s145_s30, %s144_s8  ;;  %p205_p10 = pnand %p5254_p7, %p204_p9 }
  0x10   : > { %p147_p11 = scmp.eq.s32.totalorder %s146_s10, 0 }
  0x11   : > { %208 = sbr.rel (%p205_p10) target bundleno = 1660 (0x67c), region = 40 }
  0x12   : > { %s5749_s11 = scalar_select %p147_p11, %s5611_s20, %s149_s9  }
  0x16   : > { %p232_p12 = scmp.lt.s32.totalorder %s5619_s22, 1  ;;  %s5258_s13 = smul.u32 192, %s5615_s21  ;;  %vm887_vm0 = vcmask 1043456   ;;  %vm489_vm1 = vcmask 64512   ;;  %vm550_vm2 = vcmask 130048   ;;  %vm862_vm3 = vcmask 195584  }
  0x17   : > { %s5633_s27 = smov 8   ;;  %s5634_s30 = smov 16   ;;  %vm1408_vm4 = vcmask 1040384   ;;  %vm1409_vm5 = vcmask 1042434   ;;  %vm1411_vm7 = vcmask 1044484   ;;  %vm1413_vm9 = vcmask 1046534  }
  0x18   : > { %s233_s12 = scalar_select %p232_p12, %s5619_s22, 1  ;;  %vm1410_vm6 = vmor %vm1408_vm4, %vm1409_vm5 }
  0x19   : > { %vm1412_vm8 = vmor %vm1410_vm6, %vm1411_vm7  ;;  %s5638_s16 = smov 40   ;;  %s5640_s8 = smov 88  }
  0x1a   : > { %s5420_s14 = smul.u32 480, %s233_s12  ;;  %vm6589_vm10 = vmor %vm1412_vm8, %vm1413_vm9  ;;  %s5257_s12 = sshll.u32 %s5615_s21, 3 }
  0x1b   : > { %s5641_s9 = smov 48   ;;  %s5643_s10 = smov 72  }
  0x1c   : > { %s236_s17 = scalar_lea.vmem %s9636_s0, %s5420_s14  ;;  %s5647_s14 = smov 104  }
  0x1d   : > { %s5757_s26 = scalar_lea.vmem %s236_s17, %s5258_s13  ;;  %s5337_s13 = sadd.s32 4294967295, %s5257_s12 }
  0x1e   : > { %v247_v0 = vld [vmem:[%s5757_s26 + $0x30] sm:$0xff]  ;;  %v248_v1 = vld [vmem:[%s5757_s26 + $0x38] sm:$0xff]  ;;  %v245_v5 = vld [vmem:[%s5757_s26 + $0x20] sm:$0xff]  ;;  %s5639_s17 = smov 24   ;;  %s5644_s12 = smov 80  }
  0x1f   : > { %v244_v2 = vld [vmem:[%s5757_s26 + $0x18] sm:$0xff]  ;;  %v283_v3 = vpack.c.bf16 %v247_v0, %v247_v0  ;;  %v284_v4 = vpack.c.bf16 %v248_v1, %v248_v1  ;;  %v250_v7 = vld [vmem:[%s5757_s26 + $0x48] sm:$0xff]  ;;  %v251_v8 = vld [vmem:[%s5757_s26 + $0x50] sm:$0xff]  ;;  %v281_v9 = vpack.c.bf16 %v245_v5, %v245_v5  ;;  %s5648_s15 = smov 120  }
  0x20   : > { %v280_v6 = vpack.c.bf16 %v244_v2, %v244_v2  ;;  %v286_v10 = vpack.c.bf16 %v250_v7, %v250_v7  ;;  %v246_v11 = vld [vmem:[%s5757_s26 + $0x28] sm:$0x3]  ;;  %v287_v15 = vpack.c.bf16 %v251_v8, %v251_v8  ;;  %v249_v17 = vld [vmem:[%s5757_s26 + $0x40] sm:$0x3]  ;;  %v252_v35 = vld [vmem:[%s5757_s26 + $0x58] sm:$0x3] }
  0x21   : > { %v349_v12 = vunpack.c.l.b16 %v283_v3  ;;  %v350_v13 = vunpack.c.l.b16 %v284_v4  ;;  %v347_v16 = vunpack.c.l.b16 %v281_v9  ;;  %v282_v19 = vpack.c.bf16 %v246_v11, %v246_v11  ;;  %v253_v25 = vld [vmem:[%s5757_s26 + $0x60] sm:$0xff]  ;;  %v254_v26 = vld [vmem:[%s5757_s26 + $0x68] sm:$0xff]  ;;  %v256_v38 = vld [vmem:[%s5757_s26 + $0x78] sm:$0xff] }
  0x22   : > { %v346_v14 = vunpack.c.l.b16 %v280_v6  ;;  %v352_v21 = vunpack.c.l.b16 %v286_v10  ;;  %v353_v22 = vunpack.c.l.b16 %v287_v15  ;;  %v285_v24 = vpack.c.bf16 %v249_v17, %v249_v17  ;;  %v257_v39 = vld [vmem:[%s5757_s26 + $0x80] sm:$0xff]  ;;  %v255_v43 = vld [vmem:[%s5757_s26 + $0x70] sm:$0x3]  ;;  %v260_v51 = vld [vmem:[%s5757_s26 + $0x98] sm:$0xff] }
  0x23   : > { %v5767_v18 = vpack.c.b16 %v350_v13, %v349_v12  ;;  %v348_v23 = vunpack.c.l.b16 %v282_v19  ;;  %v289_v29 = vpack.c.bf16 %v253_v25, %v253_v25  ;;  %v290_v30 = vpack.c.bf16 %v254_v26, %v254_v26  ;;  %v259_v50 = vld [vmem:[%s5757_s26 + $0x90] sm:$0xff]  ;;  %v258_v55 = vld [vmem:[%s5757_s26 + $0x88] sm:$0x3]  ;;  %v261_v4 = vld [vmem:[%s5757_s26 + $0xa0] sm:$0x3] }
  0x24   : > { %v5769_v20 = vpack.c.b16 %v347_v16, %v346_v14  ;;  %v5779_v28 = vpack.c.b16 %v353_v22, %v352_v21  ;;  %v351_v31 = vunpack.c.l.b16 %v285_v24  ;;  %v288_v37 = vpack.c.bf16 %v252_v35, %v252_v35  ;;  %v262_v59 = vld [vmem:[%s5757_s26 + $0xa8] sm:$0xff]  ;;  %v263_v60 = vld [vmem:[%s5757_s26 + $0xb0] sm:$0xff]  ;;  %v265_v7 = vld [vmem:[%s5757_s26 + $0xc0] sm:$0xff] }
  0x25   : > { %405 = vrot.lane.b32.xlu1 %v5767_v18, %s5633_s27  ;;  %v5777_v27 = vpack.c.b16 %v348_v23, %v348_v23  ;;  %v355_v32 = vunpack.c.l.b16 %v289_v29  ;;  %v356_v33 = vunpack.c.l.b16 %v290_v30  ;;  %v292_v40 = vpack.c.bf16 %v256_v38, %v256_v38  ;;  %v266_v8 = vld [vmem:[%s5757_s26 + $0xc8] sm:$0xff]  ;;  %v264_v10 = vld [vmem:[%s5757_s26 + $0xb8] sm:$0x3]  ;;  %v267_v19 = vld [vmem:[%s5757_s26 + $0xd0] sm:$0x3] }
  0x26   : > { %401 = vrot.lane.b32.xlu0 %v5769_v20, %s5633_s27  ;;  %v5785_v34 = vpack.c.b16 %v351_v31, %v351_v31  ;;  %v293_v41 = vpack.c.bf16 %v257_v39, %v257_v39  ;;  %v354_v42 = vunpack.c.l.b16 %v288_v37  ;;  %v291_v44 = vpack.c.bf16 %v255_v43, %v255_v43  ;;  %v268_v24 = vld [vmem:[%s5757_s26 + $0xd8] sm:$0xff]  ;;  %v269_v25 = vld [vmem:[%s5757_s26 + $0xe0] sm:$0xff]  ;;  %v270_v31 = vld [vmem:[%s5757_s26 + $0xe8] sm:$0x3] }
  0x27   : > { %403 = vrot.lane.b32.xlu2 %v5777_v27, %s5633_s27  ;;  %v5790_v36 = vpack.c.b16 %v356_v33, %v355_v32  ;;  %v358_v45 = vunpack.c.l.b16 %v292_v40  ;;  %v295_v53 = vpack.c.bf16 %v259_v50, %v259_v50  ;;  %v296_v54 = vpack.c.bf16 %v260_v51, %v260_v51  ;;  %v271_v40 = vld [vmem:[%s5757_s26 + $0xf0] sm:$0xff] }
  0x28   : > { %v359_v46 = vunpack.c.l.b16 %v293_v41  ;;  %v5803_v47 = vpack.c.b16 %v354_v42, %v354_v42  ;;  %v357_v48 = vunpack.c.l.b16 %v291_v44  ;;  %v294_v56 = vpack.c.bf16 %v258_v55, %v258_v55  ;;  %v272_v41 = vld [vmem:[%s5757_s26 + $0xf8] sm:$0xff] }
  0x29   : > { %v361_v57 = vunpack.c.l.b16 %v295_v53  ;;  %v362_v58 = vunpack.c.l.b16 %v296_v54  ;;  %v298_v61 = vpack.c.bf16 %v262_v59, %v262_v59  ;;  %v299_v62 = vpack.c.bf16 %v263_v60, %v263_v60  ;;  %v273_v54 = vld [vmem:[%s5757_s26 + $0x100] sm:$0x3] }
  0x2a   : > { %v5807_v49 = vpack.c.b16 %v359_v46, %v358_v45  ;;  %v5813_v52 = vpack.c.b16 %v357_v48, %v357_v48  ;;  %v360_v63 = vunpack.c.l.b16 %v294_v56  ;;  %v297_v6 = vpack.c.bf16 %v261_v4, %v261_v4  ;;  %v274_v45 = vld [vmem:[%s5757_s26 + $0x108] sm:$0xff]  ;;  %v275_v46 = vld [vmem:[%s5757_s26 + $0x110] sm:$0xff] }
  0x2b   : > { %v5826_v0 = vpack.c.b16 %v362_v58, %v361_v57  ;;  %v364_v1 = vunpack.c.l.b16 %v298_v61  ;;  %v365_v2 = vunpack.c.l.b16 %v299_v62  ;;  %v301_v11 = vpack.c.bf16 %v265_v7, %v265_v7  ;;  %v276_v61 = vld [vmem:[%s5757_s26 + $0x118] sm:$0x3]  ;;  %v673_v4 = vld [vmem:[%s9637_s1 + $0x8] sm:$0xf] }
  0x2c   : > { %v5830_v3 = vpack.c.b16 %v360_v63, %v360_v63  ;;  %v363_v9 = vunpack.c.l.b16 %v297_v6  ;;  %v302_v12 = vpack.c.bf16 %v266_v8, %v266_v8  ;;  %v300_v13 = vpack.c.bf16 %v264_v10, %v264_v10  ;;  %v241_v8 = vld [vmem:[%s5757_s26] sm:$0xff] }
  0x2d   : > { %453 = vrot.lane.b32.xlu1 %v5779_v28, %s5634_s30  ;;  %v5835_v5 = vpack.c.b16 %v365_v2, %v364_v1  ;;  %v367_v15 = vunpack.c.l.b16 %v301_v11  ;;  %v303_v23 = vpack.c.bf16 %v267_v19, %v267_v19  ;;  %v304_v29 = vpack.c.bf16 %v268_v24, %v268_v24 }
  0x2e   : > { %449 = vrot.lane.b32.xlu0 %v5767_v18, %s5634_s30  ;;  %v5848_v14 = vpack.c.b16 %v363_v9, %v363_v9  ;;  %v368_v16 = vunpack.c.l.b16 %v302_v12  ;;  %v366_v17 = vunpack.c.l.b16 %v300_v13  ;;  %v305_v30 = vpack.c.bf16 %v269_v25, %v269_v25  ;;  %v242_v9 = vld [vmem:[%s5757_s26 + $0x8] sm:$0xff] }
  0x2f   : > { %451 = vrot.lane.b32.xlu2 %v5785_v34, %s5634_s30  ;;  %v369_v26 = vunpack.c.l.b16 %v303_v23  ;;  %v306_v33 = vpack.c.bf16 %v270_v31, %v270_v31  ;;  %v370_v35 = vunpack.c.l.b16 %v304_v29  ;;  %v307_v43 = vpack.c.bf16 %v271_v40, %v271_v40  ;;  %v243_v23 = vld [vmem:[%s5757_s26 + $0x10] sm:$0x3] }
  0x30   : > { %v5855_v21 = vpack.c.b16 %v368_v16, %v367_v15  ;;  %v5857_v22 = vpack.c.b16 %v366_v17, %v366_v17  ;;  %v371_v37 = vunpack.c.l.b16 %v305_v30  ;;  %v308_v44 = vpack.c.bf16 %v272_v41, %v272_v41  ;;  %v5408_v17 = vld [vmem:[%s9637_s1] sm:$0xff] }
  0x31   : > { %v5868_v32 = vpack.c.b16 %v369_v26, %v369_v26  ;;  %v372_v38 = vunpack.c.l.b16 %v306_v33  ;;  %v310_v48 = vpack.c.bf16 %v274_v45, %v274_v45  ;;  %v311_v50 = vpack.c.bf16 %v275_v46, %v275_v46 }
  0x32   : > { %v5874_v39 = vpack.c.b16 %v371_v37, %v370_v35  ;;  %v396_v51 = vunpack.c.l.b16 %v307_v43  ;;  %v397_v53 = vunpack.c.l.b16 %v308_v44  ;;  %v309_v55 = vpack.c.bf16 %v273_v54, %v273_v54 }
  0x33   : > { %v5880_v42 = vpack.c.b16 %v372_v38, %v372_v38  ;;  %v444_v56 = vunpack.c.l.b16 %v310_v48  ;;  %v445_v57 = vunpack.c.l.b16 %v311_v50  ;;  %v312_v63 = vpack.c.bf16 %v276_v61, %v276_v61 }
  0x34   : > { %v399_v58 = vpack.c.b16 %v397_v53, %v396_v51  ;;  %v398_v59 = vunpack.c.l.b16 %v309_v55  ;;  %v858_v6 = vunpack.c.l.b16 %v673_v4  ;;  %v277_v11 = vpack.c.bf16 %v241_v8, %v241_v8 }
  0x35   : > { %457 = vrot.lane.b32.xlu1 %v5790_v36, %s5634_s30  ;;  %v447_v60 = vpack.c.b16 %v445_v57, %v444_v56  ;;  %v446_v1 = vunpack.c.l.b16 %v312_v63  ;;  %v278_v12 = vpack.c.bf16 %v242_v9, %v242_v9  ;;  %v279_v29 = vpack.c.bf16 %v243_v23, %v243_v23 }
  0x36   : > { %409 = vrot.lane.b32.xlu0 %v5779_v28, %s5633_s27  ;;  %v400_v62 = vpack.c.b16 %v398_v59, %v398_v59  ;;  %v860_v7 = vpack.c.b16 %v858_v6, %v858_v6  ;;  %v343_v15 = vunpack.c.l.b16 %v277_v11 }
  0x37   : > { %407 = vrot.lane.b32.xlu2 %v5785_v34, %s5633_s27  ;;  %v448_v2 = vpack.c.b16 %v446_v1, %v446_v1  ;;  %v344_v16 = vunpack.c.l.b16 %v278_v12  ;;  %v345_v43 = vunpack.c.l.b16 %v279_v29 }
  0x38   : > { %v889_v10 = vsel %vm887_vm0, %v860_v7, 0 }
  0x39   : > { %897 = vmatpush.bf16.msra.mxu0 %v889_v10  ;;  %5414 = vmatpush.bf16.msra.mxu1 %v889_v10  ;;  %v373_v19 = vpack.c.b16 %v344_v16, %v343_v15  ;;  %v374_v45 = vpack.c.b16 %v345_v43, %v345_v43 }
  0x3a   : > { %5415 = vmatpush.bf16.msra.mxu2 %v889_v10 }
  0x3d   : > { %413 = vrot.lane.b32.xlu1 %v5790_v36, %s5633_s27  ;;  %898 = vmatpush.bf16.msra.mxu0 %v5408_v17 }
  0x3e   : > { %455 = vrot.lane.b32.xlu0 %v5803_v47, %s5634_s30  ;;  %5416 = vmatpush.bf16.msra.mxu1 %v5408_v17 }
  0x3f   : > { %461 = vrot.lane.b32.xlu2 %v5807_v49, %s5634_s30  ;;  %5417 = vmatpush.bf16.msra.mxu2 %v5408_v17 }
  0x45   : > { %459 = vrot.lane.b32.xlu1 %v5813_v52, %s5634_s30 }
  0x46   : > { %411 = vrot.lane.b32.xlu0 %v5803_v47, %s5633_s27 }
  0x47   : > { %417 = vrot.lane.b32.xlu2 %v5807_v49, %s5633_s27 }
  0x4d   : > { %415 = vrot.lane.b32.xlu1 %v5813_v52, %s5633_s27 }
  0x4e   : > { %465 = vrot.lane.b32.xlu0 %v5826_v0, %s5634_s30 }
  0x4f   : > { %463 = vrot.lane.b32.xlu2 %v5830_v3, %s5634_s30 }
  0x55   : > { %469 = vrot.lane.b32.xlu1 %v5835_v5, %s5634_s30 }
  0x56   : > { %421 = vrot.lane.b32.xlu0 %v5826_v0, %s5633_s27 }
  0x57   : > { %419 = vrot.lane.b32.xlu2 %v5830_v3, %s5633_s27 }
  0x5d   : > { %425 = vrot.lane.b32.xlu1 %v5835_v5, %s5633_s27 }
  0x5e   : > { %467 = vrot.lane.b32.xlu0 %v5848_v14, %s5634_s30 }
  0x5f   : > { %473 = vrot.lane.b32.xlu2 %v5855_v21, %s5634_s30 }
  0x65   : > { %471 = vrot.lane.b32.xlu1 %v5857_v22, %s5634_s30 }
  0x66   : > { %423 = vrot.lane.b32.xlu0 %v5848_v14, %s5633_s27 }
  0x67   : > { %427 = vrot.lane.b32.xlu2 %v5857_v22, %s5633_s27 }
  0x6d   : > { %475 = vrot.lane.b32.xlu1 %v5868_v32, %s5634_s30 }
  0x6e   : > { %429 = vrot.lane.b32.xlu0 %v5855_v21, %s5633_s27 }
  0x6f   : > { %477 = vrot.lane.b32.xlu2 %v5874_v39, %s5634_s30 }
  0x75   : > { %479 = vrot.lane.b32.xlu1 %v5880_v42, %s5634_s30 }
  0x76   : > { %431 = vrot.lane.b32.xlu0 %v5868_v32, %s5633_s27 }
  0x77   : > { %433 = vrot.lane.b32.xlu2 %v5874_v39, %s5633_s27 }
  0x7d   : > { %437 = vrot.lane.b32.xlu1 %v399_v58, %s5633_s27 }
  0x7e   : > { %481 = vrot.lane.b32.xlu0 %v399_v58, %s5634_s30 }
  0x7f   : > { %485 = vrot.lane.b32.xlu2 %v447_v60, %s5634_s30 }
  0x81   : > { %v404_v38 = vpop.permute.xlu2 %403 }
  0x82   : > { %v495_v48 = vsel %vm489_vm1, %v374_v45, %v404_v38 }
  0x85   : > { %483 = vrot.lane.b32.xlu1 %v400_v62, %s5634_s30 }
  0x86   : > { %435 = vrot.lane.b32.xlu0 %v5880_v42, %s5633_s27 }
  0x87   : > { %439 = vrot.lane.b32.xlu2 %v400_v62, %s5633_s27 }
  0x89   : > { %v452_v51 = vpop.permute.xlu2 %451 }
  0x8a   : > { %v5952_v54 = vsel %vm550_vm2, %v495_v48, %v452_v51 }
  0x8e   : > { %487 = vrot.lane.b32.xlu0 %v448_v2, %s5634_s30 }
  0x91   : > { %v408_v7 = vpop.permute.xlu2 %407 }
  0x92   : > { %v501_v12 = vsel %vm489_vm1, %v5777_v27, %v408_v7 }
  0x97   : > { %v406_v30 = vpop.permute.xlu1 %405 }
  0x98   : > { %v402_v13 = vpop.permute.xlu0 %401  ;;  %v498_v50 = vsel %vm489_vm1, %v5769_v20, %v406_v30 }
  0x99   : > { %v492_v25 = vsel %vm489_vm1, %v373_v19, %v402_v13  ;;  %v462_v17 = vpop.permute.xlu2 %461 }
  0x9f   : > { %v454_v46 = vpop.permute.xlu1 %453 }
  0xa0   : > { %v450_v24 = vpop.permute.xlu0 %449  ;;  %v5949_v53 = vsel %vm550_vm2, %v498_v50, %v454_v46 }
  0xa1   : > { %v5914_v26 = vsel %vm550_vm2, %v492_v25, %v450_v24  ;;  %v5955_v56 = vrot.slane %v5949_v53, 1  ;;  %v5960_v57 = vrot.slane %v5949_v53, 2  ;;  %v5964_v20 = vrot.slane %v5949_v53, 3 }
  0xa2   : > { %v5917_v31 = vrot.slane %v5914_v26, 1  ;;  %v5920_v33 = vrot.slane %v5914_v26, 2  ;;  %v5923_v35 = vrot.slane %v5914_v26, 3  ;;  %674 = vst [vmem:[#allocation1] ss:$9 sm:$0xff] %v5914_v26  ;;  %v5927_v37 = vrot.slane %v5914_v26, 4 }
  0xa3   : > { %v5930_v40 = vrot.slane %v5914_v26, 5  ;;  %v5934_v41 = vrot.slane %v5914_v26, 6  ;;  %v5938_v44 = vrot.slane %v5914_v26, 7  ;;  %v5968_v58 = vrot.slane %v5949_v53, 4 }
  0xa4   : > { %677 = vst [vmem:[#allocation1 + $0x1] ss:$9 sm:$0xff] %v5917_v31  ;;  %v5972_v59 = vrot.slane %v5949_v53, 5  ;;  %v5976_v60 = vrot.slane %v5949_v53, 6  ;;  %v5987_v2 = vrot.slane %v5949_v53, 7 }
  0xa5   : > { %680 = vst [vmem:[#allocation1 + $0x2] ss:$9 sm:$0xff] %v5920_v33 }
  0xa6   : > { %683 = vst [vmem:[#allocation1 + $0x3] ss:$9 sm:$0xff] %v5923_v35 }
  0xa7   : > { %686 = vst [vmem:[#allocation1 + $0x4] ss:$9 sm:$0xff] %v5927_v37  ;;  %v458_v62 = vpop.permute.xlu1 %457 }
  0xa8   : > { %689 = vst [vmem:[#allocation1 + $0x5] ss:$9 sm:$0xff] %v5930_v40  ;;  %v410_v61 = vpop.permute.xlu0 %409 }
  0xa9   : > { %692 = vst [vmem:[#allocation1 + $0x6] ss:$9 sm:$0xff] %v5934_v41  ;;  %v504_v63 = vsel %vm489_vm1, %v5767_v18, %v410_v61 }
  0xaa   : > { %695 = vst [vmem:[#allocation1 + $0x7] ss:$9 sm:$0xff] %v5938_v44  ;;  %v5984_v1 = vsel %vm550_vm2, %v504_v63, %v458_v62 }
  0xab   : > { %v5990_v6 = vrot.slane %v5984_v1, 2  ;;  %v5994_v8 = vrot.slane %v5984_v1, 3  ;;  %v5997_v9 = vrot.slane %v5984_v1, 4  ;;  %v6002_v18 = vrot.slane %v5984_v1, 5 }
  0xac   : > { %v6007_v11 = vrot.slane %v5984_v1, 1  ;;  %v6024_v23 = vrot.slane %v5984_v1, 7  ;;  %v6027_v27 = vrot.slane %v5984_v1, 6 }
  0xaf   : > { %v414_v13 = vpop.permute.xlu1 %413 }
  0xb0   : > { %v456_v10 = vpop.permute.xlu0 %455  ;;  %v510_v16 = vsel %vm489_vm1, %v5779_v28, %v414_v13 }
  0xb1   : > { %v696_v55 = vld [vmem:[#allocation1] sm:$0xff]  ;;  %v6015_v15 = vsel %vm550_vm2, %v501_v12, %v456_v10  ;;  %v6021_v19 = vsel %vm550_vm2, %v510_v16, %v462_v17 }
  0xb2   : > { %697 = vst [vmem:[#allocation1] ss:$9 sm:$0xff] %v5952_v54  ;;  %5263 = vmatmul.msk.bf16.vlgmr.msra.gmra.mxu0 %vm862_vm3, %v696_v55  ;;  %v6031_v29 = vrot.slane %v6021_v19, 2  ;;  %v6035_v28 = vrot.slane %v6021_v19, 3  ;;  %v6040_v43 = vrot.slane %v6021_v19, 4  ;;  %v6046_v45 = vrot.slane %v6021_v19, 1 }
  0xb3   : > { %698 = vst [vmem:[#allocation1 + $0x1] ss:$9 sm:$0xff] %v5949_v53  ;;  %v6061_v55 = vrot.slane %v6021_v19, 7  ;;  %v6064_v62 = vrot.slane %v6021_v19, 5  ;;  %v6070_v7 = vrot.slane %v6021_v19, 6 }
  0xb4   : > { %700 = vst [vmem:[#allocation1 + $0x2] ss:$9 sm:$0xff] %v5955_v56 }
  0xb5   : > { %702 = vst [vmem:[#allocation1 + $0x3] ss:$9 sm:$0xff] %v5960_v57 }
  0xb6   : > { %704 = vst [vmem:[#allocation1 + $0x4] ss:$9 sm:$0xff] %v5964_v20 }
  0xb7   : > { %706 = vst [vmem:[#allocation1 + $0x5] ss:$9 sm:$0xff] %v5968_v58  ;;  %v460_v30 = vpop.permute.xlu1 %459 }
  0xb8   : > { %708 = vst [vmem:[#allocation1 + $0x6] ss:$9 sm:$0xff] %v5972_v59  ;;  %v412_v24 = vpop.permute.xlu0 %411 }
  0xb9   : > { %710 = vst [vmem:[#allocation1 + $0x7] ss:$9 sm:$0xff] %v5976_v60  ;;  %v507_v38 = vsel %vm489_vm1, %v5785_v34, %v412_v24  ;;  %v418_v34 = vpop.permute.xlu2 %417 }
  0xba   : > { %v6050_v46 = vsel %vm550_vm2, %v507_v38, %v460_v30  ;;  %v516_v50 = vsel %vm489_vm1, %v5790_v36, %v418_v34  ;;  %9811 = vst [vmem:[#allocation6_spill] sm:$0xff] %v6061_v55 }
  0xbf   : > { %v416_v61 = vpop.permute.xlu1 %415 }
  0xc0   : > { %v711_v4 = vld [vmem:[#allocation1] sm:$0xff]  ;;  %v466_v48 = vpop.permute.xlu0 %465  ;;  %v513_v10 = vsel %vm489_vm1, %v5803_v47, %v416_v61 }
  0xc1   : > { %713 = vst [vmem:[#allocation1] ss:$9 sm:$0xff] %v5987_v2  ;;  %v6058_v51 = vsel %vm550_vm2, %v516_v50, %v466_v48  ;;  %v464_v12 = vpop.permute.xlu2 %463 }
  0xc2   : > { %719 = vst [vmem:[#allocation1 + $0x4] ss:$9 sm:$0xff] %v5990_v6  ;;  %5264 = vmatmul.msk.bf16.gmra.mxu0 %vm862_vm3, %v711_v4  ;;  %v6067_v4 = vrot.slane %v6058_v51, 2  ;;  %v6074_v36 = vrot.slane %v6058_v51, 3  ;;  %v6081_v13 = vrot.slane %v6058_v51, 1  ;;  %v6087_v16 = vsel %vm550_vm2, %v513_v10, %v464_v12 }
  0xc3   : > { %721 = vst [vmem:[#allocation1 + $0x5] ss:$9 sm:$0xff] %v5994_v8  ;;  %v6101_v38 = vrot.slane %v6058_v51, 4  ;;  %v6104_v48 = vrot.slane %v6058_v51, 5  ;;  %v6108_v61 = vrot.slane %v6058_v51, 6 }
  0xc4   : > { %723 = vst [vmem:[#allocation1 + $0x6] ss:$9 sm:$0xff] %v5997_v9 }
  0xc5   : > { %725 = vst [vmem:[#allocation1 + $0x7] ss:$9 sm:$0xff] %v6002_v18 }
  0xc6   : > { %715 = vst [vmem:[#allocation1 + $0x2] ss:$9 sm:$0xff] %v5984_v1 }
  0xc7   : > { %717 = vst [vmem:[#allocation1 + $0x3] ss:$9 sm:$0xff] %v6007_v11  ;;  %v470_v17 = vpop.permute.xlu1 %469 }
  0xc8   : > { %714 = vst [vmem:[#allocation1 + $0x1] ss:$9 sm:$0xff] %v6015_v15  ;;  %v422_v47 = vpop.permute.xlu0 %421 }
  0xc9   : > { %9810 = vst [vmem:[#allocation5_spill] sm:$0xff] %v6058_v51  ;;  %v522_v24 = vsel %vm489_vm1, %v5807_v49, %v422_v47  ;;  %v420_v50 = vpop.permute.xlu2 %419 }
  0xca   : > { %9812 = vst [vmem:[#allocation7_spill] sm:$0xff] %v6067_v4  ;;  %v6098_v30 = vsel %vm550_vm2, %v522_v24, %v470_v17  ;;  %v519_v12 = vsel %vm489_vm1, %v5813_v52, %v420_v50 }
  0xcb   : > { %9813 = vst [vmem:[#allocation8_spill] sm:$0xff] %v6074_v36  ;;  %v6112_v49 = vrot.slane %v6098_v30, 2  ;;  %v6116_v10 = vrot.slane %v6098_v30, 1 }
  0xcc   : > { %9814 = vst [vmem:[#allocation9_spill] sm:$0xff] %v6081_v13 }
  0xcd   : > { %9815 = vst [vmem:[#allocation10_spill] sm:$0xff] %v6087_v16 }
  0xce   : > { %9817 = vst [vmem:[#allocation12_spill] sm:$0xff] %v6098_v30 }
  0xcf   : > { %v726_v25 = vld [vmem:[#allocation1] sm:$0xff]  ;;  %9818 = vst [vmem:[#allocation13_spill] sm:$0xff] %v6101_v38  ;;  %v426_v17 = vpop.permute.xlu1 %425 }
  0xd0   : > { %730 = vst [vmem:[#allocation1 + $0x1] ss:$9 sm:$0xff] %v6024_v23  ;;  %v528_v52 = vsel %vm489_vm1, %v5826_v0, %v426_v17  ;;  %v6151_v17 = vrot.slane %v6098_v30, 6 }
  0xd1   : > { %728 = vst [vmem:[#allocation1] ss:$9 sm:$0xff] %v6027_v27  ;;  %v474_v24 = vpop.permute.xlu2 %473 }
  0xd2   : > { %736 = vst [vmem:[#allocation1 + $0x5] ss:$9 sm:$0xff] %v6031_v29  ;;  %5265 = vmatmul.msk.bf16.gmra.mxu0 %vm862_vm3, %v726_v25  ;;  %v6095_v25 = vrot.slane %v6058_v51, 7 }
  0xd3   : > { %738 = vst [vmem:[#allocation1 + $0x6] ss:$9 sm:$0xff] %v6035_v28 }
  0xd4   : > { %740 = vst [vmem:[#allocation1 + $0x7] ss:$9 sm:$0xff] %v6040_v43 }
  0xd5   : > { %732 = vst [vmem:[#allocation1 + $0x3] ss:$9 sm:$0xff] %v6021_v19 }
  0xd6   : > { %734 = vst [vmem:[#allocation1 + $0x4] ss:$9 sm:$0xff] %v6046_v45 }
  0xd7   : > { %731 = vst [vmem:[#allocation1 + $0x2] ss:$9 sm:$0xff] %v6050_v46 }
  0xd8   : > { %9816 = vst [vmem:[#allocation11_spill] sm:$0xff] %v6095_v25 }
  0xd9   : > { %9819 = vst [vmem:[#allocation14_spill] sm:$0xff] %v6104_v48 }
  0xda   : > { %9820 = vst [vmem:[#allocation15_spill] sm:$0xff] %v6108_v61 }
  0xdb   : > { %9821 = vst [vmem:[#allocation16_spill] sm:$0xff] %v6112_v49 }
  0xdc   : > { %9822 = vst [vmem:[#allocation17_spill] sm:$0xff] %v6116_v10 }
  0xdd   : > { %9829 = vst [vmem:[#allocation24_spill] sm:$0xff] %v6151_v17 }
  0xde   : > { %v741_v63 = vld [vmem:[#allocation1] sm:$0xff] }
  0xdf   : > { %747 = vst [vmem:[#allocation1 + $0x2] ss:$9 sm:$0xff] %v6061_v55 }
  0xe0   : > { %743 = vst [vmem:[#allocation1] ss:$9 sm:$0xff] %v6064_v62 }
  0xe1   : > { %745 = vst [vmem:[#allocation1 + $0x1] ss:$9 sm:$0xff] %v6070_v7 }
  0xe2   : > { %753 = vst [vmem:[#allocation1 + $0x6] ss:$9 sm:$0xff] %v6067_v4  ;;  %5266 = vmatmul.msk.bf16.gmra.mxu0 %vm862_vm3, %v741_v63  ;;  %v468_v63 = vpop.permute.xlu0 %467 }
  0xe3   : > { %755 = vst [vmem:[#allocation1 + $0x7] ss:$9 sm:$0xff] %v6074_v36  ;;  %v6123_v47 = vsel %vm550_vm2, %v519_v12, %v468_v63  ;;  %v6135_v63 = vrot.slane %v6098_v30, 3 }
  0xe4   : > { %749 = vst [vmem:[#allocation1 + $0x4] ss:$9 sm:$0xff] %v6058_v51 }
  0xe5   : > { %751 = vst [vmem:[#allocation1 + $0x5] ss:$9 sm:$0xff] %v6081_v13 }
  0xe6   : > { %748 = vst [vmem:[#allocation1 + $0x3] ss:$9 sm:$0xff] %v6087_v16 }
  0xe7   : > { %9823 = vst [vmem:[#allocation18_spill] sm:$0xff] %v6123_v47 }
  0xe8   : > { %9825 = vst [vmem:[#allocation20_spill] sm:$0xff] %v6135_v63 }
  0xea   : > { %v424_v50 = vpop.permute.xlu0 %423 }
  0xeb   : > { %v525_v0 = vsel %vm489_vm1, %v5830_v3, %v424_v50  ;;  %v428_v3 = vpop.permute.xlu2 %427 }
  0xed   : > { %v756_v34 = vld [vmem:[#allocation1] sm:$0xff] }
  0xee   : > { %764 = vst [vmem:[#allocation1 + $0x3] ss:$9 sm:$0xff] %v6095_v25  ;;  %v6130_v25 = vrot.slane %v6098_v30, 7 }
  0xef   : > { %758 = vst [vmem:[#allocation1] ss:$9 sm:$0xff] %v6101_v38 }
  0xf0   : > { %760 = vst [vmem:[#allocation1 + $0x1] ss:$9 sm:$0xff] %v6104_v48 }
  0xf1   : > { %762 = vst [vmem:[#allocation1 + $0x2] ss:$9 sm:$0xff] %v6108_v61 }
  0xf2   : > { %766 = vst [vmem:[#allocation1 + $0x5] ss:$9 sm:$0xff] %v6098_v30  ;;  %5267 = vmatmul.msk.bf16.gmra.mxu0 %vm862_vm3, %v756_v34  ;;  %v6138_v34 = vrot.slane %v6098_v30, 4 }
  0xf3   : > { %770 = vst [vmem:[#allocation1 + $0x7] ss:$9 sm:$0xff] %v6112_v49  ;;  %v6142_v49 = vrot.slane %v6098_v30, 5 }
  0xf4   : > { %768 = vst [vmem:[#allocation1 + $0x6] ss:$9 sm:$0xff] %v6116_v10  ;;  %v6146_v10 = vsel %vm550_vm2, %v528_v52, %v474_v24  ;;  %v430_v52 = vpop.permute.xlu0 %429 }
  0xf5   : > { %765 = vst [vmem:[#allocation1 + $0x4] ss:$9 sm:$0xff] %v6123_v47  ;;  %v472_v47 = vpop.permute.xlu1 %471  ;;  %v6167_v24 = vrot.slane %v6146_v10, 7  ;;  %v6170_v50 = vrot.slane %v6146_v10, 2 }
  0xf6   : > { %9824 = vst [vmem:[#allocation19_spill] sm:$0xff] %v6130_v25 }
  0xf7   : > { %9826 = vst [vmem:[#allocation21_spill] sm:$0xff] %v6138_v34 }
  0xf8   : > { %9827 = vst [vmem:[#allocation22_spill] sm:$0xff] %v6142_v49 }
  0xf9   : > { %9828 = vst [vmem:[#allocation23_spill] sm:$0xff] %v6146_v10 }
  0xfa   : > { %9832 = vst [vmem:[#allocation27_spill] sm:$0xff] %v6167_v24 }
  0xfb   : > { %9833 = vst [vmem:[#allocation28_spill] sm:$0xff] %v6170_v50 }
  0xfc   : > { %v771_v12 = vld [vmem:[#allocation1] sm:$0xff] }
  0xfd   : > { %781 = vst [vmem:[#allocation1 + $0x4] ss:$9 sm:$0xff] %v6130_v25  ;;  %v6157_v25 = vrot.slane %v6146_v10, 1 }
  0xfe   : > { %773 = vst [vmem:[#allocation1] ss:$9 sm:$0xff] %v6135_v63  ;;  %v6160_v63 = vsel %vm550_vm2, %v525_v0, %v472_v47  ;;  %v6173_v47 = vrot.slane %v6146_v10, 3  ;;  %v476_v0 = vpop.permute.xlu1 %475 }
  0xff   : > { %775 = vst [vmem:[#allocation1 + $0x1] ss:$9 sm:$0xff] %v6138_v34  ;;  %v531_v34 = vsel %vm489_vm1, %v5848_v14, %v428_v3  ;;  %v432_v14 = vpop.permute.xlu0 %431 }
 0x100   : > { %777 = vst [vmem:[#allocation1 + $0x2] ss:$9 sm:$0xff] %v6142_v49  ;;  %v6183_v49 = vrot.slane %v6146_v10, 5  ;;  %v6193_v30 = vsel %vm550_vm2, %v531_v34, %v476_v0 }
 0x101   : > { %779 = vst [vmem:[#allocation1 + $0x3] ss:$9 sm:$0xff] %v6151_v17 }
 0x102   : > { %9830 = vst [vmem:[#allocation25_spill] sm:$0xff] %v6157_v25  ;;  %5268 = vmatmul.msk.bf16.gmra.mxu0 %vm862_vm3, %v771_v12  ;;  %v6177_v12 = vrot.slane %v6146_v10, 4 }
 0x103   : > { %9831 = vst [vmem:[#allocation26_spill] sm:$0xff] %v6160_v63 }
 0x104   : > { %783 = vst [vmem:[#allocation1 + $0x6] ss:$9 sm:$0xff] %v6146_v10 }
 0x105   : > { %785 = vst [vmem:[#allocation1 + $0x7] ss:$9 sm:$0xff] %v6157_v25  ;;  %v534_v25 = vsel %vm489_vm1, %v5835_v5, %v430_v52 }
 0x106   : > { %782 = vst [vmem:[#allocation1 + $0x5] ss:$9 sm:$0xff] %v6160_v63  ;;  %v478_v63 = vpop.permute.xlu2 %477 }
 0x107   : > { %9834 = vst [vmem:[#allocation29_spill] sm:$0xff] %v6173_v47  ;;  %v6197_v5 = vsel %vm550_vm2, %v534_v25, %v478_v63  ;;  %v537_v63 = vsel %vm489_vm1, %v5857_v22, %v432_v14 }
 0x108   : > { %9835 = vst [vmem:[#allocation30_spill] sm:$0xff] %v6177_v12  ;;  %v6204_v3 = vrot.slane %v6197_v5, 2  ;;  %v6207_v34 = vrot.slane %v6197_v5, 3  ;;  %v6210_v0 = vrot.slane %v6197_v5, 4  ;;  %v6215_v25 = vrot.slane %v6197_v5, 5 }
 0x109   : > { %9836 = vst [vmem:[#allocation31_spill] sm:$0xff] %v6183_v49 }
 0x10a   : > { %9838 = vst [vmem:[#allocation33_spill] sm:$0xff] %v6193_v30 }
 0x10b   : > { %9839 = vst [vmem:[#allocation34_spill] sm:$0xff] %v6197_v5 }
 0x10c   : > { %9840 = vst [vmem:[#allocation35_spill] sm:$0xff] %v6204_v3 }
 0x10d   : > { %v786_v17 = vld [vmem:[#allocation1] sm:$0xff]  ;;  %9841 = vst [vmem:[#allocation36_spill] sm:$0xff] %v6207_v34 }
 0x10e   : > { %798 = vst [vmem:[#allocation1 + $0x5] ss:$9 sm:$0xff] %v6167_v24  ;;  %v6189_v24 = vrot.slane %v6146_v10, 6  ;;  %v434_v22 = vpop.permute.xlu2 %433 }
 0x10f   : > { %788 = vst [vmem:[#allocation1] ss:$9 sm:$0xff] %v6170_v50  ;;  %v540_v14 = vsel %vm489_vm1, %v5855_v21, %v434_v22 }
 0x110   : > { %790 = vst [vmem:[#allocation1 + $0x1] ss:$9 sm:$0xff] %v6173_v47 }
 0x111   : > { %9837 = vst [vmem:[#allocation32_spill] sm:$0xff] %v6189_v24 }
 0x112   : > { %792 = vst [vmem:[#allocation1 + $0x2] ss:$9 sm:$0xff] %v6177_v12  ;;  %5269 = vmatmul.msk.bf16.gmra.mxu0 %vm862_vm3, %v786_v17  ;;  %v480_v17 = vpop.permute.xlu1 %479 }
 0x113   : > { %794 = vst [vmem:[#allocation1 + $0x3] ss:$9 sm:$0xff] %v6183_v49 }
 0x114   : > { %796 = vst [vmem:[#allocation1 + $0x4] ss:$9 sm:$0xff] %v6189_v24  ;;  %v6225_v24 = vrot.slane %v6197_v5, 7 }
 0x115   : > { %799 = vst [vmem:[#allocation1 + $0x6] ss:$9 sm:$0xff] %v6193_v30  ;;  %v6221_v30 = vrot.slane %v6197_v5, 6 }
 0x116   : > { %800 = vst [vmem:[#allocation1 + $0x7] ss:$9 sm:$0xff] %v6197_v5 }
 0x117   : > { %9842 = vst [vmem:[#allocation37_spill] sm:$0xff] %v6210_v0 }
 0x118   : > { %9843 = vst [vmem:[#allocation38_spill] sm:$0xff] %v6215_v25 }
 0x119   : > { %9844 = vst [vmem:[#allocation39_spill] sm:$0xff] %v6221_v30 }
 0x11a   : > { %9845 = vst [vmem:[#allocation40_spill] sm:$0xff] %v6225_v24 }
 0x11d   : > { %v801_v52 = vld [vmem:[#allocation1] sm:$0xff] }
 0x11e   : > { %805 = vst [vmem:[#allocation1 + $0x1] ss:$9 sm:$0xff] %v6204_v3  ;;  %5270 = vmatmul.msk.bf16.vlgmr.msra.gmra.mxu1 %vm862_vm3, %v801_v52  ;;  %v6229_v52 = vrot.slane %v6197_v5, 1 }
 0x11f   : > { %807 = vst [vmem:[#allocation1 + $0x2] ss:$9 sm:$0xff] %v6207_v34  ;;  %v6233_v34 = vsel %vm550_vm2, %v537_v63, %v480_v17 }
 0x120   : > { %809 = vst [vmem:[#allocation1 + $0x3] ss:$9 sm:$0xff] %v6210_v0  ;;  %v482_v0 = vpop.permute.xlu0 %481 }
 0x121   : > { %811 = vst [vmem:[#allocation1 + $0x4] ss:$9 sm:$0xff] %v6215_v25  ;;  %v6241_v25 = vsel %vm550_vm2, %v540_v14, %v482_v0  ;;  %v438_v14 = vpop.permute.xlu1 %437 }
 0x122   : > { %9846 = vst [vmem:[#allocation41_spill] sm:$0xff] %v6229_v52  ;;  %v6244_v3 = vrot.slane %v6241_v25, 1  ;;  %v6247_v63 = vrot.slane %v6241_v25, 2  ;;  %v6257_v21 = vrot.slane %v6241_v25, 5  ;;  %v6262_v0 = vrot.slane %v6241_v25, 6 }
 0x123   : > { %813 = vst [vmem:[#allocation1 + $0x5] ss:$9 sm:$0xff] %v6221_v30  ;;  %v6253_v30 = vrot.slane %v6241_v25, 4  ;;  %v6266_v22 = vrot.slane %v6241_v25, 7 }
 0x124   : > { %9847 = vst [vmem:[#allocation42_spill] sm:$0xff] %v6233_v34 }
 0x125   : > { %815 = vst [vmem:[#allocation1 + $0x6] ss:$9 sm:$0xff] %v6225_v24  ;;  %v6250_v24 = vrot.slane %v6241_v25, 3 }
 0x126   : > { %803 = vst [vmem:[#allocation1] ss:$9 sm:$0xff] %v6229_v52 }
 0x127   : > { %816 = vst [vmem:[#allocation1 + $0x7] ss:$9 sm:$0xff] %v6233_v34 }
 0x128   : > { %9848 = vst [vmem:[#allocation43_spill] sm:$0xff] %v6241_v25 }
 0x129   : > { %9849 = vst [vmem:[#allocation44_spill] sm:$0xff] %v6244_v3 }
 0x12a   : > { %9850 = vst [vmem:[#allocation45_spill] sm:$0xff] %v6247_v63 }
 0x12b   : > { %9851 = vst [vmem:[#allocation46_spill] sm:$0xff] %v6250_v24 }
 0x12c   : > { %9852 = vst [vmem:[#allocation47_spill] sm:$0xff] %v6253_v30 }
 0x12d   : > { %9853 = vst [vmem:[#allocation48_spill] sm:$0xff] %v6257_v21 }
 0x12e   : > { %v817_v17 = vld [vmem:[#allocation1] sm:$0xff]  ;;  %9854 = vst [vmem:[#allocation49_spill] sm:$0xff] %v6262_v0 }
 0x12f   : > { %818 = vst [vmem:[#allocation1] ss:$9 sm:$0xff] %v6241_v25  ;;  %5271 = vmatmul.msk.bf16.gmra.mxu1 %vm862_vm3, %v817_v17  ;;  %v546_v17 = vsel %vm489_vm1, %v5874_v39, %v438_v14  ;;  %v436_v25 = vpop.permute.xlu0 %435 }
 0x130   : > { %820 = vst [vmem:[#allocation1 + $0x1] ss:$9 sm:$0xff] %v6244_v3  ;;  %v486_v3 = vpop.permute.xlu2 %485  ;;  %v543_v39 = vsel %vm489_vm1, %v5868_v32, %v436_v25 }
 0x131   : > { %822 = vst [vmem:[#allocation1 + $0x2] ss:$9 sm:$0xff] %v6247_v63  ;;  %v6276_v63 = vsel %vm550_vm2, %v546_v17, %v486_v3  ;;  %v484_v3 = vpop.permute.xlu1 %483 }
 0x132   : > { %9855 = vst [vmem:[#allocation50_spill] sm:$0xff] %v6266_v22  ;;  %v6292_v14 = vrot.slane %v6276_v63, 4  ;;  %v6297_v17 = vrot.slane %v6276_v63, 5  ;;  %v6305_v32 = vsel %vm550_vm2, %v543_v39, %v484_v3 }
 0x133   : > { %824 = vst [vmem:[#allocation1 + $0x3] ss:$9 sm:$0xff] %v6250_v24  ;;  %v6279_v24 = vrot.slane %v6276_v63, 1 }
 0x134   : > { %826 = vst [vmem:[#allocation1 + $0x4] ss:$9 sm:$0xff] %v6253_v30  ;;  %v6282_v30 = vrot.slane %v6276_v63, 2 }
 0x135   : > { %828 = vst [vmem:[#allocation1 + $0x5] ss:$9 sm:$0xff] %v6257_v21 }
 0x136   : > { %830 = vst [vmem:[#allocation1 + $0x6] ss:$9 sm:$0xff] %v6262_v0  ;;  %v6286_v0 = vrot.slane %v6276_v63, 3 }
 0x137   : > { %832 = vst [vmem:[#allocation1 + $0x7] ss:$9 sm:$0xff] %v6266_v22  ;;  %v6301_v22 = vrot.slane %v6276_v63, 6 }
 0x138   : > { %9856 = vst [vmem:[#allocation51_spill] sm:$0xff] %v6279_v24 }
 0x139   : > { %9857 = vst [vmem:[#allocation52_spill] sm:$0xff] %v6282_v30 }
 0x13a   : > { %9858 = vst [vmem:[#allocation53_spill] sm:$0xff] %v6286_v0 }
 0x13b   : > { %9859 = vst [vmem:[#allocation54_spill] sm:$0xff] %v6292_v14 }
 0x13e   : > { %v833_v34 = vld [vmem:[#allocation1] sm:$0xff] }
 0x13f   : > { %835 = vst [vmem:[#allocation1 + $0x1] ss:$9 sm:$0xff] %v6276_v63  ;;  %5272 = vmatmul.msk.bf16.gmra.mxu1 %vm862_vm3, %v833_v34  ;;  %v440_v34 = vpop.permute.xlu2 %439 }
 0x140   : > { %837 = vst [vmem:[#allocation1 + $0x2] ss:$9 sm:$0xff] %v6279_v24  ;;  %v549_v25 = vsel %vm489_vm1, %v5880_v42, %v440_v34 }
 0x141   : > { %839 = vst [vmem:[#allocation1 + $0x3] ss:$9 sm:$0xff] %v6282_v30  ;;  %v488_v30 = vpop.permute.xlu0 %487 }
 0x142   : > { %841 = vst [vmem:[#allocation1 + $0x4] ss:$9 sm:$0xff] %v6286_v0  ;;  %v6313_v0 = vrot.slane %v6276_v63, 7  ;;  %v6316_v24 = vsel %vm550_vm2, %v549_v25, %v488_v30  ;;  %v9860_v25 = vld [vmem:[#allocation11_spill] sm:$0xff] }
 0x143   : > { %843 = vst [vmem:[#allocation1 + $0x5] ss:$9 sm:$0xff] %v6292_v14 }
 0x144   : > { %845 = vst [vmem:[#allocation1 + $0x6] ss:$9 sm:$0xff] %v6297_v17 }
 0x145   : > { %847 = vst [vmem:[#allocation1 + $0x7] ss:$9 sm:$0xff] %v6301_v22 }
 0x146   : > { %834 = vst [vmem:[#allocation1] ss:$9 sm:$0xff] %v6305_v32 }
 0x14d   : > { %v848_v14 = vld [vmem:[#allocation1] sm:$0xff] }
 0x14e   : > { %850 = vst [vmem:[#allocation1] ss:$9 sm:$0xff] %v6313_v0 }
 0x14f   : > { %851 = vst [vmem:[#allocation1 + $0x1] ss:$9 sm:$0xff] %v6316_v24  ;;  %5273 = vmatmul.msk.bf16.gmra.mxu1 %vm862_vm3, %v848_v14 }
 0x156   : > { %v852_v39 = vld [vmem:[#allocation1] sm:$0xff] }
 0x157   : > { %1105 = vst [vmem:[#allocation1] ss:$9 sm:$0xff] %v5914_v26  ;;  %5274 = vmatmul.msk.bf16.vlgmr.msra.gmra.mxu2 %vm862_vm3, %v852_v39  ;;  %v9861_v39 = vld [vmem:[#allocation18_spill] sm:$0xff] }
 0x158   : > { %1107 = vst [vmem:[#allocation1 + $0x1] ss:$9 sm:$0xff] %v5917_v31 }
 0x159   : > { %1109 = vst [vmem:[#allocation1 + $0x2] ss:$9 sm:$0xff] %v5920_v33 }
 0x15a   : > { %1111 = vst [vmem:[#allocation1 + $0x3] ss:$9 sm:$0xff] %v5923_v35 }
 0x15b   : > { %1113 = vst [vmem:[#allocation1 + $0x4] ss:$9 sm:$0xff] %v5927_v37 }
 0x15c   : > { %1115 = vst [vmem:[#allocation1 + $0x5] ss:$9 sm:$0xff] %v5930_v40 }
 0x15d   : > { %1117 = vst [vmem:[#allocation1 + $0x6] ss:$9 sm:$0xff] %v5934_v41 }
 0x15e   : > { %1119 = vst [vmem:[#allocation1 + $0x7] ss:$9 sm:$0xff] %v5938_v44 }
 0x165   : > { %v6330_v42 = vld [vmem:[#allocation1] sm:$0xff] }
 0x166   : > { %1121 = vst [vmem:[#allocation1] ss:$9 sm:$0xff] %v5952_v54 }
 0x167   : > { %1122 = vst [vmem:[#allocation1 + $0x1] ss:$9 sm:$0xff] %v5949_v53 }
 0x168   : > { %1123 = vst [vmem:[#allocation1 + $0x2] ss:$9 sm:$0xff] %v5955_v56 }
 0x169   : > { %1124 = vst [vmem:[#allocation1 + $0x3] ss:$9 sm:$0xff] %v5960_v57 }
 0x16a   : > { %1125 = vst [vmem:[#allocation1 + $0x4] ss:$9 sm:$0xff] %v5964_v20 }
 0x16b   : > { %1126 = vst [vmem:[#allocation1 + $0x5] ss:$9 sm:$0xff] %v5968_v58 }
 0x16c   : > { %1127 = vst [vmem:[#allocation1 + $0x6] ss:$9 sm:$0xff] %v5972_v59 }
 0x16d   : > { %1128 = vst [vmem:[#allocation1 + $0x7] ss:$9 sm:$0xff] %v5976_v60 }
 0x174   : > { %v6340_v30 = vld [vmem:[#allocation1] sm:$0xff] }
 0x175   : > { %1130 = vst [vmem:[#allocation1] ss:$9 sm:$0xff] %v5987_v2 }
 0x176   : > { %1131 = vst [vmem:[#allocation1 + $0x1] ss:$9 sm:$0xff] %v6015_v15 }
 0x177   : > { %1132 = vst [vmem:[#allocation1 + $0x2] ss:$9 sm:$0xff] %v5984_v1 }
 0x178   : > { %1133 = vst [vmem:[#allocation1 + $0x3] ss:$9 sm:$0xff] %v6007_v11 }
 0x179   : > { %1134 = vst [vmem:[#allocation1 + $0x4] ss:$9 sm:$0xff] %v5990_v6 }
 0x17a   : > { %1135 = vst [vmem:[#allocation1 + $0x5] ss:$9 sm:$0xff] %v5994_v8 }
 0x17b   : > { %1136 = vst [vmem:[#allocation1 + $0x6] ss:$9 sm:$0xff] %v5997_v9 }
 0x17c   : > { %1137 = vst [vmem:[#allocation1 + $0x7] ss:$9 sm:$0xff] %v6002_v18 }
 0x183   : > { %v6350_v3 = vld [vmem:[#allocation1] sm:$0xff] }
 0x184   : > { %1139 = vst [vmem:[#allocation1] ss:$9 sm:$0xff] %v6027_v27 }
 0x185   : > { %1140 = vst [vmem:[#allocation1 + $0x1] ss:$9 sm:$0xff] %v6024_v23 }
 0x186   : > { %1141 = vst [vmem:[#allocation1 + $0x2] ss:$9 sm:$0xff] %v6050_v46 }
 0x187   : > { %1142 = vst [vmem:[#allocation1 + $0x3] ss:$9 sm:$0xff] %v6021_v19 }
 0x188   : > { %1143 = vst [vmem:[#allocation1 + $0x4] ss:$9 sm:$0xff] %v6046_v45 }
 0x189   : > { %1144 = vst [vmem:[#allocation1 + $0x5] ss:$9 sm:$0xff] %v6031_v29 }
 0x18a   : > { %1145 = vst [vmem:[#allocation1 + $0x6] ss:$9 sm:$0xff] %v6035_v28 }
 0x18b   : > { %1146 = vst [vmem:[#allocation1 + $0x7] ss:$9 sm:$0xff] %v6040_v43 }
 0x192   : > { %v6360_v14 = vld [vmem:[#allocation1] sm:$0xff] }
 0x193   : > { %1148 = vst [vmem:[#allocation1] ss:$9 sm:$0xff] %v6064_v62 }
 0x194   : > { %1149 = vst [vmem:[#allocation1 + $0x1] ss:$9 sm:$0xff] %v6070_v7 }
 0x195   : > { %1150 = vst [vmem:[#allocation1 + $0x2] ss:$9 sm:$0xff] %v6061_v55  ;;  %v9866_v55 = vld [vmem:[#allocation21_spill] sm:$0xff] }
 0x196   : > { %1151 = vst [vmem:[#allocation1 + $0x3] ss:$9 sm:$0xff] %v6087_v16  ;;  %v9862_v16 = vld [vmem:[#allocation12_spill] sm:$0xff] }
 0x197   : > { %1152 = vst [vmem:[#allocation1 + $0x4] ss:$9 sm:$0xff] %v6058_v51  ;;  %v9863_v51 = vld [vmem:[#allocation17_spill] sm:$0xff] }
 0x198   : > { %1153 = vst [vmem:[#allocation1 + $0x5] ss:$9 sm:$0xff] %v6081_v13  ;;  %v9864_v13 = vld [vmem:[#allocation16_spill] sm:$0xff] }
 0x199   : > { %1154 = vst [vmem:[#allocation1 + $0x6] ss:$9 sm:$0xff] %v6067_v4 }
 0x19a   : > { %1155 = vst [vmem:[#allocation1 + $0x7] ss:$9 sm:$0xff] %v6074_v36  ;;  %v9865_v36 = vld [vmem:[#allocation20_spill] sm:$0xff] }
 0x1a1   : > { %v6370_v34 = vld [vmem:[#allocation1] sm:$0xff] }
 0x1a2   : > { %1157 = vst [vmem:[#allocation1] ss:$9 sm:$0xff] %v6101_v38  ;;  %v9867_v38 = vld [vmem:[#allocation22_spill] sm:$0xff] }
 0x1a3   : > { %1158 = vst [vmem:[#allocation1 + $0x1] ss:$9 sm:$0xff] %v6104_v48  ;;  %v9868_v48 = vld [vmem:[#allocation24_spill] sm:$0xff] }
 0x1a4   : > { %1159 = vst [vmem:[#allocation1 + $0x2] ss:$9 sm:$0xff] %v6108_v61  ;;  %v9869_v61 = vld [vmem:[#allocation19_spill] sm:$0xff] }
 0x1a5   : > { %1160 = vst [vmem:[#allocation1 + $0x3] ss:$9 sm:$0xff] %v9860_v25  ;;  %v9870_v25 = vld [vmem:[#allocation26_spill] sm:$0xff] }
 0x1a6   : > { %1161 = vst [vmem:[#allocation1 + $0x4] ss:$9 sm:$0xff] %v9861_v39 }
 0x1a7   : > { %1162 = vst [vmem:[#allocation1 + $0x5] ss:$9 sm:$0xff] %v9862_v16  ;;  %v9871_v16 = vld [vmem:[#allocation25_spill] sm:$0xff] }
 0x1a8   : > { %1163 = vst [vmem:[#allocation1 + $0x6] ss:$9 sm:$0xff] %v9863_v51 }
 0x1a9   : > { %1164 = vst [vmem:[#allocation1 + $0x7] ss:$9 sm:$0xff] %v9864_v13 }
 0x1b0   : > { %v6380_v4 = vld [vmem:[#allocation1] sm:$0xff] }
 0x1b1   : > { %1166 = vst [vmem:[#allocation1] ss:$9 sm:$0xff] %v9865_v36 }
 0x1b2   : > { %1167 = vst [vmem:[#allocation1 + $0x1] ss:$9 sm:$0xff] %v9866_v55 }
 0x1b3   : > { %1168 = vst [vmem:[#allocation1 + $0x2] ss:$9 sm:$0xff] %v9867_v38  ;;  %v9872_v38 = vld [vmem:[#allocation32_spill] sm:$0xff] }
 0x1b4   : > { %1169 = vst [vmem:[#allocation1 + $0x3] ss:$9 sm:$0xff] %v9868_v48  ;;  %v9873_v48 = vld [vmem:[#allocation27_spill] sm:$0xff] }
 0x1b5   : > { %1170 = vst [vmem:[#allocation1 + $0x4] ss:$9 sm:$0xff] %v9869_v61  ;;  %v9874_v61 = vld [vmem:[#allocation33_spill] sm:$0xff] }
 0x1b6   : > { %1171 = vst [vmem:[#allocation1 + $0x5] ss:$9 sm:$0xff] %v9870_v25  ;;  %v9883_v25 = vld [vmem:[#allocation44_spill] sm:$0xff] }
 0x1b7   : > { %1172 = vst [vmem:[#allocation1 + $0x6] ss:$9 sm:$0xff] %v6146_v10 }
 0x1b8   : > { %1173 = vst [vmem:[#allocation1 + $0x7] ss:$9 sm:$0xff] %v9871_v16  ;;  %v9875_v16 = vld [vmem:[#allocation35_spill] sm:$0xff] }
 0x1bf   : > { %v6390_v51 = vld [vmem:[#allocation1] sm:$0xff] }
 0x1c0   : > { %1175 = vst [vmem:[#allocation1] ss:$9 sm:$0xff] %v6170_v50  ;;  %v9876_v50 = vld [vmem:[#allocation36_spill] sm:$0xff] }
 0x1c1   : > { %1176 = vst [vmem:[#allocation1 + $0x1] ss:$9 sm:$0xff] %v6173_v47  ;;  %v9877_v47 = vld [vmem:[#allocation37_spill] sm:$0xff] }
 0x1c2   : > { %1177 = vst [vmem:[#allocation1 + $0x2] ss:$9 sm:$0xff] %v6177_v12  ;;  %v9878_v12 = vld [vmem:[#allocation38_spill] sm:$0xff] }
 0x1c3   : > { %1178 = vst [vmem:[#allocation1 + $0x3] ss:$9 sm:$0xff] %v6183_v49  ;;  %v9879_v49 = vld [vmem:[#allocation39_spill] sm:$0xff] }
 0x1c4   : > { %1179 = vst [vmem:[#allocation1 + $0x4] ss:$9 sm:$0xff] %v9872_v38  ;;  %v9880_v38 = vld [vmem:[#allocation40_spill] sm:$0xff] }
 0x1c5   : > { %1180 = vst [vmem:[#allocation1 + $0x5] ss:$9 sm:$0xff] %v9873_v48  ;;  %v9881_v48 = vld [vmem:[#allocation42_spill] sm:$0xff] }
 0x1c6   : > { %1181 = vst [vmem:[#allocation1 + $0x6] ss:$9 sm:$0xff] %v9874_v61 }
 0x1c7   : > { %1182 = vst [vmem:[#allocation1 + $0x7] ss:$9 sm:$0xff] %v6197_v5  ;;  %v9882_v5 = vld [vmem:[#allocation43_spill] sm:$0xff] }
 0x1ce   : > { %v6400_v10 = vld [vmem:[#allocation1] sm:$0xff] }
 0x1cf   : > { %1184 = vst [vmem:[#allocation1] ss:$9 sm:$0xff] %v6229_v52  ;;  %v9884_v52 = vld [vmem:[#allocation45_spill] sm:$0xff] }
 0x1d0   : > { %1185 = vst [vmem:[#allocation1 + $0x1] ss:$9 sm:$0xff] %v9875_v16  ;;  %v9885_v16 = vld [vmem:[#allocation46_spill] sm:$0xff] }
 0x1d1   : > { %1186 = vst [vmem:[#allocation1 + $0x2] ss:$9 sm:$0xff] %v9876_v50  ;;  %v9886_v50 = vld [vmem:[#allocation47_spill] sm:$0xff] }
 0x1d2   : > { %1187 = vst [vmem:[#allocation1 + $0x3] ss:$9 sm:$0xff] %v9877_v47 }
 0x1d3   : > { %1188 = vst [vmem:[#allocation1 + $0x4] ss:$9 sm:$0xff] %v9878_v12  ;;  %v9887_v12 = vld [vmem:[#allocation49_spill] sm:$0xff] }
 0x1d4   : > { %1189 = vst [vmem:[#allocation1 + $0x5] ss:$9 sm:$0xff] %v9879_v49 }
 0x1d5   : > { %1190 = vst [vmem:[#allocation1 + $0x6] ss:$9 sm:$0xff] %v9880_v38  ;;  %v9888_v38 = vld [vmem:[#allocation50_spill] sm:$0xff] }
 0x1d6   : > { %1191 = vst [vmem:[#allocation1 + $0x7] ss:$9 sm:$0xff] %v9881_v48  ;;  %v5277_v48 = vld [vmem:[%s9637_s1 + $0x14] sm:$0xf] }
 0x1d7   : > { %v1219_v49 = vunpack.c.l.b16 %v5277_v48  ;;  %v9891_v48 = vld [vmem:[#allocation53_spill] sm:$0xff] }
 0x1dd   : > { %v6410_v61 = vld [vmem:[#allocation1] sm:$0xff] }
 0x1de   : > { %1193 = vst [vmem:[#allocation1] ss:$9 sm:$0xff] %v9882_v5  ;;  %v1221_v5 = vpack.c.b16 %v1219_v49, %v1219_v49  ;;  %v9892_v49 = vld [vmem:[#allocation54_spill] sm:$0xff] }
 0x1df   : > { %1194 = vst [vmem:[#allocation1 + $0x1] ss:$9 sm:$0xff] %v9883_v25 }
 0x1e0   : > { %1195 = vst [vmem:[#allocation1 + $0x2] ss:$9 sm:$0xff] %v9884_v52  ;;  %v1248_v25 = vsel %vm887_vm0, %v1221_v5, 0 }
 0x1e1   : > { %1196 = vst [vmem:[#allocation1 + $0x3] ss:$9 sm:$0xff] %v9885_v16  ;;  %1256 = vmatpush.bf16.msrb.mxu1 %v1248_v25  ;;  %v9914_v25 = vld [vmem:[#allocation24_spill] sm:$0xff] }
 0x1e2   : > { %1197 = vst [vmem:[#allocation1 + $0x4] ss:$9 sm:$0xff] %v9886_v50  ;;  %v5409_v50 = vld [vmem:[%s9637_s1 + $0xc] sm:$0xff] }
 0x1e3   : > { %1198 = vst [vmem:[#allocation1 + $0x5] ss:$9 sm:$0xff] %v6257_v21  ;;  %v9890_v21 = vld [vmem:[#allocation52_spill] sm:$0xff] }
 0x1e4   : > { %1199 = vst [vmem:[#allocation1 + $0x6] ss:$9 sm:$0xff] %v9887_v12  ;;  %v9889_v12 = vld [vmem:[#allocation51_spill] sm:$0xff] }
 0x1e5   : > { %1200 = vst [vmem:[#allocation1 + $0x7] ss:$9 sm:$0xff] %v9888_v38  ;;  %1257 = vmatpush.bf16.msrb.mxu1 %v5409_v50 }
 0x1e8   : > { %5282 = vmatmul.msk.bf16.vlgmr.msrb.gmra.mxu1 %vm862_vm3, %v6330_v42 }
 0x1ec   : > { %v6424_v52 = vld [vmem:[#allocation1] sm:$0xff] }
 0x1ed   : > { %1202 = vst [vmem:[#allocation1] ss:$9 sm:$0xff] %v6305_v32 }
 0x1ee   : > { %1203 = vst [vmem:[#allocation1 + $0x1] ss:$9 sm:$0xff] %v6276_v63 }
 0x1ef   : > { %1204 = vst [vmem:[#allocation1 + $0x2] ss:$9 sm:$0xff] %v9889_v12 }
 0x1f0   : > { %1205 = vst [vmem:[#allocation1 + $0x3] ss:$9 sm:$0xff] %v9890_v21 }
 0x1f1   : > { %1206 = vst [vmem:[#allocation1 + $0x4] ss:$9 sm:$0xff] %v9891_v48 }
 0x1f2   : > { %1207 = vst [vmem:[#allocation1 + $0x5] ss:$9 sm:$0xff] %v9892_v49 }
 0x1f3   : > { %1208 = vst [vmem:[#allocation1 + $0x6] ss:$9 sm:$0xff] %v6297_v17 }
 0x1f4   : > { %1209 = vst [vmem:[#allocation1 + $0x7] ss:$9 sm:$0xff] %v6301_v22 }
 0x1f8   : > { %5283 = vmatmul.msk.bf16.gmra.mxu1 %vm862_vm3, %v6340_v30 }
 0x1fb   : > { %v6439_v5 = vld [vmem:[#allocation1] sm:$0xff] }
 0x1fc   : > { %1211 = vst [vmem:[#allocation1] ss:$9 sm:$0xff] %v6313_v0 }
 0x1fd   : > { %1212 = vst [vmem:[#allocation1 + $0x1] ss:$9 sm:$0xff] %v6316_v24 }
 0x204   : > { %v6445_v50 = vld [vmem:[#allocation1] sm:$0xff] }
 0x205   : > { %1829 = vst [vmem:[#allocation1] ss:$9 sm:$0xff] %v5914_v26  ;;  %v6463_v26 = vpop.f32.mrf.mxu0 }
 0x206   : > { %1831 = vst [vmem:[#allocation1 + $0x1] ss:$9 sm:$0xff] %v5917_v31 }
 0x207   : > { %1833 = vst [vmem:[#allocation1 + $0x2] ss:$9 sm:$0xff] %v5920_v33 }
 0x208   : > { %1835 = vst [vmem:[#allocation1 + $0x3] ss:$9 sm:$0xff] %v5923_v35  ;;  %5284 = vmatmul.msk.bf16.gmra.mxu1 %vm862_vm3, %v6350_v3 }
 0x209   : > { %1837 = vst [vmem:[#allocation1 + $0x4] ss:$9 sm:$0xff] %v5927_v37  ;;  %v5320_v37 = vld [vmem:[%s9637_s1 + $0x20] sm:$0xf] }
 0x20a   : > { %1839 = vst [vmem:[#allocation1 + $0x5] ss:$9 sm:$0xff] %v5930_v40  ;;  %v1943_v40 = vunpack.c.l.b16 %v5320_v37 }
 0x20b   : > { %1841 = vst [vmem:[#allocation1 + $0x6] ss:$9 sm:$0xff] %v5934_v41  ;;  %v6484_v41 = vpop.f32.mrf.mxu1 }
 0x20c   : > { %1843 = vst [vmem:[#allocation1 + $0x7] ss:$9 sm:$0xff] %v5938_v44  ;;  %v1945_v44 = vpack.c.b16 %v1943_v40, %v1943_v40  ;;  %v9920_v40 = vld [vmem:[#allocation28_spill] sm:$0xff] }
 0x20d   : > { %v6470_v33 = vpop.f32.mrf.mxu0  ;;  %9893 = vst [vmem:[#allocation18_spill] sm:$0xff] %v6484_v41  ;;  %v6937_v41 = vstv %s5337_s13  ;;  %s5646_s13 = smov 64  }
 0x20e   : > { %vm2446_vm11 = vcmp.ge.s32.totalorder %v6937_v41, 0  ;;  %vm2456_vm12 = vcmp.lt.s32.totalorder %v6937_v41, 16 }
 0x20f   : > { %vm7036_vm13 = vmand %vm2446_vm11, %vm2456_vm12  ;;  %vm2944_vm12 = vsmask.f32 256 }
 0x213   : > { %v1844_v42 = vld [vmem:[#allocation1] sm:$0xff] }
 0x214   : > { %1845 = vst [vmem:[#allocation1] ss:$9 sm:$0xff] %v5952_v54  ;;  %v1972_v54 = vsel %vm887_vm0, %v1945_v44, 0  ;;  %v9921_v44 = vld [vmem:[#allocation29_spill] sm:$0xff] }
 0x215   : > { %1846 = vst [vmem:[#allocation1 + $0x1] ss:$9 sm:$0xff] %v5949_v53  ;;  %v6479_v35 = vpop.f32.mrf.mxu0  ;;  %1980 = vmatpush.bf16.msrb.mxu2 %v1972_v54  ;;  %v9922_v54 = vld [vmem:[#allocation30_spill] sm:$0xff] }
 0x216   : > { %1847 = vst [vmem:[#allocation1 + $0x2] ss:$9 sm:$0xff] %v5955_v56  ;;  %v5410_v56 = vld [vmem:[%s9637_s1 + $0x18] sm:$0xff] }
 0x217   : > { %1848 = vst [vmem:[#allocation1 + $0x3] ss:$9 sm:$0xff] %v5960_v57  ;;  %v6497_v57 = vpop.f32.mrf.mxu1 }
 0x218   : > { %1849 = vst [vmem:[#allocation1 + $0x4] ss:$9 sm:$0xff] %v5964_v20  ;;  %5285 = vmatmul.msk.bf16.gmra.mxu1 %vm862_vm3, %v6360_v14 }
 0x219   : > { %1850 = vst [vmem:[#allocation1 + $0x5] ss:$9 sm:$0xff] %v5968_v58  ;;  %1981 = vmatpush.bf16.msrb.mxu2 %v5410_v56  ;;  %v9923_v56 = vld [vmem:[#allocation31_spill] sm:$0xff] }
 0x21a   : > { %1851 = vst [vmem:[#allocation1 + $0x6] ss:$9 sm:$0xff] %v5972_v59 }
 0x21b   : > { %1852 = vst [vmem:[#allocation1 + $0x7] ss:$9 sm:$0xff] %v5976_v60 }
 0x21c   : > { %9894 = vst [vmem:[#allocation16_spill] sm:$0xff] %v6497_v57  ;;  %5325 = vmatmul.msk.bf16.vlgmr.msrb.gmra.mxu2 %vm862_vm3, %v1844_v42  ;;  %v9917_v42 = vld [vmem:[#allocation23_spill] sm:$0xff] }
 0x21d   : > { %v6500_v20 = vpop.f32.mrf.mxu0 }
 0x21f   : > { %v6505_v58 = vpop.f32.mrf.mxu1 }
 0x220   : > { %9895 = vst [vmem:[#allocation20_spill] sm:$0xff] %v6505_v58 }
 0x222   : > { %v1853_v31 = vld [vmem:[#allocation1] sm:$0xff] }
 0x223   : > { %1854 = vst [vmem:[#allocation1] ss:$9 sm:$0xff] %v5987_v2  ;;  %v9897_v2 = vld [vmem:[#allocation10_spill] sm:$0xff] }
 0x224   : > { %1855 = vst [vmem:[#allocation1 + $0x1] ss:$9 sm:$0xff] %v6015_v15 }
 0x225   : > { %1856 = vst [vmem:[#allocation1 + $0x2] ss:$9 sm:$0xff] %v5984_v1  ;;  %v6508_v60 = vpop.f32.mrf.mxu0  ;;  %v9896_v1 = vld [vmem:[#allocation6_spill] sm:$0xff] }
 0x226   : > { %1857 = vst [vmem:[#allocation1 + $0x3] ss:$9 sm:$0xff] %v6007_v11  ;;  %v9902_v11 = vld [vmem:[#allocation8_spill] sm:$0xff] }
 0x227   : > { %1858 = vst [vmem:[#allocation1 + $0x4] ss:$9 sm:$0xff] %v5990_v6  ;;  %v9898_v6 = vld [vmem:[#allocation5_spill] sm:$0xff] }
 0x228   : > { %1859 = vst [vmem:[#allocation1 + $0x5] ss:$9 sm:$0xff] %v5994_v8  ;;  %5286 = vmatmul.msk.bf16.gmra.mxu1 %vm862_vm3, %v6370_v34  ;;  %v9899_v8 = vld [vmem:[#allocation9_spill] sm:$0xff]  ;;  %v9913_v34 = vld [vmem:[#allocation22_spill] sm:$0xff] }
 0x229   : > { %1860 = vst [vmem:[#allocation1 + $0x6] ss:$9 sm:$0xff] %v5997_v9  ;;  %v6517_v9 = vpop.f32.mrf.mxu1 }
 0x22a   : > { %1861 = vst [vmem:[#allocation1 + $0x7] ss:$9 sm:$0xff] %v6002_v18  ;;  %v9901_v18 = vld [vmem:[#allocation7_spill] sm:$0xff] }
 0x22b   : > { %9900 = vst [vmem:[#allocation21_spill] sm:$0xff] %v6517_v9 }
 0x22c   : > { %5326 = vmatmul.msk.bf16.gmra.mxu2 %vm862_vm3, %v1853_v31  ;;  %v9918_v31 = vld [vmem:[#allocation25_spill] sm:$0xff] }
 0x22d   : > { %v6522_v15 = vpop.f32.mrf.mxu0 }
 0x231   : > { %v1862_v53 = vld [vmem:[#allocation1] sm:$0xff] }
 0x232   : > { %1863 = vst [vmem:[#allocation1] ss:$9 sm:$0xff] %v6027_v27  ;;  %v9904_v27 = vld [vmem:[#allocation13_spill] sm:$0xff] }
 0x233   : > { %1864 = vst [vmem:[#allocation1 + $0x1] ss:$9 sm:$0xff] %v6024_v23 }
 0x234   : > { %1865 = vst [vmem:[#allocation1 + $0x2] ss:$9 sm:$0xff] %v6050_v46 }
 0x235   : > { %1866 = vst [vmem:[#allocation1 + $0x3] ss:$9 sm:$0xff] %v6021_v19  ;;  %v6524_v19 = vpop.f32.mrf.mxu1  ;;  %v6534_v46 = vpop.f32.mrf.mxu0 }
 0x236   : > { %1867 = vst [vmem:[#allocation1 + $0x4] ss:$9 sm:$0xff] %v6046_v45  ;;  %v9908_v45 = vld [vmem:[#allocation12_spill] sm:$0xff] }
 0x237   : > { %1868 = vst [vmem:[#allocation1 + $0x5] ss:$9 sm:$0xff] %v6031_v29  ;;  %v9905_v29 = vld [vmem:[#allocation14_spill] sm:$0xff] }
 0x238   : > { %1869 = vst [vmem:[#allocation1 + $0x6] ss:$9 sm:$0xff] %v6035_v28  ;;  %5287 = vmatmul.msk.bf16.gmra.mxu1 %vm862_vm3, %v6380_v4  ;;  %v9906_v28 = vld [vmem:[#allocation15_spill] sm:$0xff]  ;;  %v9910_v4 = vld [vmem:[#allocation17_spill] sm:$0xff] }
 0x239   : > { %1870 = vst [vmem:[#allocation1 + $0x7] ss:$9 sm:$0xff] %v6040_v43  ;;  %v9907_v43 = vld [vmem:[#allocation11_spill] sm:$0xff] }
 0x23a   : > { %9903 = vst [vmem:[#allocation37_spill] sm:$0xff] %v6524_v19 }
 0x23c   : > { %5327 = vmatmul.msk.bf16.gmra.mxu2 %vm862_vm3, %v1862_v53 }
 0x23d   : > { %v6548_v14 = vpop.f32.mrf.mxu0 }
 0x240   : > { %v1871_v59 = vld [vmem:[#allocation1] sm:$0xff] }
 0x241   : > { %1872 = vst [vmem:[#allocation1] ss:$9 sm:$0xff] %v6064_v62  ;;  %v6536_v62 = vpop.f32.mrf.mxu2 }
 0x242   : > { %1873 = vst [vmem:[#allocation1 + $0x1] ss:$9 sm:$0xff] %v6070_v7  ;;  %v6539_v7 = vpop.f32.mrf.mxu1 }
 0x243   : > { %1874 = vst [vmem:[#allocation1 + $0x2] ss:$9 sm:$0xff] %v9896_v1  ;;  %v9925_v1 = vld [vmem:[#allocation27_spill] sm:$0xff] }
 0x244   : > { %1875 = vst [vmem:[#allocation1 + $0x3] ss:$9 sm:$0xff] %v9897_v2 }
 0x245   : > { %1876 = vst [vmem:[#allocation1 + $0x4] ss:$9 sm:$0xff] %v9898_v6  ;;  %v6561_v37 = vpop.f32.mrf.mxu0 }
 0x246   : > { %1877 = vst [vmem:[#allocation1 + $0x5] ss:$9 sm:$0xff] %v9899_v8  ;;  %v9926_v8 = vld [vmem:[#allocation33_spill] sm:$0xff] }
 0x247   : > { %1878 = vst [vmem:[#allocation1 + $0x6] ss:$9 sm:$0xff] %v9901_v18  ;;  %v9927_v18 = vld [vmem:[#allocation34_spill] sm:$0xff] }
 0x248   : > { %1879 = vst [vmem:[#allocation1 + $0x7] ss:$9 sm:$0xff] %v9902_v11  ;;  %5288 = vmatmul.msk.bf16.gmra.mxu1 %vm862_vm3, %v6390_v51 }
 0x249   : > { %9909 = vst [vmem:[#allocation46_spill] sm:$0xff] %v6536_v62  ;;  %v957_v51 = vpop.f32.mrf.mxu2 }
 0x24a   : > { %9911 = vst [vmem:[#allocation50_spill] sm:$0xff] %v6539_v7  ;;  %v6545_v3 = vpop.f32.mrf.mxu1  ;;  %v9931_v51 = vld [vmem:[#allocation41_spill] sm:$0xff]  ;;  %v7011_v7 = vadd.s32 1, %v6937_v41 }
 0x24b   : > { %9912 = vst [vmem:[#allocation51_spill] sm:$0xff] %v6545_v3 }
 0x24c   : > { %5328 = vmatmul.msk.bf16.gmra.mxu2 %vm862_vm3, %v1871_v59  ;;  %v9924_v59 = vld [vmem:[#allocation32_spill] sm:$0xff]  ;;  %vm2447_vm14 = vcmp.ge.s32.totalorder %v7011_v7, 0  ;;  %vm2457_vm15 = vcmp.lt.s32.totalorder %v7011_v7, 16 }
 0x24d   : > { %v6578_v2 = vpop.f32.mrf.mxu0  ;;  %vm7132_vm5 = vmand %vm2447_vm14, %vm2457_vm15 }
 0x24e   : > { %vm7443_vm14 = vmand %vm1408_vm4, %vm2944_vm12 }
 0x24f   : > { %v1880_v23 = vld [vmem:[#allocation1] sm:$0xff] }
 0x250   : > { %1881 = vst [vmem:[#allocation1] ss:$9 sm:$0xff] %v9904_v27 }
 0x251   : > { %1882 = vst [vmem:[#allocation1 + $0x1] ss:$9 sm:$0xff] %v9905_v29 }
 0x252   : > { %1883 = vst [vmem:[#allocation1 + $0x2] ss:$9 sm:$0xff] %v9906_v28  ;;  %v9928_v28 = vmov 0 }
 0x253   : > { %1884 = vst [vmem:[#allocation1 + $0x3] ss:$9 sm:$0xff] %v9907_v43  ;;  %v9929_v28 = vsel %vm6589_vm10, 4294967295, %v9928_v28 }
 0x254   : > { %1885 = vst [vmem:[#allocation1 + $0x4] ss:$9 sm:$0xff] %v9861_v39  ;;  %v9916_v39 = vld [vmem:[#allocation26_spill] sm:$0xff] }
 0x255   : > { %1886 = vst [vmem:[#allocation1 + $0x5] ss:$9 sm:$0xff] %v9908_v45 }
 0x256   : > { %1887 = vst [vmem:[#allocation1 + $0x6] ss:$9 sm:$0xff] %v9910_v4 }
 0x257   : > { %1888 = vst [vmem:[#allocation1 + $0x7] ss:$9 sm:$0xff] %v9864_v13  ;;  %v9915_v13 = vld [vmem:[#allocation19_spill] sm:$0xff] }
 0x258   : > { %5289 = vmatmul.msk.bf16.gmra.mxu1 %vm862_vm3, %v6400_v10  ;;  %9930 = vst [vmem:[#allocation53_spill] sm:$0xff] %v9929_v28 }
 0x25c   : > { %5329 = vmatmul.msk.bf16.gmra.mxu2 %vm862_vm3, %v1880_v23 }
 0x25e   : > { %v6543_v30 = vld [vmem:[#allocation1] sm:$0xff] }
 0x25f   : > { %1890 = vst [vmem:[#allocation1] ss:$9 sm:$0xff] %v9865_v36  ;;  %v6559_v36 = vpop.f32.mrf.mxu1 }
 0x260   : > { %1891 = vst [vmem:[#allocation1 + $0x1] ss:$9 sm:$0xff] %v9866_v55 }
 0x261   : > { %1892 = vst [vmem:[#allocation1 + $0x2] ss:$9 sm:$0xff] %v9913_v34  ;;  %v6605_v34 = vpop.f32.mrf.mxu0 }
 0x262   : > { %1893 = vst [vmem:[#allocation1 + $0x3] ss:$9 sm:$0xff] %v9914_v25  ;;  %v9932_v25 = vld [vmem:[#allocation35_spill] sm:$0xff] }
 0x263   : > { %1894 = vst [vmem:[#allocation1 + $0x4] ss:$9 sm:$0xff] %v9915_v13 }
 0x264   : > { %1895 = vst [vmem:[#allocation1 + $0x5] ss:$9 sm:$0xff] %v9916_v39  ;;  %v9933_v39 = vld [vmem:[#allocation36_spill] sm:$0xff] }
 0x265   : > { %1896 = vst [vmem:[#allocation1 + $0x6] ss:$9 sm:$0xff] %v9917_v42 }
 0x266   : > { %1897 = vst [vmem:[#allocation1 + $0x7] ss:$9 sm:$0xff] %v9918_v31 }
 0x267   : > { %9919 = vst [vmem:[#allocation52_spill] sm:$0xff] %v6559_v36  ;;  %v6567_v10 = vpop.f32.mrf.mxu1 }
 0x268   : > { %v1343_v53 = vrot.slane %v6567_v10, 6  ;;  %5290 = vmatmul.msk.bf16.gmra.mxu1 %vm862_vm3, %v6410_v61 }
 0x26a   : > { %v6580_v6 = vrot.slane %v1343_v53, 7  ;;  %v9935_v53 = vld [vmem:[#allocation39_spill] sm:$0xff] }
 0x26c   : > { %v1425_v61 = vrot.slane %v6580_v6, 2  ;;  %5330 = vmatmul.msk.bf16.gmra.mxu2 %vm862_vm3, %v6543_v30 }
 0x26d   : > { %v6564_v55 = vld [vmem:[#allocation1] sm:$0xff] }
 0x26e   : > { %1899 = vst [vmem:[#allocation1] ss:$9 sm:$0xff] %v9920_v40  ;;  %v9934_v40 = vld [vmem:[#allocation38_spill] sm:$0xff] }
 0x26f   : > { %1900 = vst [vmem:[#allocation1 + $0x1] ss:$9 sm:$0xff] %v9921_v44  ;;  %v6584_v11 = vpop.f32.mrf.mxu1 }
 0x270   : > { %1901 = vst [vmem:[#allocation1 + $0x2] ss:$9 sm:$0xff] %v9922_v54  ;;  %v1346_v27 = vrot.slane %v6584_v11, 6  ;;  %v9727_v29 = vrot.slane %v6584_v11, 7  ;;  %v9936_v54 = vld [vmem:[#allocation40_spill] sm:$0xff] }
 0x271   : > { %1902 = vst [vmem:[#allocation1 + $0x3] ss:$9 sm:$0xff] %v9923_v56 }
 0x272   : > { %1903 = vst [vmem:[#allocation1 + $0x4] ss:$9 sm:$0xff] %v9924_v59  ;;  %v6597_v43 = vsel %vm6589_vm10, %v1425_v61, %v9727_v29  ;;  %v6600_v45 = vrot.slane %v1346_v27, 7  ;;  %v9937_v59 = vld [vmem:[#allocation42_spill] sm:$0xff] }
 0x273   : > { %1904 = vst [vmem:[#allocation1 + $0x5] ss:$9 sm:$0xff] %v9925_v1 }
 0x274   : > { %1905 = vst [vmem:[#allocation1 + $0x6] ss:$9 sm:$0xff] %v9926_v8  ;;  %v1437_v42 = vrot.slane %v6600_v45, 2 }
 0x275   : > { %1906 = vst [vmem:[#allocation1 + $0x7] ss:$9 sm:$0xff] %v9927_v18 }
 0x277   : > { %v6608_v13 = vpop.f32.mrf.mxu1 }
 0x278   : > { %v1349_v31 = vrot.slane %v6608_v13, 6  ;;  %v1438_v23 = vrot.slane %v6608_v13, 7  ;;  %5291 = vmatmul.msk.bf16.gmra.mxu1 %vm862_vm3, %v6424_v52  ;;  %v1348_v9 = vrot.slane %v6608_v13, 4 }
 0x27a   : > { %v6620_v44 = vsel %vm6589_vm10, %v1437_v42, %v1438_v23  ;;  %v6624_v56 = vrot.slane %v1349_v31, 7  ;;  %v9941_v23 = vld [vmem:[#allocation47_spill] sm:$0xff]  ;;  %v9942_v31 = vld [vmem:[#allocation48_spill] sm:$0xff] }
 0x27c   : > { %v6602_v4 = vld [vmem:[#allocation1] sm:$0xff]  ;;  %v1447_v8 = vrot.slane %v6624_v56, 2  ;;  %5331 = vmatmul.msk.bf16.gmra.mxu2 %vm862_vm3, %v6564_v55 }
 0x27d   : > { %1908 = vst [vmem:[#allocation1] ss:$9 sm:$0xff] %v9931_v51  ;;  %v9938_v51 = vld [vmem:[#allocation43_spill] sm:$0xff] }
 0x27e   : > { %1909 = vst [vmem:[#allocation1 + $0x1] ss:$9 sm:$0xff] %v9932_v25 }
 0x27f   : > { %1910 = vst [vmem:[#allocation1 + $0x2] ss:$9 sm:$0xff] %v9933_v39  ;;  %v6627_v1 = vpop.f32.mrf.mxu1  ;;  %v9939_v39 = vld [vmem:[#allocation44_spill] sm:$0xff] }
 0x280   : > { %1911 = vst [vmem:[#allocation1 + $0x3] ss:$9 sm:$0xff] %v9877_v47  ;;  %v6629_v47 = vpop.f32.mrf.mxu0  ;;  %v9725_v52 = vrot.slane %v6627_v1, 7  ;;  %v1352_v18 = vrot.slane %v6627_v1, 6 }
 0x281   : > { %1912 = vst [vmem:[#allocation1 + $0x4] ss:$9 sm:$0xff] %v9934_v40  ;;  %v9940_v40 = vld [vmem:[#allocation45_spill] sm:$0xff] }
 0x282   : > { %1913 = vst [vmem:[#allocation1 + $0x5] ss:$9 sm:$0xff] %v9935_v53  ;;  %v6638_v61 = vsel %vm6589_vm10, %v1447_v8, %v9725_v52  ;;  %v6645_v25 = vrot.slane %v1352_v18, 7  ;;  %v1344_v18 = vrot.slane %v6584_v11, 2 }
 0x283   : > { %1914 = vst [vmem:[#allocation1 + $0x6] ss:$9 sm:$0xff] %v9936_v54 }
 0x284   : > { %1915 = vst [vmem:[#allocation1 + $0x7] ss:$9 sm:$0xff] %v9937_v59  ;;  %v1459_v54 = vrot.slane %v6645_v25, 2 }
 0x287   : > { %v6655_v59 = vpop.f32.mrf.mxu1 }
 0x288   : > { %v1355_v53 = vrot.slane %v6655_v59, 6  ;;  %v6673_v52 = vpop.f32.mrf.mxu0  ;;  %5292 = vmatmul.msk.bf16.gmra.mxu1 %vm862_vm3, %v6439_v5  ;;  %v1341_v5 = vrot.slane %v6567_v10, 2 }
 0x28a   : > { %v1417_v29 = vrot.slane %v1341_v5, 7 }
 0x28b   : > { %v6642_v27 = vld [vmem:[#allocation1] sm:$0xff] }
 0x28c   : > { %1917 = vst [vmem:[#allocation1] ss:$9 sm:$0xff] %v9938_v51  ;;  %v1419_v5 = vrot.slane %v1417_v29, 2  ;;  %5332 = vmatmul.msk.bf16.gmra.mxu2 %vm862_vm3, %v6602_v4 }
 0x28d   : > { %1918 = vst [vmem:[#allocation1 + $0x1] ss:$9 sm:$0xff] %v9939_v39 }
 0x28e   : > { %1919 = vst [vmem:[#allocation1 + $0x2] ss:$9 sm:$0xff] %v9940_v40  ;;  %v9726_v40 = vrot.slane %v6655_v59, 7 }
 0x28f   : > { %1920 = vst [vmem:[#allocation1 + $0x3] ss:$9 sm:$0xff] %v9885_v16  ;;  %v1345_v16 = vrot.slane %v6584_v11, 4 }
 0x290   : > { %1921 = vst [vmem:[#allocation1 + $0x4] ss:$9 sm:$0xff] %v9941_v23  ;;  %v9943_v23 = vld [vmem:[#allocation49_spill] sm:$0xff] }
 0x291   : > { %1922 = vst [vmem:[#allocation1 + $0x5] ss:$9 sm:$0xff] %v9942_v31  ;;  %v6684_v31 = vsel %vm6589_vm10, %v1459_v54, %v9726_v40  ;;  %v6695_v54 = vrot.slane %v1355_v53, 7  ;;  %v6705_v40 = vpop.f32.mrf.mxu1  ;;  %v6733_v53 = vpop.f32.mrf.mxu0 }
 0x292   : > { %1923 = vst [vmem:[#allocation1 + $0x6] ss:$9 sm:$0xff] %v9943_v23  ;;  %v1358_v8 = vrot.slane %v6705_v40, 6  ;;  %v9944_v23 = vrot.slane %v6705_v40, 7 }
 0x293   : > { %1924 = vst [vmem:[#allocation1 + $0x7] ss:$9 sm:$0xff] %v9888_v38  ;;  %v1342_v38 = vrot.slane %v6567_v10, 4  ;;  %v1469_v30 = vrot.slane %v6695_v54, 2 }
 0x294   : > { %9945 = vst [vmem:[#allocation54_spill] sm:$0xff] %v6733_v53 }
 0x295   : > { %v6729_v51 = vsel %vm6589_vm10, %v1469_v30, %v9944_v23  ;;  %v1420_v42 = vrot.slane %v1342_v38, 7  ;;  %v6741_v23 = vrot.slane %v1358_v8, 7  ;;  %v5294_v8 = vrot.slane %v6567_v10, 9 }
 0x296   : > { %v1432_v38 = vrot.slane %v1345_v16, 7  ;;  %v1351_v16 = vrot.slane %v6627_v1, 4 }
 0x297   : > { %v1481_v62 = vrot.slane %v6741_v23, 2  ;;  %v1418_v10 = vsel %vm6589_vm10, %v5294_v8, %v1417_v29 }
 0x298   : > { %5293 = vmatmul.msk.bf16.gmra.mxu1 %vm862_vm3, %v6445_v50  ;;  %v1434_v8 = vrot.slane %v1432_v38, 2  ;;  %v6788_v29 = vadd.f32 %v1418_v10, %v6463_v26  ;;  %v1454_v3 = vrot.slane %v1351_v16, 7  ;;  %v9950_v10 = vrot.slane %v6463_v26, 6 }
 0x299   : > { %v6752_v30 = vpop.f32.mrf.mxu1 }
 0x29a   : > { %v6718_v39 = vld [vmem:[#allocation1] sm:$0xff]  ;;  %v9732_v19 = vrot.slane %v6752_v30, 7 }
 0x29b   : > { %1927 = vst [vmem:[#allocation1 + $0x1] ss:$9 sm:$0xff] %v6276_v63  ;;  %v1429_v63 = vrot.slane %v1344_v18, 7  ;;  %v1350_v18 = vrot.slane %v6627_v1, 2 }
 0x29c   : > { %1926 = vst [vmem:[#allocation1] ss:$9 sm:$0xff] %v6305_v32  ;;  %v9946_v32 = vrot.slane %v6584_v11, 7  ;;  %5333 = vmatmul.msk.bf16.gmra.mxu2 %vm862_vm3, %v6642_v27 }
 0x29d   : > { %1928 = vst [vmem:[#allocation1 + $0x2] ss:$9 sm:$0xff] %v9889_v12  ;;  %v1422_v12 = vrot.slane %v1420_v42, 2  ;;  %v1431_v50 = vrot.slane %v1429_v63, 2 }
 0x29e   : > { %1929 = vst [vmem:[#allocation1 + $0x3] ss:$9 sm:$0xff] %v9890_v21  ;;  %v1428_v55 = vrot.slane %v9946_v32, 2  ;;  %v9947_v32 = vrot.slane %v6463_v26, 2 }
 0x29f   : > { %1930 = vst [vmem:[#allocation1 + $0x4] ss:$9 sm:$0xff] %v9891_v48  ;;  %v1442_v48 = vrot.slane %v1348_v9, 7  ;;  %v9948_v9 = vrot.slane %v6627_v1, 7  ;;  %v1433_v1 = vsel %vm6589_vm10, %v1431_v50, %v1432_v38 }
 0x2a0   : > { %1931 = vst [vmem:[#allocation1 + $0x5] ss:$9 sm:$0xff] %v9892_v49  ;;  %v1421_v49 = vsel %vm6589_vm10, %v1419_v5, %v1420_v42  ;;  %v1430_v5 = vsel %vm6589_vm10, %v1428_v55, %v1429_v63  ;;  %v9949_v55 = vrot.slane %v6463_v26, 4 }
 0x2a1   : > { %1932 = vst [vmem:[#allocation1 + $0x6] ss:$9 sm:$0xff] %v6297_v17  ;;  %v6778_v17 = vsel %vm6589_vm10, %v1481_v62, %v9732_v19  ;;  %v6792_v62 = vadd.f32 %v1421_v49, %v9947_v32  ;;  %v1444_v11 = vrot.slane %v1442_v48, 2  ;;  %v1450_v21 = vrot.slane %v9948_v9, 2  ;;  %v6798_v42 = vpop.f32.mrf.mxu1 }
 0x2a2   : > { %1933 = vst [vmem:[#allocation1 + $0x7] ss:$9 sm:$0xff] %v6301_v22  ;;  %v1424_v22 = vsel %vm6589_vm10, %v1422_v12, %v6580_v6  ;;  %v1451_v19 = vrot.slane %v1350_v18, 7  ;;  %v5296_v6 = vrot.slane %v6608_v13, 11  ;;  %v1356_v12 = vrot.slane %v6705_v40, 2 }
 0x2a3   : > { %v6802_v63 = vadd.f32 %v1424_v22, %v9949_v55  ;;  %v6807_v49 = vadd.f32 %v6597_v43, %v9950_v10  ;;  %v1436_v13 = vsel %vm6589_vm10, %v1434_v8, %v6600_v45  ;;  %v1357_v18 = vrot.slane %v6705_v40, 4 }
 0x2a4   : > { %v1492_v16 = vrot.slane %v6798_v42, 7  ;;  %v6817_v32 = vadd.f32 %v1430_v5, %v6470_v33  ;;  %v5302_v9 = vrot.slane %v6752_v30, 15  ;;  %v1364_v26 = vrot.slane %v6798_v42, 6 }
 0x2a5   : > { %v1443_v43 = vsel %vm6589_vm10, %v5296_v6, %v1442_v48  ;;  %v1452_v38 = vsel %vm6589_vm10, %v1450_v21, %v1451_v19  ;;  %v1453_v50 = vrot.slane %v1451_v19, 2  ;;  %v1456_v22 = vrot.slane %v1454_v3, 2 }
 0x2a6   : > { %v1446_v45 = vsel %vm6589_vm10, %v1444_v11, %v6624_v56  ;;  %v9951_v5 = vrot.slane %v6470_v33, 2  ;;  %v9952_v10 = vrot.slane %v6470_v33, 4  ;;  %v1473_v48 = vrot.slane %v1356_v12, 7 }
 0x2a7   : > { %v6843_v19 = vsel %vm6589_vm10, %v5302_v9, %v1492_v16  ;;  %v1476_v56 = vrot.slane %v1357_v18, 7  ;;  %v1359_v21 = vrot.slane %v6752_v30, 2  ;;  %v9953_v11 = vrot.slane %v6470_v33, 6 }
 0x2a8   : > { %v6832_v55 = vadd.f32 %v1433_v1, %v9951_v5  ;;  %v6836_v36 = vadd.f32 %v1436_v13, %v9952_v10  ;;  %v9954_v1 = vrot.slane %v6479_v35, 2  ;;  %v6859_v4 = vrot.slane %v1364_v26, 7 }
 0x2a9   : > { %v6828_v8 = vld [vmem:[#allocation1] sm:$0xff]  ;;  %v6849_v6 = vadd.f32 %v6620_v44, %v9953_v11  ;;  %v9955_v13 = vrot.slane %v6479_v35, 4  ;;  %v9956_v33 = vrot.slane %v6479_v35, 6  ;;  %v1455_v9 = vsel %vm6589_vm10, %v1453_v50, %v1454_v3  ;;  %v6882_v11 = vpop.f32.mrf.mxu1 }
 0x2aa   : > { %1935 = vst [vmem:[#allocation1] ss:$9 sm:$0xff] %v6313_v0  ;;  %v6853_v12 = vadd.f32 %v1443_v43, %v9954_v1  ;;  %v6857_v0 = vadd.f32 %v1452_v38, %v6500_v20  ;;  %v9957_v26 = vrot.slane %v6655_v59, 7  ;;  %v1362_v38 = vrot.slane %v6798_v42, 2 }
 0x2ab   : > { %1936 = vst [vmem:[#allocation1 + $0x1] ss:$9 sm:$0xff] %v6316_v24  ;;  %v6863_v18 = vadd.f32 %v1446_v45, %v9955_v13  ;;  %v6868_v44 = vadd.f32 %v6638_v61, %v9956_v33  ;;  %v1458_v24 = vsel %vm6589_vm10, %v1456_v22, %v6645_v25  ;;  %v5297_v45 = vrot.slane %v6655_v59, 9 }
 0x2ac   : > { %v1462_v43 = vrot.slane %v9957_v26, 2  ;;  %v9958_v5 = vrot.slane %v6705_v40, 7  ;;  %v1475_v10 = vrot.slane %v1473_v48, 2  ;;  %v1363_v61 = vrot.slane %v6798_v42, 4  ;;  %5334 = vmatmul.msk.bf16.gmra.mxu2 %vm862_vm3, %v6718_v39 }
 0x2ad   : > { %v5299_v3 = vrot.slane %v6655_v59, 13  ;;  %v1478_v50 = vrot.slane %v1476_v56, 2  ;;  %v1485_v1 = vrot.slane %v1359_v21, 7  ;;  %v1504_v25 = vrot.slane %v6882_v11, 7 }
 0x2ae   : > { %v1472_v35 = vrot.slane %v9958_v5, 2  ;;  %v9959_v22 = vrot.slane %v6500_v20, 2  ;;  %v9960_v33 = vrot.slane %v6500_v20, 4  ;;  %v1503_v26 = vrot.slane %v6859_v4, 2 }
 0x2af   : > { %v9961_v42 = vrot.slane %v6500_v20, 6  ;;  %v1495_v59 = vrot.slane %v1362_v38, 7  ;;  %v1365_v21 = vrot.slane %v6882_v11, 2  ;;  %v1464_v58 = vsel %vm6589_vm10, %v1462_v43, %v5297_v45 }
 0x2b0   : > { %v6889_v13 = vadd.f32 %v1455_v9, %v9959_v22  ;;  %v6893_v40 = vadd.f32 %v1458_v24, %v9960_v33  ;;  %v1468_v9 = vsel %vm6589_vm10, %v5299_v3, %v6695_v54  ;;  %v1498_v22 = vrot.slane %v1363_v61, 7  ;;  %v6919_v54 = vld [vmem:[%s9638_s2] ss:$0 sm:$0xff] }
 0x2b1   : > { %v6899_v5 = vadd.f32 %v6684_v31, %v9961_v42  ;;  %v1474_v24 = vsel %vm6589_vm10, %v1472_v35, %v1473_v48  ;;  %v1477_v20 = vsel %vm6589_vm10, %v1475_v10, %v1476_v56  ;;  %v1505_v31 = vsel %vm6589_vm10, %v1503_v26, %v1504_v25 }
 0x2b2   : > { %v9962_v38 = vrot.slane %v6752_v30, 7  ;;  %v1487_v42 = vrot.slane %v1485_v1, 2  ;;  %v1366_v43 = vrot.slane %v6882_v11, 4  ;;  %v1480_v48 = vsel %vm6589_vm10, %v1478_v50, %v6741_v23  ;;  %v1281_v50 = vpop.f32.mrf.mxu1 }
 0x2b3   : > { %v5300_v56 = vrot.slane %v6752_v30, 11  ;;  %v6926_v45 = vadd.f32 %v1464_v58, %v6508_v60  ;;  %v9963_v35 = vrot.slane %v6508_v60, 4  ;;  %v9964_v61 = vrot.slane %v6508_v60, 6 }
 0x2b4   : > { %v1484_v33 = vrot.slane %v9962_v38, 2  ;;  %v1494_v26 = vrot.slane %v1492_v16, 2  ;;  %v1497_v38 = vrot.slane %v1495_v59, 2  ;;  %v1507_v57 = vrot.slane %v1365_v21, 7 }
 0x2b5   : > { %v6930_v10 = vadd.f32 %v1468_v9, %v9963_v35  ;;  %v6935_v3 = vadd.f32 %v6729_v51, %v9964_v61  ;;  %v1500_v23 = vrot.slane %v1498_v22, 2  ;;  %v6940_v30 = vadd.f32 %v1474_v24, %v6522_v15 }
 0x2b6   : > { %v9965_v58 = vrot.slane %v6522_v15, 2  ;;  %v9966_v9 = vrot.slane %v6522_v15, 4  ;;  %v1510_v51 = vrot.slane %v1366_v43, 7  ;;  %v6951_v16 = vrot.slane %v6919_v54, 2 }
 0x2b7   : > { %v1486_v21 = vsel %vm6589_vm10, %v1484_v33, %v1485_v1  ;;  %v1489_v35 = vsel %vm6589_vm10, %v1487_v42, %v5300_v56  ;;  %v6958_v24 = vrot.slane %v6919_v54, 4  ;;  %v1509_v61 = vrot.slane %v1507_v57, 2 }
 0x2b8   : > { %v6944_v53 = vadd.f32 %v1477_v20, %v9965_v58  ;;  %v6948_v60 = vadd.f32 %v1480_v48, %v9966_v9  ;;  %v9967_v20 = vrot.slane %v6522_v15, 6  ;;  %v1506_v48 = vrot.slane %v1504_v25, 2 }
 0x2b9   : > { %v1496_v1 = vsel %vm6589_vm10, %v1494_v26, %v1495_v59  ;;  %v1499_v33 = vsel %vm6589_vm10, %v1497_v38, %v1498_v22  ;;  %v1368_v42 = vrot.slane %v1281_v50, 2  ;;  %v6974_v56 = vadd.f32 %v1486_v21, %v6534_v46 }
 0x2ba   : > { %v6965_v43 = vadd.f32 %v6778_v17, %v9967_v20  ;;  %v9968_v15 = vrot.slane %v6534_v46, 2  ;;  %v1502_v17 = vsel %vm6589_vm10, %v1500_v23, %v6859_v4  ;;  %v1512_v25 = vrot.slane %v1510_v51, 2  ;;  %v1983_v20 = vpop.f32.mrf.mxu2 }
 0x2bb   : > { %v1370_v59 = vrot.slane %v1281_v50, 6  ;;  %v6984_v26 = vrot.slane %v6919_v54, 6  ;;  %v9970_v22 = vrot.slane %v6534_v46, 6  ;;  %v5303_v38 = vrot.slane %v6882_v11, 13 }
 0x2bc   : > { %v6978_v58 = vadd.f32 %v1489_v35, %v9968_v15  ;;  %v6993_v9 = vadd.f32 %v1496_v1, %v6548_v14  ;;  %v9972_v21 = vrot.slane %v6548_v14, 2  ;;  %v1369_v23 = vrot.slane %v1281_v50, 4  ;;  %5335 = vmatmul.msk.bf16.gmra.mxu2 %vm862_vm3, %v6828_v8 }
 0x2bd   : > { %v6989_v27 = vadd.f32 %v6843_v19, %v9970_v22  ;;  %v9973_v15 = vrot.slane %v6548_v14, 4  ;;  %v1508_v46 = vsel %vm6589_vm10, %v1506_v48, %v1507_v57  ;;  %v1511_v19 = vsel %vm6589_vm10, %v1509_v61, %v1510_v51 }
 0x2be   : > { %9969 = vst [vmem:[#allocation6_spill] sm:$0xff] %v6978_v58  ;;  %v6997_v35 = vadd.f32 %v1499_v33, %v9972_v21  ;;  %v1517_v11 = vrot.slane %v1368_v42, 7  ;;  %v2065_v1 = vrot.slane %v1983_v20, 2  ;;  %v2066_v22 = vrot.slane %v1983_v20, 4  ;;  %v1284_v33 = vpop.f32.mrf.mxu1 }
 0x2bf   : > { %9971 = vst [vmem:[#allocation10_spill] sm:$0xff] %v6993_v9  ;;  %v7002_v58 = vadd.f32 %v1502_v17, %v9973_v15  ;;  %v2067_v9 = vrot.slane %v1983_v20, 6  ;;  %v1514_v21 = vsel %vm6589_vm10, %v1512_v25, %v5303_v38  ;;  %v1523_v4 = vrot.slane %v1370_v59, 7 }
 0x2c0   : > { %v9975_v17 = vrot.slane %v6548_v14, 6  ;;  %v5304_v57 = vrot.slane %v1281_v50, 9  ;;  %v2185_v48 = vadd.f32 %v2065_v1, %v6788_v29  ;;  %v2186_v51 = vadd.f32 %v2066_v22, %v6792_v62 }
 0x2c1   : > { %9974 = vst [vmem:[#allocation5_spill] sm:$0xff] %v7002_v58  ;;  %v2187_v61 = vadd.f32 %v2067_v9, %v6802_v63  ;;  %v1520_v42 = vrot.slane %v1369_v23, 7  ;;  %v1526_v20 = vrot.slane %v1284_v33, 7  ;;  %v7021_v58 = vadd.f32 %v1508_v46, %v6561_v37 }
 0x2c2   : > { %v7015_v15 = vadd.f32 %v1505_v31, %v9975_v17  ;;  %v9976_v25 = vrot.slane %v6561_v37, 2  ;;  %v2275_v14 = vadd.f32 %v6919_v54, %v2185_v48  ;;  %v2276_v31 = vadd.f32 %v6951_v16, %v2186_v51  ;;  %v1985_v48 = vpop.f32.mrf.mxu2 }
 0x2c3   : > { %v2277_v50 = vadd.f32 %v6958_v24, %v2187_v61  ;;  %v1518_v29 = vsel %vm6589_vm10, %v5304_v57, %v1517_v11  ;;  %v1519_v62 = vrot.slane %v1517_v11, 2  ;;  %v1525_v63 = vrot.slane %v1523_v4, 2 }
 0x2c4   : > { %v7025_v59 = vadd.f32 %v1511_v19, %v9976_v25  ;;  %v1371_v9 = vrot.slane %v1284_v33, 2  ;;  %v1372_v23 = vrot.slane %v1284_v33, 4  ;;  %v2355_v46 = vmax.f32 %v2275_v14, 0.0 }
 0x2c5   : > { %v2356_v19 = vmax.f32 %v2276_v31, 0.0  ;;  %v2357_v1 = vmax.f32 %v2277_v50, 0.0  ;;  %v1373_v22 = vrot.slane %v1284_v33, 6  ;;  %v1522_v17 = vrot.slane %v1520_v42, 2 }
 0x2c6   : > { %v9979_v57 = vrot.slane %v6561_v37, 4  ;;  %v7045_v51 = vadd.f32 %v1518_v29, %v6578_v2  ;;  %v7049_v61 = vsel %vm6589_vm10, %v1525_v63, %v1526_v20  ;;  %v2496_v25 = vsel %vm7036_vm13, %v2355_v46, 0.0  ;;  %v7057_v37 = vpop.f32.mrf.mxu1 }
 0x2c7   : > { %v2497_v14 = vsel %vm7036_vm13, %v2356_v19, 0.0  ;;  %v2498_v33 = vsel %vm7036_vm13, %v2357_v1, 0.0  ;;  %v2068_v31 = vrot.slane %v1985_v48, 2  ;;  %v2069_v50 = vrot.slane %v1985_v48, 4 }
 0x2c8   : > { %v7042_v11 = vadd.f32 %v1514_v21, %v9979_v57  ;;  %9981 = vst [vmem:[#allocation7_spill] sm:$0xff] %v7045_v51  ;;  %v7059_v21 = vld [vmem:[#allocation1] sm:$0xff]  ;;  %v2070_v29 = vrot.slane %v1985_v48, 6  ;;  %v2188_v57 = vadd.f32 %v1985_v48, %v6807_v49  ;;  %v1521_v63 = vsel %vm6589_vm10, %v1519_v62, %v1520_v42 }
 0x2c9   : > { %2656 = vst [vmem:[#allocation1] ss:$4 sm:$0xff] %v2496_v25  ;;  %v7064_v46 = vrot.slane %v1371_v9, 7  ;;  %v7066_v51 = vrot.slane %v1372_v23, 7  ;;  %v7068_v19 = vrot.slane %v1373_v22, 7  ;;  %v2189_v1 = vadd.f32 %v2068_v31, %v6817_v32 }
 0x2ca   : > { %9980 = vst [vmem:[#allocation9_spill] sm:$0xff] %v7042_v11  ;;  %v2190_v11 = vadd.f32 %v2069_v50, %v6832_v55  ;;  %v2191_v49 = vadd.f32 %v2070_v29, %v6836_v36  ;;  %v2278_v48 = vadd.f32 %v6984_v26, %v2188_v57  ;;  %v1375_v42 = vrot.slane %v7057_v37, 4 }
 0x2cb   : > { %2658 = vst [vmem:[#allocation1 + $0x1] ss:$4 sm:$0xff] %v2497_v14  ;;  %v7077_v62 = vrot.slane %v1526_v20, 2  ;;  %v2279_v9 = vadd.f32 %v6919_v54, %v2189_v1  ;;  %v1524_v32 = vsel %vm6589_vm10, %v1522_v17, %v1523_v4  ;;  %v9982_v23 = vrot.slane %v6578_v2, 2 }
 0x2cc   : > { %2660 = vst [vmem:[#allocation1 + $0x2] ss:$4 sm:$0xff] %v2498_v33  ;;  %v2280_v36 = vadd.f32 %v6951_v16, %v2190_v11  ;;  %v2281_v22 = vadd.f32 %v6958_v24, %v2191_v49  ;;  %v2358_v25 = vmax.f32 %v2278_v48, 0.0  ;;  %v1376_v20 = vrot.slane %v7057_v37, 6  ;;  %v1988_v11 = vpop.f32.mrf.mxu2  ;;  %5336 = vmatmul.msk.bf16.gmra.mxu2 %vm862_vm3, %v7059_v21 }
 0x2cd   : > { %v7086_v55 = vadd.f32 %v1521_v63, %v9982_v23  ;;  %v1531_v14 = vrot.slane %v7064_v46, 2  ;;  %v1534_v33 = vrot.slane %v7066_v51, 2  ;;  %v1537_v39 = vrot.slane %v7068_v19, 2 }
 0x2ce   : > { %v2359_v31 = vmax.f32 %v2279_v9, 0.0  ;;  %v2360_v50 = vmax.f32 %v2280_v36, 0.0  ;;  %v2361_v4 = vmax.f32 %v2281_v22, 0.0  ;;  %v2499_v17 = vsel %vm7036_vm13, %v2358_v25, 0.0  ;;  %v7101_v48 = vpop.f32.mrf.mxu1 }
 0x2cf   : > { %v7096_v29 = vrot.slane %v1375_v42, 7  ;;  %v2071_v63 = vrot.slane %v1988_v11, 4  ;;  %v2072_v1 = vrot.slane %v1988_v11, 6  ;;  %v2192_v49 = vadd.f32 %v1988_v11, %v6849_v6  ;;  %2662 = vst [vmem:[#allocation1 + $0x3] ss:$4 sm:$0xff] %v2499_v17 }
 0x2d0   : > { %v2500_v57 = vsel %vm7036_vm13, %v2359_v31, 0.0  ;;  %v2501_v9 = vsel %vm7036_vm13, %v2360_v50, 0.0  ;;  %v2502_v23 = vsel %vm7036_vm13, %v2361_v4, 0.0  ;;  %v7107_v36 = vrot.slane %v1376_v20, 7 }
 0x2d1   : > { %v1377_v42 = vrot.slane %v7101_v48, 2  ;;  %2664 = vst [vmem:[#allocation1 + $0x20] ss:$4 sm:$0xff] %v2500_v57  ;;  %v2193_v22 = vadd.f32 %v2071_v63, %v6853_v12  ;;  %v2194_v25 = vadd.f32 %v2072_v1, %v6863_v18  ;;  %v2282_v6 = vadd.f32 %v6984_v26, %v2192_v49 }
 0x2d2   : > { %v1378_v31 = vrot.slane %v7101_v48, 4  ;;  %2666 = vst [vmem:[#allocation1 + $0x21] ss:$4 sm:$0xff] %v2501_v9  ;;  %v1538_v17 = vrot.slane %v7057_v37, 7  ;;  %v1379_v50 = vrot.slane %v7101_v48, 6  ;;  %v7117_v20 = vadd.s32 2, %v6937_v41 }
 0x2d3   : > { %2668 = vst [vmem:[#allocation1 + $0x22] ss:$4 sm:$0xff] %v2502_v23  ;;  %v9983_v4 = vrot.slane %v6578_v2, 4  ;;  %v5306_v12 = vrot.slane %v7057_v37, 11  ;;  %v2283_v18 = vadd.f32 %v6919_v54, %v2193_v22  ;;  %v2284_v57 = vadd.f32 %v6951_v16, %v2194_v25 }
 0x2d4   : > { %v2362_v63 = vmax.f32 %v2282_v6, 0.0  ;;  %v1544_v1 = vrot.slane %v7096_v29, 2  ;;  %v1547_v49 = vrot.slane %v7107_v36, 2  ;;  %v7137_v37 = vrot.slane %v1377_v42, 7 }
 0x2d5   : > { %v7121_v11 = vadd.f32 %v1524_v32, %v9983_v4  ;;  %v1548_v32 = vrot.slane %v7101_v48, 7  ;;  %v2363_v23 = vmax.f32 %v2283_v18, 0.0  ;;  %v2364_v22 = vmax.f32 %v2284_v57, 0.0 }
 0x2d6   : > { %v2503_v25 = vsel %vm7036_vm13, %v2362_v63, 0.0  ;;  %v7141_v6 = vrot.slane %v1378_v31, 7  ;;  %v7143_v4 = vrot.slane %v1379_v50, 7  ;;  %v7145_v7 = vld.sshfl [vmem:[#allocation1] sm:$0xff pattern:$0x73625140]  ;;  %v1530_v48 = vsel %vm6589_vm10, %v7077_v62, %v7064_v46  ;;  %v7162_v63 = vpop.f32.mrf.mxu1 }
 0x2d7   : > { %9984 = vst [vmem:[#allocation8_spill] sm:$0xff] %v7121_v11  ;;  %v1990_v11 = vpop.f32.mrf.mxu2  ;;  %v1533_v42 = vsel %vm6589_vm10, %v1531_v14, %v7066_v51  ;;  %v7156_v38 = vsel %vm6589_vm10, %v1537_v39, %v1538_v17  ;;  %v2504_v31 = vsel %vm7132_vm5, %v2363_v23, 0.0  ;;  %v2505_v50 = vsel %vm7132_vm5, %v2364_v22, 0.0 }
 0x2d8   : > { %2670 = vst [vmem:[#allocation1 + $0x23] ss:$4 sm:$0xff] %v2503_v25  ;;  %v2073_v18 = vrot.slane %v1990_v11, 2  ;;  %v2074_v57 = vrot.slane %v1990_v11, 4  ;;  %v2075_v25 = vrot.slane %v1990_v11, 6  ;;  %v2195_v46 = vadd.f32 %v1990_v11, %v6868_v44 }
 0x2d9   : > { %9987 = vst [vmem:[#allocation13_spill] sm:$0xff] %v7145_v7  ;;  %v1536_v51 = vsel %vm6589_vm10, %v1534_v33, %v7068_v19  ;;  %v9988_v62 = vrot.slane %v6578_v2, 6  ;;  %v7173_v39 = vrot.slane %v1548_v32, 2  ;;  %vm2448_vm6 = vcmp.ge.s32.totalorder %v7117_v20, 0 }
 0x2da   : > { %2673 = vst [vmem:[#allocation1] ss:$4 sm:$0xff] %v2504_v31  ;;  %v2196_v17 = vadd.f32 %v2073_v18, %v6857_v0  ;;  %v2197_v23 = vadd.f32 %v2074_v57, %v6889_v13  ;;  %vm2458_vm7 = vcmp.lt.s32.totalorder %v7117_v20, 16  ;;  %v7180_v44 = vadd.f32 %v1530_v48, %v6605_v34 }
 0x2db   : > { %v7171_v14 = vadd.f32 %v7049_v61, %v9988_v62  ;;  %2674 = vst [vmem:[#allocation1 + $0x1] ss:$4 sm:$0xff] %v2505_v50  ;;  %v1553_v19 = vrot.slane %v7137_v37, 2  ;;  %v1556_v2 = vrot.slane %v7141_v6, 2  ;;  %v2198_v61 = vadd.f32 %v2075_v25, %v6893_v40  ;;  %vm7255_vm8 = vmand %vm2448_vm6, %vm2458_vm7 }
 0x2dc   : > { %v2285_v33 = vadd.f32 %v6958_v24, %v2195_v46  ;;  %v1559_v0 = vrot.slane %v7143_v4, 2  ;;  %v2286_v13 = vadd.f32 %v6984_v26, %v2196_v17  ;;  %v2287_v11 = vadd.f32 %v6919_v54, %v2197_v23 }
 0x2dd   : > { %v9989_v22 = vrot.slane %v6605_v34, 2  ;;  %v2288_v31 = vadd.f32 %v6951_v16, %v2198_v61  ;;  %v1382_v40 = vrot.slane %v7162_v63, 6  ;;  %v9990_v18 = vrot.slane %v6605_v34, 4 }
 0x2de   : > { %v2365_v50 = vmax.f32 %v2285_v33, 0.0  ;;  %v2366_v25 = vmax.f32 %v2286_v13, 0.0  ;;  %v2367_v46 = vmax.f32 %v2287_v11, 0.0  ;;  %v1543_v62 = vsel %vm6589_vm10, %v5306_v12, %v7096_v29  ;;  %v7220_v13 = vpop.f32.mrf.mxu1 }
 0x2df   : > { %v7193_v48 = vadd.f32 %v1533_v42, %v9989_v22  ;;  %v7199_v57 = vadd.f32 %v1536_v51, %v9990_v18  ;;  %v7206_v8 = vsel %vm6589_vm10, %v1547_v49, %v1548_v32  ;;  %v2368_v42 = vmax.f32 %v2288_v31, 0.0  ;;  %v7210_v23 = vld.sshfl [vmem:[#allocation1 + $0x20] sm:$0xff pattern:$0x73625140]  ;;  %v1993_v51 = vpop.f32.mrf.mxu2 }
 0x2e0   : > { %v2506_v17 = vsel %vm7132_vm5, %v2365_v50, 0.0  ;;  %9991 = vst [vmem:[#allocation14_spill] sm:$0xff] %v7210_v23  ;;  %v1560_v61 = vrot.slane %v7162_v63, 7  ;;  %v1546_v33 = vsel %vm6589_vm10, %v1544_v1, %v7107_v36  ;;  %v2507_v29 = vsel %vm7132_vm5, %v2366_v25, 0.0 }
 0x2e1   : > { %v2508_v12 = vsel %vm7132_vm5, %v2367_v46, 0.0  ;;  %v2076_v49 = vrot.slane %v1993_v51, 2  ;;  %v2077_v32 = vrot.slane %v1993_v51, 6  ;;  %2675 = vst [vmem:[#allocation1 + $0x2] ss:$4 sm:$0xff] %v2506_v17  ;;  %v2509_v11 = vsel %vm7132_vm5, %v2368_v42, 0.0 }
 0x2e2   : > { %2677 = vst [vmem:[#allocation1 + $0x20] ss:$4 sm:$0xff] %v2508_v12  ;;  %v5307_v22 = vrot.slane %v7162_v63, 9  ;;  %v7225_v31 = vrot.slane %v1382_v40, 7  ;;  %v2199_v36 = vadd.f32 %v1993_v51, %v6899_v5  ;;  %v1383_v25 = vrot.slane %v7220_v13, 2 }
 0x2e3   : > { %2678 = vst [vmem:[#allocation1 + $0x21] ss:$4 sm:$0xff] %v2509_v11  ;;  %v2200_v50 = vadd.f32 %v2076_v49, %v6926_v45  ;;  %v2201_v18 = vadd.f32 %v2077_v32, %v6930_v10  ;;  %v7234_v46 = vrot.slane %v1560_v61, 2  ;;  %v1384_v40 = vrot.slane %v7220_v13, 4 }
 0x2e4   : > { %v2289_v42 = vadd.f32 %v6958_v24, %v2199_v36  ;;  %2676 = vst [vmem:[#allocation1 + $0x3] ss:$4 sm:$0xff] %v2507_v29  ;;  %v1385_v5 = vrot.slane %v7220_v13, 6  ;;  %v9992_v45 = vrot.slane %v6605_v34, 6  ;;  %v9993_v12 = vrot.slane %v6629_v47, 2 }
 0x2e5   : > { %v2290_v17 = vadd.f32 %v6984_v26, %v2200_v50  ;;  %v2291_v51 = vadd.f32 %v6919_v54, %v2201_v18  ;;  %v9996_v34 = vrot.slane %v6629_v47, 4  ;;  %v9747_v18 = vrot.slane %v7220_v13, 7 }
 0x2e6   : > { %v7244_v10 = vadd.f32 %v7156_v38, %v9992_v45  ;;  %v7248_v49 = vadd.f32 %v1543_v62, %v9993_v12  ;;  %v2369_v29 = vmax.f32 %v2289_v42, 0.0  ;;  %v1552_v38 = vsel %vm6589_vm10, %v7173_v39, %v7137_v37 }
 0x2e7   : > { %v7261_v36 = vadd.f32 %v1546_v33, %v9996_v34  ;;  %v2370_v62 = vmax.f32 %v2290_v17, 0.0  ;;  %v2371_v50 = vmax.f32 %v2291_v51, 0.0  ;;  %v7268_v42 = vrot.slane %v1383_v25, 7  ;;  %v1995_v33 = vpop.f32.mrf.mxu2  ;;  %v7283_v51 = vpop.f32.mrf.mxu1 }
 0x2e8   : > { %v2510_v20 = vsel %vm7132_vm5, %v2369_v29, 0.0  ;;  %v7272_v45 = vrot.slane %v1384_v40, 7  ;;  %v7274_v12 = vrot.slane %v1385_v5, 7  ;;  %v1555_v34 = vsel %vm6589_vm10, %v1553_v19, %v7141_v6 }
 0x2e9   : > { %v2511_v37 = vsel %vm7132_vm5, %v2370_v62, 0.0  ;;  %v2512_v39 = vsel %vm7255_vm8, %v2371_v50, 0.0  ;;  %2679 = vst [vmem:[#allocation1 + $0x22] ss:$4 sm:$0xff] %v2510_v20  ;;  %v2078_v25 = vrot.slane %v1995_v33, 2  ;;  %v2079_v17 = vrot.slane %v1995_v33, 4 }
 0x2ea   : > { %2680 = vst [vmem:[#allocation1 + $0x23] ss:$4 sm:$0xff] %v2511_v37  ;;  %v2080_v40 = vrot.slane %v1995_v33, 6  ;;  %v2202_v5 = vadd.f32 %v1995_v33, %v6935_v3  ;;  %v7287_v29 = vadd.s32 3, %v6937_v41  ;;  %v1558_v9 = vsel %vm6589_vm10, %v1556_v2, %v7143_v4  ;;  %v10003_v33 = vld [vmem:[#allocation5_spill] sm:$0xff] }
 0x2eb   : > { %v2681_v19 = vld.sshfl [vmem:[#allocation1] sm:$0xff pattern:$0x73625140]  ;;  %v7296_v62 = vrot.slane %v9747_v18, 2  ;;  %v2203_v20 = vadd.f32 %v2078_v25, %v6940_v30  ;;  %v2204_v3 = vadd.f32 %v2079_v17, %v6944_v53  ;;  %v1386_v2 = vrot.slane %v7283_v51, 2 }
 0x2ec   : > { %2683 = vst [vmem:[#allocation1] ss:$4 sm:$0xff] %v2512_v39  ;;  %v2205_v37 = vadd.f32 %v2080_v40, %v6948_v60  ;;  %v2292_v6 = vadd.f32 %v6951_v16, %v2202_v5  ;;  %v9997_v53 = vrot.slane %v6629_v47, 6  ;;  %v7317_v25 = vadd.f32 %v1552_v38, %v6673_v52 }
 0x2ed   : > { %v2293_v18 = vadd.f32 %v6958_v24, %v2203_v20  ;;  %v2294_v1 = vadd.f32 %v6984_v26, %v2204_v3  ;;  %v9998_v17 = vrot.slane %v6673_v52, 2  ;;  %v9748_v3 = vrot.slane %v7283_v51, 7 }
 0x2ee   : > { %v7313_v30 = vadd.f32 %v7206_v8, %v9997_v53  ;;  %v2295_v60 = vadd.f32 %v6919_v54, %v2205_v37  ;;  %v2372_v39 = vmax.f32 %v2292_v6, 0.0  ;;  %v7330_v47 = vsel %vm6589_vm10, %v1559_v0, %v1560_v61 }
 0x2ef   : > { %v7321_v40 = vadd.f32 %v1555_v34, %v9998_v17  ;;  %v2373_v5 = vmax.f32 %v2293_v18, 0.0  ;;  %v2374_v20 = vmax.f32 %v2294_v1, 0.0  ;;  %v7334_v38 = vrot.slane %v1386_v2, 7  ;;  %v1998_v18 = vpop.f32.mrf.mxu2  ;;  %v7342_v61 = vpop.f32.mrf.mxu1 }
 0x2f0   : > { %v2375_v21 = vmax.f32 %v2295_v60, 0.0  ;;  %v2513_v8 = vsel %vm7255_vm8, %v2372_v39, 0.0  ;;  %v2081_v6 = vrot.slane %v1998_v18, 2  ;;  %v2206_v0 = vadd.f32 %v1998_v18, %v6965_v43 }
 0x2f1   : > { %v2514_v1 = vsel %vm7255_vm8, %v2373_v5, 0.0  ;;  %v2515_v37 = vsel %vm7255_vm8, %v2374_v20, 0.0  ;;  %v2682_v4 = vld.sshfl [vmem:[#allocation1 + $0x20] sm:$0xff pattern:$0x73625140]  ;;  %v2082_v60 = vrot.slane %v1998_v18, 4  ;;  %v2785_v39 = vpack.c.bf16 %v2681_v19, %v2681_v19 }
 0x2f2   : > { %v2516_v53 = vsel %vm7255_vm8, %v2375_v21, 0.0  ;;  %2684 = vst [vmem:[#allocation1 + $0x1] ss:$4 sm:$0xff] %v2513_v8  ;;  %vm2449_vm9 = vcmp.ge.s32.totalorder %v7287_v29, 0  ;;  %vm2459_vm11 = vcmp.lt.s32.totalorder %v7287_v29, 16  ;;  %v7351_v17 = vrot.slane %v9748_v3, 2 }
 0x2f3   : > { %2685 = vst [vmem:[#allocation1 + $0x2] ss:$4 sm:$0xff] %v2514_v1  ;;  %v2207_v43 = vadd.f32 %v2081_v6, %v6974_v56  ;;  %v2296_v5 = vadd.f32 %v6951_v16, %v2206_v0  ;;  %v1389_v20 = vrot.slane %v7342_v61, 2  ;;  %v9999_v21 = vld [vmem:[#allocation6_spill] sm:$0xff]  ;;  %v1390_v18 = vrot.slane %v7342_v61, 4  ;;  %vm7415_vm13 = vmand %vm2449_vm9, %vm2459_vm11 }
 0x2f4   : > { %2686 = vst [vmem:[#allocation1 + $0x3] ss:$4 sm:$0xff] %v2515_v37  ;;  %v2208_v8 = vadd.f32 %v2082_v60, %v9999_v21  ;;  %v1391_v2 = vrot.slane %v7342_v61, 6  ;;  %v2786_v34 = vpack.c.bf16 %v2682_v4, %v2682_v4  ;;  %v10000_v56 = vrot.slane %v6673_v52, 4 }
 0x2f5   : > { %2687 = vst [vmem:[#allocation1 + $0x20] ss:$4 sm:$0xff] %v2516_v53  ;;  %v2297_v1 = vadd.f32 %v6958_v24, %v2207_v43  ;;  %v2376_v32 = vmax.f32 %v2296_v5, 0.0  ;;  %v9749_v37 = vrot.slane %v7342_v61, 7  ;;  %v2825_v60 = vunpack.c.l.b16 %v2785_v39 }
 0x2f6   : > { %v7363_v6 = vadd.f32 %v1558_v9, %v10000_v56  ;;  %v2298_v0 = vadd.f32 %v6984_v26, %v2208_v8  ;;  %v2826_v21 = vunpack.c.l.b16 %v2786_v34  ;;  %v7369_v53 = vrot.slane %v1389_v20, 7 }
 0x2f7   : > { %v2377_v3 = vmax.f32 %v2297_v1, 0.0  ;;  %v2517_v4 = vsel %vm7255_vm8, %v2376_v32, 0.0  ;;  %v7376_v9 = vsel %vm6589_vm10, %v7234_v46, %v5307_v22  ;;  %v7378_v5 = vrot.slane %v1390_v18, 7  ;;  %v2000_v34 = vpop.f32.mrf.mxu2  ;;  %v7391_v56 = vpop.f32.mrf.mxu1 }
 0x2f8   : > { %v2378_v43 = vmax.f32 %v2298_v0, 0.0  ;;  %2688 = vst [vmem:[#allocation1 + $0x21] ss:$4 sm:$0xff] %v2517_v4  ;;  %v7380_v39 = vrot.slane %v1391_v2, 7  ;;  %v10001_v8 = vrot.slane %v7162_v63, 13  ;;  %v2083_v1 = vrot.slane %v2000_v34, 2 }
 0x2f9   : > { %v2518_v20 = vsel %vm7255_vm8, %v2377_v3, 0.0  ;;  %v2084_v22 = vrot.slane %v2000_v34, 4  ;;  %v2085_v46 = vrot.slane %v2000_v34, 6  ;;  %v7397_v18 = vrot.slane %v9749_v37, 2  ;;  %v10002_v3 = vld [vmem:[#allocation10_spill] sm:$0xff] }
 0x2fa   : > { %v7387_v32 = vsel %vm6589_vm10, %v10001_v8, %v7225_v31  ;;  %v2519_v2 = vsel %vm7255_vm8, %v2378_v43, 0.0  ;;  %2689 = vst [vmem:[#allocation1 + $0x22] ss:$4 sm:$0xff] %v2518_v20  ;;  %v2209_v63 = vadd.f32 %v2000_v34, %v6989_v27  ;;  %v2844_v0 = vpack.c.b16 %v2826_v21, %v2825_v60 }
 0x2fb   : > { %2690 = vst [vmem:[#allocation1 + $0x23] ss:$4 sm:$0xff] %v2519_v2  ;;  %v2210_v8 = vadd.f32 %v2083_v1, %v10002_v3  ;;  %v2211_v19 = vadd.f32 %v2084_v22, %v6997_v35  ;;  %v2212_v50 = vadd.f32 %v2085_v46, %v10003_v33  ;;  %v1392_v37 = vrot.slane %v7391_v56, 2  ;;  %v7422_v34 = vld.sshfl [vmem:[#allocation1] sm:$0xff pattern:$0x73625140] }
 0x2fc   : > { %v2299_v20 = vadd.f32 %v6919_v54, %v2209_v63  ;;  %v7420_v33 = vadd.s32 4, %v6937_v41  ;;  %v1393_v22 = vrot.slane %v7391_v56, 4  ;;  %v2861_v46 = vshrl.u32 %v2844_v0, 16 }
 0x2fd   : > { %v2300_v27 = vadd.f32 %v6951_v16, %v2210_v8  ;;  %v2301_v60 = vadd.f32 %v6958_v24, %v2211_v19  ;;  %v2302_v21 = vadd.f32 %v6984_v26, %v2212_v50  ;;  %v10006_v19 = vrot.slane %v6673_v52, 6 }
 0x2fe   : > { %v2379_v1 = vmax.f32 %v2299_v20, 0.0  ;;  %v9750_v3 = vrot.slane %v7391_v56, 7  ;;  %v7433_v43 = vrot.slane %v1392_v37, 7  ;;  %v2863_v11 = vrot.slane %v2861_v46, 7 }
 0x2ff   : > { %v7428_v50 = vadd.f32 %v7330_v47, %v10006_v19  ;;  %v2380_v2 = vmax.f32 %v2300_v27, 0.0  ;;  %v2381_v29 = vmax.f32 %v2301_v60, 0.0  ;;  %v2382_v63 = vmax.f32 %v2302_v21, 0.0  ;;  %v2003_v4 = vpop.f32.mrf.mxu2  ;;  %v7447_v60 = vpop.f32.mrf.mxu1 }
 0x300   : > { %v2520_v8 = vsel %vm7415_vm13, %v2379_v1, 0.0  ;;  %10007 = vst [vmem:[#allocation15_spill] sm:$0xff] %v7433_v43  ;;  %v2864_v20 = vshll.u32 %v2844_v0, 16  ;;  %v2086_v37 = vrot.slane %v2003_v4, 2  ;;  %v7449_v0 = vrot.slane %v1393_v22, 7 }
 0x301   : > { %v2521_v23 = vsel %vm7415_vm13, %v2380_v2, 0.0  ;;  %v2522_v52 = vsel %vm7415_vm13, %v2381_v29, 0.0  ;;  %v2523_v47 = vsel %vm7415_vm13, %v2382_v63, 0.0  ;;  %2693 = vst [vmem:[#allocation1] ss:$4 sm:$0xff] %v2520_v8  ;;  %v7453_v21 = vsel %vm7443_vm14, %v2863_v11, 0 }
 0x302   : > { %10010 = vst [vmem:[#allocation11_spill] sm:$0xff] %v7447_v60  ;;  %v2866_v1 = vor.u32 %v2864_v20, %v2863_v11  ;;  %v2213_v46 = vadd.f32 %v2003_v4, %v7015_v15  ;;  %2984 = vrot.lane.b32.xlu2 %v7453_v21, %s5633_s27  ;;  %v2087_v2 = vrot.slane %v2003_v4, 4  ;;  %v2088_v29 = vrot.slane %v2003_v4, 6  ;;  %v10014_v4 = vld [vmem:[#allocation9_spill] sm:$0xff] }
 0x303   : > { %2694 = vst [vmem:[#allocation1 + $0x1] ss:$4 sm:$0xff] %v2521_v23  ;;  %v2214_v63 = vadd.f32 %v2086_v37, %v7021_v58  ;;  %v1395_v11 = vrot.slane %v7447_v60, 2  ;;  %v1396_v15 = vrot.slane %v7447_v60, 4  ;;  %v7469_v8 = vrot.slane %v9750_v3, 2 }
 0x304   : > { %10011 = vst [vmem:[#allocation12_spill] sm:$0xff] %v7453_v21  ;;  %v7462_v23 = vsel %vm7443_vm14, 0, %v2866_v1  ;;  %v2303_v22 = vadd.f32 %v6919_v54, %v2213_v46  ;;  %v2215_v58 = vadd.f32 %v2087_v2, %v7025_v59  ;;  %v2216_v20 = vadd.f32 %v2088_v29, %v10014_v4  ;;  %v10017_v4 = vld [vmem:[#allocation54_spill] sm:$0xff] }
 0x305   : > { %2695 = vst [vmem:[#allocation1 + $0x2] ss:$4 sm:$0xff] %v2522_v52  ;;  %2982 = vrot.lane.b32.xlu1 %v7462_v23, %s5633_s27  ;;  %v2304_v52 = vadd.f32 %v6951_v16, %v2214_v63  ;;  %v1397_v46 = vrot.slane %v7447_v60, 6  ;;  %vm2450_vm15 = vcmp.ge.s32.totalorder %v7420_v33, 0  ;;  %v7484_v2 = vrot.slane %v1395_v11, 7 }
 0x306   : > { %2696 = vst [vmem:[#allocation1 + $0x3] ss:$4 sm:$0xff] %v2523_v47  ;;  %v2383_v1 = vmax.f32 %v2303_v22, 0.0  ;;  %v2305_v19 = vadd.f32 %v6958_v24, %v2215_v58  ;;  %v2306_v3 = vadd.f32 %v6984_v26, %v2216_v20  ;;  %v7486_v29 = vrot.slane %v1396_v15, 7 }
 0x307   : > { %10012 = vst [vmem:[#allocation17_spill] sm:$0xff] %v7462_v23  ;;  %v2384_v21 = vmax.f32 %v2304_v52, 0.0  ;;  %v2692_v23 = vld.sshfl [vmem:[#allocation1 + $0x20] sm:$0xff pattern:$0x73625140]  ;;  %v2005_v63 = vpop.f32.mrf.mxu2  ;;  %v7490_v22 = vadd.f32 %v7376_v9, %v10017_v4  ;;  %v7494_v37 = vpop.f32.mrf.mxu1  ;;  %vm2460_vm5 = vcmp.lt.s32.totalorder %v7420_v33, 16 }
 0x308   : > { %10013 = vst [vmem:[#allocation22_spill] sm:$0xff] %v7469_v8  ;;  %v2524_v59 = vsel %vm7415_vm13, %v2383_v1, 0.0  ;;  %v2385_v47 = vmax.f32 %v2305_v19, 0.0  ;;  %v2386_v58 = vmax.f32 %v2306_v3, 0.0  ;;  %v2089_v52 = vrot.slane %v2005_v63, 2  ;;  %v10019_v19 = vld [vmem:[#allocation7_spill] sm:$0xff]  ;;  %vm7520_vm6 = vmand %vm2450_vm15, %vm2460_vm5 }
 0x309   : > { %10015 = vst [vmem:[#allocation24_spill] sm:$0xff] %v7484_v2  ;;  %v2525_v20 = vsel %vm7415_vm13, %v2384_v21, 0.0  ;;  %v7496_v1 = vrot.slane %v1397_v46, 7  ;;  %v2090_v11 = vrot.slane %v2005_v63, 4  ;;  %v2091_v15 = vrot.slane %v2005_v63, 6 }
 0x30a   : > { %10016 = vst [vmem:[#allocation19_spill] sm:$0xff] %v7486_v29  ;;  %v2526_v9 = vsel %vm7415_vm13, %v2385_v47, 0.0  ;;  %v2527_v3 = vsel %vm7415_vm13, %v2386_v58, 0.0  ;;  %v2217_v7 = vadd.f32 %v2089_v52, %v10019_v19  ;;  %v1398_v21 = vrot.slane %v7494_v37, 2 }
 0x30b   : > { %2697 = vst [vmem:[#allocation1 + $0x20] ss:$4 sm:$0xff] %v2524_v59  ;;  %v2218_v46 = vadd.f32 %v2090_v11, %v7086_v55  ;;  %v2787_v63 = vpack.c.bf16 %v7422_v34, %v7422_v34  ;;  %v2788_v52 = vpack.c.bf16 %v2692_v23, %v2692_v23  ;;  %v1399_v34 = vrot.slane %v7494_v37, 4 }
 0x30c   : > { %2698 = vst [vmem:[#allocation1 + $0x21] ss:$4 sm:$0xff] %v2525_v20  ;;  %v10020_v20 = vld [vmem:[#allocation8_spill] sm:$0xff]  ;;  %v2307_v58 = vadd.f32 %v6919_v54, %v2217_v7  ;;  %v1400_v7 = vrot.slane %v7494_v37, 6  ;;  %v10023_v2 = vrot.slane %v7494_v37, 7 }
 0x30d   : > { %10018 = vst [vmem:[#allocation26_spill] sm:$0xff] %v7496_v1  ;;  %v2219_v8 = vadd.f32 %v2091_v15, %v10020_v20  ;;  %v7527_v15 = vrot.slane %v1398_v21, 7  ;;  %v2827_v20 = vunpack.c.l.b16 %v2787_v63  ;;  %v2828_v19 = vunpack.c.l.b16 %v2788_v52 }
 0x30e   : > { %2699 = vst [vmem:[#allocation1 + $0x22] ss:$4 sm:$0xff] %v2526_v9  ;;  %v2308_v9 = vadd.f32 %v6951_v16, %v2218_v46  ;;  %v2387_v11 = vmax.f32 %v2307_v58, 0.0  ;;  %v7540_v63 = vrot.slane %v1399_v34, 7  ;;  %v7549_v43 = vrot.slane %v1400_v7, 7 }
 0x30f   : > { %2700 = vst [vmem:[#allocation1 + $0x23] ss:$4 sm:$0xff] %v2527_v3  ;;  %v2309_v59 = vadd.f32 %v6958_v24, %v2219_v8  ;;  %v7529_v3 = vld.sshfl [vmem:[#allocation1] sm:$0xff pattern:$0x73625140]  ;;  %v2008_v33 = vpop.f32.mrf.mxu2  ;;  %v7533_v58 = vpop.f32.mrf.mxu1 }
 0x310   : > { %v2388_v8 = vmax.f32 %v2308_v9, 0.0  ;;  %v2528_v35 = vsel %vm7520_vm6, %v2387_v11, 0.0  ;;  %v2092_v47 = vrot.slane %v2008_v33, 2  ;;  %v2093_v1 = vrot.slane %v2008_v33, 4 }
 0x311   : > { %v2389_v46 = vmax.f32 %v2309_v59, 0.0  ;;  %v2094_v29 = vrot.slane %v2008_v33, 6  ;;  %2703 = vst [vmem:[#allocation1] ss:$4 sm:$0xff] %v2528_v35  ;;  %v2845_v9 = vpack.c.b16 %v2828_v19, %v2827_v20  ;;  %v2220_v59 = vadd.f32 %v2008_v33, %v7171_v14 }
 0x312   : > { %v2529_v23 = vsel %vm7520_vm6, %v2388_v8, 0.0  ;;  %v2221_v52 = vadd.f32 %v2092_v47, %v7180_v44  ;;  %v2222_v11 = vadd.f32 %v2093_v1, %v7193_v48  ;;  %v7547_v8 = vrot.slane %v10023_v2, 2 }
 0x313   : > { %v2530_v21 = vsel %vm7520_vm6, %v2389_v46, 0.0  ;;  %2704 = vst [vmem:[#allocation1 + $0x1] ss:$4 sm:$0xff] %v2529_v23  ;;  %v2223_v60 = vadd.f32 %v2094_v29, %v7199_v57  ;;  %v2868_v35 = vshrl.u32 %v2845_v9, 16  ;;  %v2310_v19 = vadd.f32 %v6984_v26, %v2220_v59 }
 0x314   : > { %2705 = vst [vmem:[#allocation1 + $0x2] ss:$4 sm:$0xff] %v2530_v21  ;;  %v2311_v14 = vadd.f32 %v6919_v54, %v2221_v52  ;;  %v2312_v34 = vadd.f32 %v6951_v16, %v2222_v11  ;;  %v1402_v48 = vrot.slane %v7533_v58, 4  ;;  %v2871_v57 = vshll.u32 %v2845_v9, 16 }
 0x315   : > { %v2313_v44 = vadd.f32 %v6958_v24, %v2223_v60  ;;  %v2870_v1 = vrot.slane %v2868_v35, 7  ;;  %v2390_v29 = vmax.f32 %v2310_v19, 0.0  ;;  %v1403_v47 = vrot.slane %v7533_v58, 6 }
 0x316   : > { %v2391_v7 = vmax.f32 %v2311_v14, 0.0  ;;  %v2392_v23 = vmax.f32 %v2312_v34, 0.0  ;;  %v2702_v20 = vld.sshfl [vmem:[#allocation1 + $0x20] sm:$0xff pattern:$0x73625140]  ;;  %v2441_v9 = vadd.s32 5, %v6937_v41 }
 0x317   : > { %v2393_v46 = vmax.f32 %v2313_v44, 0.0  ;;  %v7560_v33 = vsel %vm7443_vm14, %v2870_v1, 0  ;;  %v2873_v21 = vor.u32 %v2871_v57, %v2870_v1  ;;  %v2531_v60 = vsel %vm7520_vm6, %v2390_v29, 0.0  ;;  %v2010_v59 = vpop.f32.mrf.mxu2  ;;  %v7575_v14 = vpop.f32.mrf.mxu1 }
 0x318   : > { %10024 = vst [vmem:[#allocation23_spill] sm:$0xff] %v7560_v33  ;;  %3018 = vrot.lane.b32.xlu0 %v7560_v33, %s5634_s30  ;;  %v2532_v52 = vsel %vm7520_vm6, %v2391_v7, 0.0  ;;  %v2533_v11 = vsel %vm7520_vm6, %v2392_v23, 0.0  ;;  %v7573_v19 = vrot.slane %v1402_v48, 7  ;;  %v7581_v44 = vrot.slane %v1403_v47, 7 }
 0x319   : > { %v2534_v35 = vsel %vm7520_vm6, %v2393_v46, 0.0  ;;  %2706 = vst [vmem:[#allocation1 + $0x3] ss:$4 sm:$0xff] %v2531_v60  ;;  %v7579_v34 = vsel %vm7443_vm14, 0, %v2873_v21  ;;  %v2095_v1 = vrot.slane %v2010_v59, 4  ;;  %v2096_v57 = vrot.slane %v2010_v59, 6 }
 0x31a   : > { %2707 = vst [vmem:[#allocation1 + $0x20] ss:$4 sm:$0xff] %v2532_v52  ;;  %3016 = vrot.lane.b32.xlu2 %v7579_v34, %s5634_s30  ;;  %v2224_v48 = vadd.f32 %v2010_v59, %v7244_v10  ;;  %v2789_v23 = vpack.c.bf16 %v7529_v3, %v7529_v3  ;;  %vm2451_vm7 = vcmp.ge.s32.totalorder %v2441_v9, 0  ;;  %vm2461_vm8 = vcmp.lt.s32.totalorder %v2441_v9, 16 }
 0x31b   : > { %2708 = vst [vmem:[#allocation1 + $0x21] ss:$4 sm:$0xff] %v2533_v11  ;;  %v2225_v46 = vadd.f32 %v2095_v1, %v7248_v49  ;;  %v2226_v47 = vadd.f32 %v2096_v57, %v7261_v36  ;;  %v2790_v7 = vpack.c.bf16 %v2702_v20, %v2702_v20  ;;  %vm7599_vm9 = vmand %vm2451_vm7, %vm2461_vm8  ;;  %v1404_v9 = vrot.slane %v7575_v14, 2 }
 0x31c   : > { %2709 = vst [vmem:[#allocation1 + $0x22] ss:$4 sm:$0xff] %v2534_v35  ;;  %v2314_v52 = vadd.f32 %v6984_v26, %v2224_v48  ;;  %v1405_v35 = vrot.slane %v7575_v14, 4  ;;  %v2829_v48 = vunpack.c.l.b16 %v2789_v23  ;;  %v10027_v21 = vrot.slane %v10017_v4, 4 }
 0x31d   : > { %v2315_v3 = vadd.f32 %v6919_v54, %v2225_v46  ;;  %v2316_v59 = vadd.f32 %v6951_v16, %v2226_v47  ;;  %v2830_v11 = vunpack.c.l.b16 %v2790_v7  ;;  %v1406_v46 = vrot.slane %v7575_v14, 6 }
 0x31e   : > { %v2394_v49 = vmax.f32 %v2314_v52, 0.0  ;;  %v7622_v55 = vrot.slane %v1404_v9, 7  ;;  %v10044_v36 = vrot.slane %v7334_v38, 2 }
 0x31f   : > { %v2395_v20 = vmax.f32 %v2315_v3, 0.0  ;;  %v2396_v57 = vmax.f32 %v2316_v59, 0.0  ;;  %v2013_v10 = vpop.f32.mrf.mxu2  ;;  %v7613_v52 = vpop.f32.mrf.mxu1  ;;  %v1793_v3 = vadd.f32 %v7387_v32, %v10027_v21  ;;  %v2846_v59 = vpack.c.b16 %v2830_v11, %v2829_v48 }
 0x320   : > { %v7606_v60 = vld.sshfl [vmem:[#allocation1] sm:$0xff pattern:$0x73625140]  ;;  %2988 = vrot.lane.b32.xlu0 %v7560_v33, %s5633_s27  ;;  %v2535_v54 = vsel %vm7520_vm6, %v2394_v49, 0.0  ;;  %v2097_v47 = vrot.slane %v2013_v10, 2  ;;  %v2098_v29 = vrot.slane %v2013_v10, 4  ;;  %v2227_v2 = vadd.f32 %v2013_v10, %v7313_v30 }
 0x321   : > { %v2536_v7 = vsel %vm7599_vm9, %v2395_v20, 0.0  ;;  %v2537_v23 = vsel %vm7599_vm9, %v2396_v57, 0.0  ;;  %2710 = vst [vmem:[#allocation1 + $0x23] ss:$4 sm:$0xff] %v2535_v54  ;;  %v2099_v49 = vrot.slane %v2013_v10, 6  ;;  %v10028_v32 = vrot.slane %v7575_v14, 7 }
 0x322   : > { %2713 = vst [vmem:[#allocation1] ss:$4 sm:$0xff] %v2536_v7  ;;  %v2228_v1 = vadd.f32 %v2097_v47, %v7317_v25  ;;  %v7630_v20 = vrot.slane %v1405_v35, 7  ;;  %v2875_v33 = vshrl.u32 %v2846_v59, 16  ;;  %v2229_v57 = vadd.f32 %v2098_v29, %v7321_v40  ;;  %v7639_v25 = vld [vmem:[%s9638_s2] ss:$0 sm:$0xff] }
 0x323   : > { %2714 = vst [vmem:[#allocation1 + $0x1] ss:$4 sm:$0xff] %v2537_v23  ;;  %v7628_v21 = vrot.slane %v10028_v32, 2  ;;  %v2230_v11 = vadd.f32 %v2099_v49, %v7363_v6  ;;  %v2317_v9 = vadd.f32 %v6958_v24, %v2227_v2  ;;  %v2878_v54 = vshll.u32 %v2846_v59, 16 }
 0x324   : > { %v2318_v48 = vadd.f32 %v6984_v26, %v2228_v1  ;;  %v2877_v30 = vrot.slane %v2875_v33, 7  ;;  %v2319_v10 = vadd.f32 %v7639_v25, %v2229_v57  ;;  %v2442_v35 = vadd.s32 6, %v6937_v41 }
 0x325   : > { %v10029_v47 = vrot.slane %v7220_v13, 7  ;;  %v10030_v40 = vrot.slane %v7225_v31, 2  ;;  %v7649_v2 = vrot.slane %v1406_v46, 7  ;;  %v2320_v33 = vadd.f32 %v6951_v16, %v2230_v11 }
 0x326   : > { %v2397_v29 = vmax.f32 %v2317_v9, 0.0  ;;  %v2398_v1 = vmax.f32 %v2318_v48, 0.0  ;;  %v1653_v7 = vrot.slane %v7622_v55, 2  ;;  %v7655_v23 = vsel %vm7443_vm14, %v2877_v30, 0 }
 0x327   : > { %v1571_v6 = vsel %vm6589_vm10, %v10030_v40, %v10029_v47  ;;  %v2399_v59 = vmax.f32 %v2319_v10, 0.0  ;;  %v2880_v49 = vor.u32 %v2878_v54, %v2877_v30  ;;  %v2015_v13 = vpop.f32.mrf.mxu2  ;;  %3022 = vrot.lane.b32.xlu1 %v7655_v23, %s5634_s30  ;;  %v2400_v31 = vmax.f32 %v2320_v33, 0.0  ;;  %v1316_v11 = vpop.f32.mrf.mxu1 }
 0x328   : > { %2986 = vrot.lane.b32.xlu0 %v7579_v34, %s5633_s27  ;;  %v2538_v46 = vsel %vm7599_vm9, %v2397_v29, 0.0  ;;  %v2539_v32 = vsel %vm7599_vm9, %v2398_v1, 0.0  ;;  %v2231_v57 = vadd.f32 %v2015_v13, %v7428_v50  ;;  %v2100_v48 = vrot.slane %v2015_v13, 2  ;;  %v2712_v40 = vld.sshfl [vmem:[#allocation1 + $0x20] sm:$0xff pattern:$0x73625140] }
 0x329   : > { %v2540_v9 = vsel %vm7599_vm9, %v2399_v59, 0.0  ;;  %2715 = vst [vmem:[#allocation1 + $0x2] ss:$4 sm:$0xff] %v2538_v46  ;;  %v2101_v54 = vrot.slane %v2015_v13, 6  ;;  %vm2452_vm11 = vcmp.ge.s32.totalorder %v2442_v35, 0  ;;  %v10031_v30 = vrot.slane %v7391_v56, 13 }
 0x32a   : > { %v10032_v10 = vrot.slane %v7449_v0, 2  ;;  %v2541_v50 = vsel %vm7599_vm9, %v2400_v31, 0.0  ;;  %2716 = vst [vmem:[#allocation1 + $0x3] ss:$4 sm:$0xff] %v2539_v32  ;;  %v2321_v33 = vadd.f32 %v6958_v24, %v2231_v57  ;;  %v1574_v29 = vsel %vm6589_vm10, %v7296_v62, %v7268_v42 }
 0x32b   : > { %2717 = vst [vmem:[#allocation1 + $0x20] ss:$4 sm:$0xff] %v2540_v9  ;;  %v2232_v1 = vadd.f32 %v2100_v48, %v7490_v22  ;;  %v2233_v59 = vadd.f32 %v2101_v54, %v1793_v3  ;;  %vm2462_vm12 = vcmp.lt.s32.totalorder %v2442_v35, 16  ;;  %v10033_v13 = vrot.slane %v7268_v42, 2  ;;  %v10036_v9 = vld [vmem:[#allocation18_spill] sm:$0xff] }
 0x32c   : > { %v7674_v47 = vsel %vm6589_vm10, %v10032_v10, %v10031_v30  ;;  %2718 = vst [vmem:[#allocation1 + $0x21] ss:$4 sm:$0xff] %v2541_v50  ;;  %v7691_v31 = vsel %vm7443_vm14, 0, %v2880_v49  ;;  %v2401_v32 = vmax.f32 %v2321_v33, 0.0  ;;  %v10034_v62 = vrot.slane %v7272_v45, 2  ;;  %vm7706_vm13 = vmand %vm2452_vm11, %vm2462_vm12 }
 0x32d   : > { %v1577_v46 = vsel %vm6589_vm10, %v10033_v13, %v7272_v45  ;;  %v10035_v3 = vrot.slane %v10017_v4, 6  ;;  %v2322_v42 = vadd.f32 %v6984_v26, %v2232_v1  ;;  %v2323_v11 = vadd.f32 %v7639_v25, %v2233_v59 }
 0x32e   : > { %v1580_v22 = vsel %vm6589_vm10, %v10034_v62, %v7274_v12  ;;  %v1795_v48 = vadd.f32 %v1574_v29, %v10036_v9  ;;  %v2791_v49 = vpack.c.bf16 %v7606_v60, %v7606_v60  ;;  %v2542_v45 = vsel %vm7599_vm9, %v2401_v32, 0.0 }
 0x32f   : > { %v1794_v57 = vadd.f32 %v1571_v6, %v10035_v3  ;;  %v10039_v4 = vrot.slane %v10036_v9, 2  ;;  %v2792_v30 = vpack.c.bf16 %v2712_v40, %v2712_v40  ;;  %v10040_v10 = vrot.slane %v7283_v51, 7  ;;  %2719 = vst [vmem:[#allocation1 + $0x22] ss:$4 sm:$0xff] %v2542_v45  ;;  %v2018_v59 = vpop.f32.mrf.mxu2  ;;  %3020 = vrot.lane.b32.xlu1 %v7691_v31, %s5634_s30 }
 0x330   : > { %v10041_v50 = vrot.slane %v7274_v12, 2  ;;  %v2402_v60 = vmax.f32 %v2322_v42, 0.0  ;;  %v2403_v35 = vmax.f32 %v2323_v11, 0.0  ;;  %v10042_v29 = vrot.slane %v10036_v9, 4 }
 0x331   : > { %v1796_v6 = vadd.f32 %v1577_v46, %v10039_v4  ;;  %v1586_v13 = vsel %vm6589_vm10, %v7351_v17, %v7334_v38  ;;  %v2102_v40 = vrot.slane %v2018_v59, 2  ;;  %v2103_v12 = vrot.slane %v2018_v59, 4  ;;  %v2721_v62 = vld.sshfl [vmem:[#allocation1] sm:$0xff pattern:$0x73625140] }
 0x332   : > { %v1583_v33 = vsel %vm6589_vm10, %v10041_v50, %v10040_v10  ;;  %v1797_v1 = vadd.f32 %v1580_v22, %v10042_v29  ;;  %v2104_v46 = vrot.slane %v2018_v59, 6  ;;  %v2234_v32 = vadd.f32 %v2018_v59, %v1794_v57 }
 0x333   : > { %v2543_v3 = vsel %vm7599_vm9, %v2402_v60, 0.0  ;;  %v2544_v22 = vsel %vm7706_vm13, %v2403_v35, 0.0  ;;  %v2831_v42 = vunpack.c.l.b16 %v2791_v49  ;;  %v2832_v11 = vunpack.c.l.b16 %v2792_v30 }
 0x334   : > { %2720 = vst [vmem:[#allocation1 + $0x23] ss:$4 sm:$0xff] %v2543_v3  ;;  %v2235_v45 = vadd.f32 %v2102_v40, %v1795_v48  ;;  %v2236_v4 = vadd.f32 %v2103_v12, %v1796_v6  ;;  %v2237_v17 = vadd.f32 %v2104_v46, %v1797_v1  ;;  %v2324_v10 = vadd.f32 %v6951_v16, %v2234_v32  ;;  %v10048_v32 = vld [vmem:[#allocation16_spill] sm:$0xff] }
 0x335   : > { %v1656_v50 = vrot.slane %v7630_v20, 2  ;;  %2723 = vst [vmem:[#allocation1] ss:$4 sm:$0xff] %v2544_v22  ;;  %v2847_v29 = vpack.c.b16 %v2832_v11, %v2831_v42  ;;  %v10043_v57 = vrot.slane %v7283_v51, 11  ;;  %v10045_v49 = vrot.slane %v7342_v61, 7 }
 0x336   : > { %v10046_v30 = vrot.slane %v7283_v51, 15  ;;  %v2325_v6 = vadd.f32 %v6958_v24, %v2235_v45  ;;  %v2326_v35 = vadd.f32 %v6984_v26, %v2236_v4  ;;  %v2327_v1 = vadd.f32 %v7639_v25, %v2237_v17 }
 0x337   : > { %v1589_v60 = vsel %vm6589_vm10, %v10044_v36, %v10043_v57  ;;  %v2404_v59 = vmax.f32 %v2324_v10, 0.0  ;;  %v1659_v40 = vrot.slane %v7649_v2, 2  ;;  %v2882_v38 = vshrl.u32 %v2847_v29, 16  ;;  %v2020_v17 = vpop.f32.mrf.mxu2  ;;  %2990 = vrot.lane.b32.xlu1 %v7691_v31, %s5633_s27 }
 0x338   : > { %v1593_v48 = vsel %vm6589_vm10, %v10046_v30, %v10045_v49  ;;  %v10047_v12 = vrot.slane %v10036_v9, 6  ;;  %v1799_v61 = vadd.f32 %v1586_v13, %v10048_v32  ;;  %v2405_v3 = vmax.f32 %v2325_v6, 0.0 }
 0x339   : > { %v2406_v51 = vmax.f32 %v2326_v35, 0.0  ;;  %v2407_v22 = vmax.f32 %v2327_v1, 0.0  ;;  %v2545_v42 = vsel %vm7706_vm13, %v2404_v59, 0.0  ;;  %v2884_v11 = vrot.slane %v2882_v38, 7 }
 0x33a   : > { %v1798_v46 = vadd.f32 %v1583_v33, %v10047_v12  ;;  %2724 = vst [vmem:[#allocation1 + $0x1] ss:$4 sm:$0xff] %v2545_v42  ;;  %v10049_v45 = vrot.slane %v10048_v32, 2  ;;  %v2885_v10 = vshll.u32 %v2847_v29, 16  ;;  %v1596_v9 = vsel %vm6589_vm10, %v7397_v18, %v7369_v53 }
 0x33b   : > { %v2546_v33 = vsel %vm7706_vm13, %v2405_v3, 0.0  ;;  %v2547_v13 = vsel %vm7706_vm13, %v2406_v51, 0.0  ;;  %v2548_v57 = vsel %vm7706_vm13, %v2407_v22, 0.0  ;;  %v2105_v36 = vrot.slane %v2020_v17, 2 }
 0x33c   : > { %v1800_v4 = vadd.f32 %v1589_v60, %v10049_v45  ;;  %v2722_v60 = vld.sshfl [vmem:[#allocation1 + $0x20] sm:$0xff pattern:$0x73625140]  ;;  %2725 = vst [vmem:[#allocation1 + $0x2] ss:$4 sm:$0xff] %v2546_v33  ;;  %v7771_v29 = vsel %vm7443_vm14, %v2884_v11, 0  ;;  %v2238_v18 = vadd.f32 %v2020_v17, %v1798_v46  ;;  %v2887_v38 = vor.u32 %v2885_v10, %v2884_v11 }
 0x33d   : > { %v10050_v49 = vrot.slane %v7369_v53, 2  ;;  %v10051_v6 = vrot.slane %v7378_v5, 2  ;;  %2726 = vst [vmem:[#allocation1 + $0x3] ss:$4 sm:$0xff] %v2547_v13  ;;  %3026 = vrot.lane.b32.xlu2 %v7771_v29, %s5634_s30  ;;  %v2106_v1 = vrot.slane %v2020_v17, 4  ;;  %v2239_v59 = vadd.f32 %v2105_v36, %v1799_v61  ;;  %v10053_v45 = vld [vmem:[#allocation20_spill] sm:$0xff] }
 0x33e   : > { %v10052_v12 = vrot.slane %v10048_v32, 6  ;;  %2727 = vst [vmem:[#allocation1 + $0x20] ss:$4 sm:$0xff] %v2548_v57  ;;  %v2328_v53 = vadd.f32 %v6951_v16, %v2238_v18  ;;  %v2443_v3 = vadd.s32 7, %v6937_v41  ;;  %v2793_v51 = vpack.c.bf16 %v2721_v62, %v2721_v62 }
 0x33f   : > { %v1599_v30 = vsel %vm6589_vm10, %v10050_v49, %v7378_v5  ;;  %v1602_v35 = vsel %vm6589_vm10, %v10051_v6, %v7380_v39  ;;  %v2794_v5 = vpack.c.bf16 %v2722_v60, %v2722_v60  ;;  %v2240_v22 = vadd.f32 %v2106_v1, %v1800_v4  ;;  %v2023_v49 = vpop.f32.mrf.mxu2  ;;  %2992 = vrot.lane.b32.xlu1 %v7655_v23, %s5633_s27 }
 0x340   : > { %v1801_v46 = vadd.f32 %v1593_v48, %v10052_v12  ;;  %v2329_v42 = vadd.f32 %v6958_v24, %v2239_v59  ;;  %v1802_v33 = vadd.f32 %v1596_v9, %v10053_v45  ;;  %v10054_v13 = vrot.slane %v10053_v45, 2 }
 0x341   : > { %v2408_v61 = vmax.f32 %v2328_v53, 0.0  ;;  %v2833_v11 = vunpack.c.l.b16 %v2793_v51  ;;  %v2834_v10 = vunpack.c.l.b16 %v2794_v5  ;;  %v10055_v48 = vrot.slane %v7391_v56, 7 }
 0x342   : > { %v1803_v17 = vadd.f32 %v1599_v30, %v10054_v13  ;;  %v10056_v32 = vrot.slane %v7380_v39, 2  ;;  %v2330_v62 = vadd.f32 %v6984_v26, %v2240_v22  ;;  %v2409_v4 = vmax.f32 %v2329_v42, 0.0  ;;  %v10058_v39 = vld [vmem:[#allocation15_spill] sm:$0xff]  ;;  %v10059_v30 = vld [vmem:[#allocation22_spill] sm:$0xff] }
 0x343   : > { %v7802_v36 = vsel %vm7443_vm14, 0, %v2887_v38  ;;  %v10057_v9 = vrot.slane %v10053_v45, 4  ;;  %v2549_v18 = vsel %vm7706_vm13, %v2408_v61, 0.0  ;;  %vm2453_vm15 = vcmp.ge.s32.totalorder %v2443_v3, 0 }
 0x344   : > { %v1605_v57 = vsel %vm6589_vm10, %v10056_v32, %v10055_v48  ;;  %v2848_v56 = vpack.c.b16 %v2834_v10, %v2833_v11  ;;  %v1608_v6 = vsel %vm6589_vm10, %v10059_v30, %v10058_v39  ;;  %v2410_v1 = vmax.f32 %v2330_v62, 0.0  ;;  %2728 = vst [vmem:[#allocation1 + $0x21] ss:$4 sm:$0xff] %v2549_v18  ;;  %v10062_v32 = vld [vmem:[#allocation21_spill] sm:$0xff] }
 0x345   : > { %v1804_v60 = vadd.f32 %v1602_v35, %v10057_v9  ;;  %v2550_v59 = vsel %vm7706_vm13, %v2409_v4, 0.0  ;;  %v2107_v35 = vrot.slane %v2023_v49, 2  ;;  %v2108_v38 = vrot.slane %v2023_v49, 4  ;;  %3024 = vrot.lane.b32.xlu2 %v7802_v36, %s5634_s30 }
 0x346   : > { %2729 = vst [vmem:[#allocation1 + $0x22] ss:$4 sm:$0xff] %v2550_v59  ;;  %v2109_v12 = vrot.slane %v2023_v49, 6  ;;  %v2241_v53 = vadd.f32 %v2023_v49, %v1801_v46  ;;  %vm2463_vm5 = vcmp.lt.s32.totalorder %v2443_v3, 16  ;;  %v10060_v51 = vrot.slane %v10058_v39, 2 }
 0x347   : > { %v2551_v22 = vsel %vm7706_vm13, %v2410_v1, 0.0  ;;  %v2242_v42 = vadd.f32 %v2107_v35, %v1802_v33  ;;  %v2243_v13 = vadd.f32 %v2108_v38, %v1803_v17  ;;  %v2889_v61 = vshrl.u32 %v2848_v56, 16  ;;  %vm7832_vm6 = vmand %vm2453_vm15, %vm2463_vm5  ;;  %v10068_v1 = vld [vmem:[#allocation11_spill] sm:$0xff]  ;;  %v2731_v38 = vld.sshfl [vmem:[#allocation1] sm:$0xff pattern:$0x73625140] }
 0x348   : > { %v1611_v5 = vsel %vm6589_vm10, %v10060_v51, %v7449_v0  ;;  %2730 = vst [vmem:[#allocation1 + $0x23] ss:$4 sm:$0xff] %v2551_v22  ;;  %v2244_v11 = vadd.f32 %v2109_v12, %v1804_v60  ;;  %v2331_v46 = vadd.f32 %v7639_v25, %v2241_v53  ;;  %v10061_v10 = vrot.slane %v10053_v45, 6  ;;  %v10070_v51 = vld [vmem:[#allocation19_spill] sm:$0xff] }
 0x349   : > { %v1806_v62 = vadd.f32 %v1608_v6, %v10062_v32  ;;  %v2332_v0 = vadd.f32 %v6951_v16, %v2242_v42  ;;  %v2333_v54 = vadd.f32 %v6958_v24, %v2243_v13  ;;  %v2891_v33 = vrot.slane %v2889_v61, 7  ;;  %v10067_v6 = vld [vmem:[#allocation24_spill] sm:$0xff] }
 0x34a   : > { %v1805_v48 = vadd.f32 %v1605_v57, %v10061_v10  ;;  %v10065_v17 = vrot.slane %v10062_v32, 2  ;;  %v2334_v60 = vadd.f32 %v6984_v26, %v2244_v11  ;;  %v2411_v18 = vmax.f32 %v2331_v46, 0.0 }
 0x34b   : > { %v10066_v45 = vrot.slane %v10062_v32, 4  ;;  %v2892_v49 = vshll.u32 %v2848_v56, 16  ;;  %v2412_v39 = vmax.f32 %v2332_v0, 0.0  ;;  %v2413_v30 = vmax.f32 %v2333_v54, 0.0  ;;  %v10072_v0 = vld [vmem:[#allocation26_spill] sm:$0xff] }
 0x34c   : > { %v1807_v9 = vadd.f32 %v1611_v5, %v10065_v17  ;;  %v7844_v3 = vsel %vm7443_vm14, %v2891_v33, 0  ;;  %v10069_v59 = vrot.slane %v10068_v1, 9  ;;  %v2414_v12 = vmax.f32 %v2334_v60, 0.0 }
 0x34d   : > { %v1808_v57 = vadd.f32 %v7674_v47, %v10066_v45  ;;  %v2552_v53 = vsel %vm7832_vm6, %v2411_v18, 0.0  ;;  %3030 = vrot.lane.b32.xlu0 %v7844_v3, %s5634_s30  ;;  %v2025_v47 = vpop.f32.mrf.mxu2  ;;  %v2894_v56 = vor.u32 %v2892_v49, %v2891_v33  ;;  %v10071_v5 = vrot.slane %v10067_v6, 2  ;;  %2994 = vrot.lane.b32.xlu2 %v7802_v36, %s5633_s27  ;;  %v10074_v45 = vld [vmem:[#allocation37_spill] sm:$0xff] }
 0x34e   : > { %v1618_v35 = vsel %vm6589_vm10, %v10069_v59, %v10067_v6  ;;  %v2553_v42 = vsel %vm7832_vm6, %v2412_v39, 0.0  ;;  %v2554_v13 = vsel %vm7832_vm6, %v2413_v30, 0.0  ;;  %2733 = vst [vmem:[#allocation1] ss:$4 sm:$0xff] %v2552_v53  ;;  %v2110_v61 = vrot.slane %v2025_v47, 2 }
 0x34f   : > { %v1621_v22 = vsel %vm6589_vm10, %v10071_v5, %v10070_v51  ;;  %v2111_v11 = vrot.slane %v2025_v47, 4  ;;  %v2555_v46 = vsel %vm7832_vm6, %v2414_v12, 0.0  ;;  %2734 = vst [vmem:[#allocation1 + $0x1] ss:$4 sm:$0xff] %v2553_v42  ;;  %v2112_v10 = vrot.slane %v2025_v47, 6 }
 0x350   : > { %v2245_v32 = vadd.f32 %v2025_v47, %v1805_v48  ;;  %v10073_v54 = vrot.slane %v10070_v51, 2  ;;  %v1660_v17 = vrot.slane %v7613_v52, 7  ;;  %2735 = vst [vmem:[#allocation1 + $0x2] ss:$4 sm:$0xff] %v2554_v13  ;;  %v2246_v60 = vadd.f32 %v2110_v61, %v1806_v62  ;;  %v10077_v51 = vld [vmem:[#allocation13_spill] sm:$0xff]  ;;  %v10078_v61 = vld [vmem:[#allocation14_spill] sm:$0xff] }
 0x351   : > { %v2247_v18 = vadd.f32 %v2111_v11, %v1807_v9  ;;  %v1809_v49 = vadd.f32 %v1618_v35, %v10074_v45  ;;  %v2732_v39 = vld.sshfl [vmem:[#allocation1 + $0x20] sm:$0xff pattern:$0x73625140]  ;;  %2736 = vst [vmem:[#allocation1 + $0x3] ss:$4 sm:$0xff] %v2555_v46  ;;  %v2248_v30 = vadd.f32 %v2112_v10, %v1808_v57  ;;  %v10075_v6 = vrot.slane %v10074_v45, 2 }
 0x352   : > { %v1624_v33 = vsel %vm6589_vm10, %v10073_v54, %v10072_v0  ;;  %v2335_v48 = vadd.f32 %v7639_v25, %v2245_v32  ;;  %v2444_v59 = vadd.s32 8, %v6937_v41  ;;  %v2336_v12 = vadd.f32 %v6951_v16, %v2246_v60 }
 0x353   : > { %v1810_v1 = vadd.f32 %v1621_v22, %v10075_v6  ;;  %v2337_v53 = vadd.f32 %v6958_v24, %v2247_v18  ;;  %v7883_v62 = vsel %vm7443_vm14, 0, %v2894_v56  ;;  %v10076_v9 = vrot.slane %v10074_v45, 4 }
 0x354   : > { %v2338_v57 = vadd.f32 %v6984_v26, %v2248_v30  ;;  %v2415_v47 = vmax.f32 %v2335_v48, 0.0  ;;  %v2783_v5 = vpack.c.bf16 %v10077_v51, %v10077_v51  ;;  %v2795_v22 = vpack.c.bf16 %v2731_v38, %v2731_v38 }
 0x355   : > { %v1811_v35 = vadd.f32 %v1624_v33, %v10076_v9  ;;  %v2416_v42 = vmax.f32 %v2336_v12, 0.0  ;;  %v2417_v13 = vmax.f32 %v2337_v53, 0.0  ;;  %v2784_v11 = vpack.c.bf16 %v10078_v61, %v10078_v61  ;;  %3028 = vrot.lane.b32.xlu0 %v7883_v62, %s5634_s30  ;;  %v2028_v32 = vpop.f32.mrf.mxu2  ;;  %2996 = vrot.lane.b32.xlu2 %v7771_v29, %s5633_s27 }
 0x356   : > { %v2796_v46 = vpack.c.bf16 %v2732_v39, %v2732_v39  ;;  %v2418_v10 = vmax.f32 %v2338_v57, 0.0  ;;  %v2556_v56 = vsel %vm7832_vm6, %v2415_v47, 0.0  ;;  %vm2454_vm7 = vcmp.ge.s32.totalorder %v2444_v59, 0 }
 0x357   : > { %v10079_v54 = vrot.slane %v7494_v37, 7  ;;  %v10080_v33 = vrot.slane %v10072_v0, 2  ;;  %v2557_v60 = vsel %vm7832_vm6, %v2416_v42, 0.0  ;;  %v2558_v18 = vsel %vm7832_vm6, %v2417_v13, 0.0  ;;  %2737 = vst [vmem:[#allocation1 + $0x20] ss:$4 sm:$0xff] %v2556_v56 }
 0x358   : > { %v2113_v39 = vrot.slane %v2028_v32, 2  ;;  %v2114_v30 = vrot.slane %v2028_v32, 4  ;;  %v2559_v48 = vsel %vm7832_vm6, %v2418_v10, 0.0  ;;  %2738 = vst [vmem:[#allocation1 + $0x21] ss:$4 sm:$0xff] %v2557_v60  ;;  %v2115_v6 = vrot.slane %v2028_v32, 6 }
 0x359   : > { %v1627_v38 = vsel %vm6589_vm10, %v10080_v33, %v10079_v54  ;;  %v2835_v37 = vunpack.c.l.b16 %v2795_v22  ;;  %v2836_v12 = vunpack.c.l.b16 %v2796_v46  ;;  %2739 = vst [vmem:[#allocation1 + $0x22] ss:$4 sm:$0xff] %v2558_v18  ;;  %vm2464_vm8 = vcmp.lt.s32.totalorder %v2444_v59, 16  ;;  %v10086_v54 = vld [vmem:[#allocation50_spill] sm:$0xff] }
 0x35a   : > { %v2249_v0 = vadd.f32 %v2113_v39, %v1809_v49  ;;  %v2250_v53 = vadd.f32 %v2114_v30, %v1810_v1  ;;  %v2824_v9 = vunpack.c.l.b16 %v2784_v11  ;;  %2740 = vst [vmem:[#allocation1 + $0x23] ss:$4 sm:$0xff] %v2559_v48  ;;  %v2251_v57 = vadd.f32 %v2115_v6, %v1811_v35  ;;  %vm7931_vm9 = vmand %vm2454_vm7, %vm2464_vm8  ;;  %v2741_v18 = vld.sshfl [vmem:[#allocation1] sm:$0xff pattern:$0x73625140] }
 0x35b   : > { %v2849_v47 = vpack.c.b16 %v2836_v12, %v2835_v37  ;;  %v1630_v4 = vsel %vm6589_vm10, %v7547_v8, %v7527_v15  ;;  %v10081_v22 = vrot.slane %v7527_v15, 2  ;;  %v10082_v1 = vrot.slane %v7540_v63, 2 }
 0x35c   : > { %v2339_v13 = vadd.f32 %v7639_v25, %v2249_v0  ;;  %v2340_v49 = vadd.f32 %v6951_v16, %v2250_v53  ;;  %v7927_v61 = vadd.s32 9, %v6937_v41  ;;  %v2341_v8 = vadd.f32 %v6958_v24, %v2251_v57 }
 0x35d   : > { %v1633_v42 = vsel %vm6589_vm10, %v10081_v22, %v7540_v63  ;;  %v1636_v35 = vsel %vm6589_vm10, %v10082_v1, %v7549_v43  ;;  %v2896_v11 = vshrl.u32 %v2849_v47, 16  ;;  %v2899_v46 = vshll.u32 %v2849_v47, 16  ;;  %2998 = vrot.lane.b32.xlu0 %v7883_v62, %s5633_s27  ;;  %v2030_v6 = vpop.f32.mrf.mxu2 }
 0x35e   : > { %v10085_v10 = vrot.slane %v10074_v45, 6  ;;  %v2419_v32 = vmax.f32 %v2339_v13, 0.0  ;;  %v2420_v63 = vmax.f32 %v2340_v49, 0.0  ;;  %v1813_v33 = vadd.f32 %v1630_v4, %v10086_v54 }
 0x35f   : > { %v10087_v60 = vrot.slane %v10086_v54, 2  ;;  %v2421_v39 = vmax.f32 %v2341_v8, 0.0  ;;  %v7942_v59 = vrot.slane %v2896_v11, 7  ;;  %v10088_v30 = vrot.slane %v10086_v54, 4 }
 0x360   : > { %v1812_v56 = vadd.f32 %v1627_v38, %v10085_v10  ;;  %v10089_v45 = vrot.slane %v7533_v58, 7  ;;  %v10090_v38 = vrot.slane %v7549_v43, 2  ;;  %v2560_v12 = vsel %vm7931_vm9, %v2419_v32, 0.0 }
 0x361   : > { %v1814_v41 = vadd.f32 %v1633_v42, %v10087_v60  ;;  %v1815_v48 = vadd.f32 %v1636_v35, %v10088_v30  ;;  %v2561_v0 = vsel %vm7931_vm9, %v2420_v63, 0.0  ;;  %v2116_v53 = vrot.slane %v2030_v6, 2  ;;  %2743 = vst [vmem:[#allocation1] ss:$4 sm:$0xff] %v2560_v12  ;;  %v10093_v63 = vld [vmem:[#allocation51_spill] sm:$0xff] }
 0x362   : > { %v1639_v37 = vsel %vm6589_vm10, %v10090_v38, %v10089_v45  ;;  %v2117_v57 = vrot.slane %v2030_v6, 4  ;;  %v2562_v47 = vsel %vm7931_vm9, %v2421_v39, 0.0  ;;  %v2901_v4 = vor.u32 %v2899_v46, %v7942_v59  ;;  %2744 = vst [vmem:[#allocation1 + $0x1] ss:$4 sm:$0xff] %v2561_v0 }
 0x363   : > { %v2118_v22 = vrot.slane %v2030_v6, 6  ;;  %v2252_v42 = vadd.f32 %v2030_v6, %v1812_v56  ;;  %v2253_v43 = vadd.f32 %v2116_v53, %v1813_v33  ;;  %v10091_v49 = vrot.slane %v7533_v58, 11  ;;  %2745 = vst [vmem:[#allocation1 + $0x2] ss:$4 sm:$0xff] %v2562_v47 }
 0x364   : > { %v2254_v13 = vadd.f32 %v2117_v57, %v1814_v41  ;;  %v10092_v35 = vrot.slane %v7573_v19, 2  ;;  %v2823_v11 = vunpack.c.l.b16 %v2783_v5  ;;  %v7974_v46 = vsel %vm7443_vm14, 0, %v2901_v4  ;;  %v2742_v56 = vld.sshfl [vmem:[#allocation1 + $0x20] sm:$0xff pattern:$0x73625140] }
 0x365   : > { %v1643_v1 = vsel %vm6589_vm10, %v10091_v49, %v7573_v19  ;;  %v2255_v10 = vadd.f32 %v2118_v22, %v1815_v48  ;;  %v2342_v58 = vadd.f32 %v6984_v26, %v2252_v42  ;;  %3032 = vrot.lane.b32.xlu1 %v7974_v46, %s5634_s30  ;;  %v2343_v19 = vadd.f32 %v7639_v25, %v2253_v43  ;;  %v2033_v57 = vpop.f32.mrf.mxu2 }
 0x366   : > { %v1646_v8 = vsel %vm6589_vm10, %v10092_v35, %v7581_v44  ;;  %v2344_v32 = vadd.f32 %v6951_v16, %v2254_v13  ;;  %v10094_v33 = vrot.slane %v10093_v63, 2  ;;  %v10095_v51 = vrot.slane %v10093_v63, 4  ;;  %3000 = vrot.lane.b32.xlu0 %v7844_v3, %s5633_s27 }
 0x367   : > { %v5317_v41 = vrot.slane %v7613_v52, 9  ;;  %v7986_v39 = vpack.c.b16 %v2824_v9, %v2823_v11  ;;  %v2345_v30 = vadd.f32 %v6958_v24, %v2255_v10  ;;  %v2422_v48 = vmax.f32 %v2342_v58, 0.0 }
 0x368   : > { %v1817_v60 = vadd.f32 %v1643_v1, %v10094_v33  ;;  %v1818_v5 = vadd.f32 %v1646_v8, %v10095_v51  ;;  %v2423_v6 = vmax.f32 %v2343_v19, 0.0  ;;  %v2424_v45 = vmax.f32 %v2344_v32, 0.0 }
 0x369   : > { %v10096_v38 = vrot.slane %v10086_v54, 6  ;;  %vm2455_vm11 = vcmp.ge.s32.totalorder %v7927_v61, 0  ;;  %v2425_v0 = vmax.f32 %v2345_v30, 0.0  ;;  %v2563_v53 = vsel %vm7931_vm9, %v2422_v48, 0.0 }
 0x36a   : > { %v2797_v9 = vpack.c.bf16 %v2741_v18, %v2741_v18  ;;  %v2798_v47 = vpack.c.bf16 %v2742_v56, %v2742_v56  ;;  %v2564_v4 = vsel %vm7931_vm9, %v2423_v6, 0.0  ;;  %v2565_v22 = vsel %vm7931_vm9, %v2424_v45, 0.0  ;;  %2746 = vst [vmem:[#allocation1 + $0x3] ss:$4 sm:$0xff] %v2563_v53 }
 0x36b   : > { %v1816_v12 = vadd.f32 %v1639_v37, %v10096_v38  ;;  %v2119_v54 = vrot.slane %v2033_v57, 4  ;;  %v2120_v37 = vrot.slane %v2033_v57, 6  ;;  %v2566_v42 = vsel %vm7931_vm9, %v2425_v0, 0.0  ;;  %2747 = vst [vmem:[#allocation1 + $0x20] ss:$4 sm:$0xff] %v2564_v4 }
 0x36c   : > { %v2837_v13 = vunpack.c.l.b16 %v2797_v9  ;;  %v2838_v49 = vunpack.c.l.b16 %v2798_v47  ;;  %2748 = vst [vmem:[#allocation1 + $0x21] ss:$4 sm:$0xff] %v2565_v22  ;;  %vm2465_vm12 = vcmp.lt.s32.totalorder %v7927_v61, 16  ;;  %v10097_v35 = vrot.slane %v7575_v14, 7 }
 0x36d   : > { %v2256_v43 = vadd.f32 %v2033_v57, %v1816_v12  ;;  %v2257_v1 = vadd.f32 %v2119_v54, %v1817_v60  ;;  %v2258_v18 = vadd.f32 %v2120_v37, %v1818_v5  ;;  %v10098_v8 = vrot.slane %v7581_v44, 2  ;;  %2749 = vst [vmem:[#allocation1 + $0x22] ss:$4 sm:$0xff] %v2566_v42  ;;  %3002 = vrot.lane.b32.xlu1 %v7974_v46, %s5633_s27  ;;  %vm8030_vm13 = vmand %vm2455_vm11, %vm2465_vm12  ;;  %v2035_v53 = vpop.f32.mrf.mxu2 }
 0x36e   : > { %v1662_v10 = vrot.slane %v1660_v17, 2  ;;  %v2850_v56 = vpack.c.b16 %v2838_v49, %v2837_v13  ;;  %v1652_v19 = vsel %vm6589_vm10, %v7628_v21, %v7622_v55  ;;  %v1655_v32 = vsel %vm6589_vm10, %v1653_v7, %v7630_v20 }
 0x36f   : > { %v1649_v11 = vsel %vm6589_vm10, %v10098_v8, %v10097_v35  ;;  %v2346_v58 = vadd.f32 %v6984_v26, %v2256_v43  ;;  %v2347_v14 = vadd.f32 %v7639_v25, %v2257_v1  ;;  %v2348_v44 = vadd.f32 %v6951_v16, %v2258_v18 }
 0x370   : > { %v10099_v33 = vrot.slane %v10093_v63, 6  ;;  %v2854_v51 = vshrl.u32 %v7986_v39, 16  ;;  %v2903_v30 = vshrl.u32 %v2850_v56, 16  ;;  %v1658_v55 = vsel %vm6589_vm10, %v1656_v50, %v7649_v2  ;;  %v10102_v63 = vld [vmem:[#allocation52_spill] sm:$0xff] }
 0x371   : > { %v2426_v5 = vmax.f32 %v2346_v58, 0.0  ;;  %v2427_v7 = vmax.f32 %v2347_v14, 0.0  ;;  %v2428_v48 = vmax.f32 %v2348_v44, 0.0  ;;  %v1820_v6 = vadd.f32 %v1652_v19, %v10102_v63  ;;  %v2751_v45 = vld.sshfl [vmem:[#allocation1] sm:$0xff pattern:$0x73625140]  ;;  %v8084_v14 = vpop.permute.xlu2 %2984 }
 0x372   : > { %v1819_v60 = vadd.f32 %v1649_v11, %v10099_v33  ;;  %v1661_v61 = vsel %vm6589_vm10, %v1659_v40, %v1660_v17  ;;  %v8048_v12 = vrot.slane %v2903_v30, 7  ;;  %v2906_v20 = vshll.u32 %v2850_v56, 16  ;;  %v10105_v56 = vld [vmem:[#allocation46_spill] sm:$0xff] }
 0x373   : > { %v2567_v38 = vsel %vm7931_vm9, %v2426_v5, 0.0  ;;  %v10103_v50 = vrot.slane %v10102_v63, 2  ;;  %v2568_v57 = vsel %vm8030_vm13, %v2427_v7, 0.0  ;;  %v2569_v2 = vsel %vm8030_vm13, %v2428_v48, 0.0 }
 0x374   : > { %2750 = vst [vmem:[#allocation1 + $0x23] ss:$4 sm:$0xff] %v2567_v38  ;;  %v2121_v9 = vrot.slane %v2035_v53, 2  ;;  %v2122_v40 = vrot.slane %v2035_v53, 4  ;;  %v2908_v17 = vor.u32 %v2906_v20, %v8048_v12  ;;  %v10104_v15 = vrot.slane %v10102_v63, 4 }
 0x375   : > { %v1821_v0 = vadd.f32 %v1655_v32, %v10103_v50  ;;  %2753 = vst [vmem:[#allocation1] ss:$4 sm:$0xff] %v2568_v57  ;;  %v2123_v4 = vrot.slane %v2035_v53, 6  ;;  %v2259_v22 = vadd.f32 %v2035_v53, %v1819_v60  ;;  %v1664_v54 = vsel %vm6589_vm10, %v1662_v10, %v5317_v41 }
 0x376   : > { %v1822_v47 = vadd.f32 %v1658_v55, %v10104_v15  ;;  %2754 = vst [vmem:[#allocation1 + $0x1] ss:$4 sm:$0xff] %v2569_v2  ;;  %v2260_v37 = vadd.f32 %v2121_v9, %v1820_v6  ;;  %v8066_v43 = vsel %vm7443_vm14, %v7942_v59, 0  ;;  %v8070_v13 = vsel %vm7443_vm14, 0, %v2908_v17 }
 0x377   : > { %v2261_v42 = vadd.f32 %v2122_v40, %v1821_v0  ;;  %v2349_v1 = vadd.f32 %v6958_v24, %v2259_v22  ;;  %3034 = vrot.lane.b32.xlu1 %v8066_v43, %s5634_s30  ;;  %3036 = vrot.lane.b32.xlu2 %v8070_v13, %s5634_s30  ;;  %v1040_v59 = vrot.slane %v10102_v63, 6  ;;  %v8080_v18 = vrot.slane %v2854_v51, 7  ;;  %v3194_v63 = vld [vmem:[%s9639_s3 + $0x8] sm:$0xf]  ;;  %v2983_v40 = vpop.permute.xlu1 %2982 }
 0x378   : > { %v2262_v49 = vadd.f32 %v2123_v4, %v1822_v47  ;;  %v2350_v52 = vadd.f32 %v6984_v26, %v2260_v37  ;;  %v1824_v19 = vadd.f32 %v1664_v54, %v10105_v56  ;;  %v2857_v60 = vshll.u32 %v7986_v39, 16 }
 0x379   : > { %v2351_v41 = vadd.f32 %v7639_v25, %v2261_v42  ;;  %v2429_v8 = vmax.f32 %v2349_v1, 0.0  ;;  %v1823_v58 = vadd.f32 %v1661_v61, %v1040_v59  ;;  %v2038_v25 = vpop.f32.mrf.mxu2  ;;  %v2799_v51 = vpack.c.bf16 %v2751_v45, %v2751_v45  ;;  %v3017_v15 = vpop.permute.xlu2 %3016 }
 0x37a   : > { %v2352_v35 = vadd.f32 %v6951_v16, %v2262_v49  ;;  %v2430_v11 = vmax.f32 %v2350_v52, 0.0  ;;  %v2124_v30 = vrot.slane %v2038_v25, 2  ;;  %v2859_v61 = vor.u32 %v2857_v60, %v8080_v18 }
 0x37b   : > { %v2431_v10 = vmax.f32 %v2351_v41, 0.0  ;;  %v2752_v44 = vld.sshfl [vmem:[#allocation1 + $0x20] sm:$0xff pattern:$0x73625140]  ;;  %v2570_v33 = vsel %vm8030_vm13, %v2429_v8, 0.0  ;;  %v2263_v55 = vadd.f32 %v2038_v25, %v1823_v58  ;;  %v3344_v45 = vunpack.c.l.b16 %v3194_v63 }
 0x37c   : > { %v2432_v32 = vmax.f32 %v2352_v35, 0.0  ;;  %v2571_v16 = vsel %vm8030_vm13, %v2430_v11, 0.0  ;;  %2755 = vst [vmem:[#allocation1 + $0x2] ss:$4 sm:$0xff] %v2570_v33  ;;  %v2800_v48 = vpack.c.bf16 %v2752_v44, %v2752_v44  ;;  %v2264_v39 = vadd.f32 %v2124_v30, %v1824_v19 }
 0x37d   : > { %v2572_v5 = vsel %vm8030_vm13, %v2431_v10, 0.0  ;;  %2756 = vst [vmem:[#allocation1 + $0x3] ss:$4 sm:$0xff] %v2571_v16  ;;  %v2353_v6 = vadd.f32 %v6958_v24, %v2263_v55  ;;  %v2839_v38 = vunpack.c.l.b16 %v2799_v51  ;;  %v3346_v53 = vpack.c.b16 %v3344_v45, %v3344_v45 }
 0x37e   : > { %v2573_v7 = vsel %vm8030_vm13, %v2432_v32, 0.0  ;;  %2757 = vst [vmem:[#allocation1 + $0x20] ss:$4 sm:$0xff] %v2572_v5  ;;  %v2840_v20 = vunpack.c.l.b16 %v2800_v48  ;;  %v2354_v50 = vadd.f32 %v6984_v26, %v2264_v39  ;;  %v2946_v9 = vsel %vm7443_vm14, 0, %v2859_v61  ;;  %v5411_v26 = vld [vmem:[%s9639_s3] sm:$0xff] }
 0x37f   : > { %2758 = vst [vmem:[#allocation1 + $0x21] ss:$4 sm:$0xff] %v2573_v7  ;;  %3004 = vrot.lane.b32.xlu1 %v8066_v43, %s5633_s27  ;;  %3006 = vrot.lane.b32.xlu2 %v8070_v13, %s5633_s27  ;;  %v2433_v0 = vmax.f32 %v2353_v6, 0.0  ;;  %v3367_v17 = vsel %vm887_vm0, %v3346_v53, 0  ;;  %v3050_v47 = vsel %vm489_vm1, %v2946_v9, %v2983_v40  ;;  %v8126_v41 = vsel %vm7443_vm14, %v8048_v12, 0 }
 0x380   : > { %v2851_v57 = vpack.c.b16 %v2840_v20, %v2839_v38  ;;  %v2434_v2 = vmax.f32 %v2354_v50, 0.0  ;;  %3375 = vmatpush.bf16.msra.mxu2 %v3367_v17  ;;  %5418 = vmatpush.bf16.msra.mxu3 %v3367_v17  ;;  %v8117_v42 = vsel %vm550_vm2, %v3050_v47, %v3017_v15  ;;  %v2956_v48 = vsel %vm7443_vm14, %v8080_v18, 0  ;;  %v10106_v20 = vld [vmem:[#allocation17_spill] sm:$0xff] }
 0x381   : > { %v2574_v24 = vsel %vm8030_vm13, %v2433_v0, 0.0  ;;  %v2040_v4 = vpop.f32.mrf.mxu2  ;;  %v8120_v49 = vrot.slane %v8117_v42, 4  ;;  %v8135_v11 = vrot.slane %v8117_v42, 1  ;;  %v8138_v12 = vrot.slane %v8117_v42, 2 }
 0x382   : > { %2759 = vst [vmem:[#allocation1 + $0x22] ss:$4 sm:$0xff] %v2574_v24  ;;  %v2910_v22 = vshrl.u32 %v2851_v57, 16  ;;  %v2575_v37 = vsel %vm8030_vm13, %v2434_v2, 0.0  ;;  %v2913_v52 = vshll.u32 %v2851_v57, 16  ;;  %v8142_v58 = vrot.slane %v8117_v42, 3 }
 0x383   : > { %2760 = vst [vmem:[#allocation1 + $0x23] ss:$4 sm:$0xff] %v2575_v37  ;;  %v8146_v56 = vrot.slane %v8117_v42, 5  ;;  %v8152_v33 = vrot.slane %v8117_v42, 6  ;;  %v8157_v25 = vrot.slane %v8117_v42, 7  ;;  %v3053_v63 = vsel %vm489_vm1, %v2956_v48, %v8084_v14 }
 0x384   : > { %v2761_v54 = vld.sshfl [vmem:[#allocation1] sm:$0xff pattern:$0x73625140]  ;;  %v2912_v1 = vrot.slane %v2910_v22, 7  ;;  %3376 = vmatpush.bf16.msra.mxu2 %v5411_v26  ;;  %5419 = vmatpush.bf16.msra.mxu3 %v5411_v26  ;;  %v10107_v26 = vld [vmem:[#allocation12_spill] sm:$0xff]  ;;  %vm5137_vm15 = vcmask 392192  }
 0x385   : > { %3207 = vst [vmem:[#allocation1 + $0x4] ss:$9 sm:$0xff] %v8120_v49  ;;  %v2801_v35 = vpack.c.bf16 %v2761_v54, %v2761_v54  ;;  %vm5139_vm5 = vcmask 457728   ;;  %vm5141_vm6 = vcmask 523264   ;;  %vm5145_vm7 = vcmask 654336  }
 0x386   : > { %v2915_v21 = vor.u32 %v2913_v52, %v2912_v1  ;;  %v2964_v19 = vsel %vm7443_vm14, %v2912_v1, 0  ;;  %vm5151_vm8 = vcmask 850944   ;;  %vm5153_vm9 = vcmask 916480  }
 0x387   : > { %3038 = vrot.lane.b32.xlu2 %v8126_v41, %s5634_s30  ;;  %v2841_v44 = vunpack.c.l.b16 %v2801_v35  ;;  %vm5155_vm11 = vcmask 982016  }
 0x388   : > { %v2954_v59 = vsel %vm7443_vm14, 0, %v2915_v21 }
 0x389   : > { %3010 = vrot.lane.b32.xlu1 %v2954_v59, %s5633_s27  ;;  %3040 = vrot.lane.b32.xlu0 %v2954_v59, %s5634_s30 }
 0x38a   : > { %v2762_v8 = vld.sshfl [vmem:[#allocation1 + $0x20] sm:$0xff pattern:$0x73625140]  ;;  %v3019_v30 = vpop.permute.xlu0 %3018 }
 0x38b   : > { %3195 = vst [vmem:[#allocation1] ss:$9 sm:$0xff] %v8117_v42  ;;  %v2802_v10 = vpack.c.bf16 %v2762_v8, %v2762_v8  ;;  %v8176_v61 = vsel %vm550_vm2, %v3053_v63, %v3019_v30 }
 0x38c   : > { %3198 = vst [vmem:[#allocation1 + $0x1] ss:$9 sm:$0xff] %v8135_v11 }
 0x38d   : > { %3201 = vst [vmem:[#allocation1 + $0x2] ss:$9 sm:$0xff] %v8138_v12  ;;  %v2842_v32 = vunpack.c.l.b16 %v2802_v10 }
 0x38e   : > { %3204 = vst [vmem:[#allocation1 + $0x3] ss:$9 sm:$0xff] %v8142_v58 }
 0x38f   : > { %3042 = vrot.lane.b32.xlu2 %v2964_v19, %s5634_s30  ;;  %3210 = vst [vmem:[#allocation1 + $0x5] ss:$9 sm:$0xff] %v8146_v56  ;;  %v2852_v60 = vpack.c.b16 %v2842_v32, %v2841_v44  ;;  %v10108_v32 = vld [vmem:[#allocation23_spill] sm:$0xff] }
 0x390   : > { %3213 = vst [vmem:[#allocation1 + $0x6] ss:$9 sm:$0xff] %v8152_v33 }
 0x391   : > { %3216 = vst [vmem:[#allocation1 + $0x7] ss:$9 sm:$0xff] %v8157_v25  ;;  %3012 = vrot.lane.b32.xlu1 %v2964_v19, %s5633_s27  ;;  %3008 = vrot.lane.b32.xlu0 %v8126_v41, %s5633_s27  ;;  %v2917_v51 = vshrl.u32 %v2852_v60, 16  ;;  %v2920_v5 = vshll.u32 %v2852_v60, 16 }
 0x392   : > { %v2989_v45 = vpop.permute.xlu0 %2988 }
 0x393   : > { %v2919_v16 = vrot.slane %v2917_v51, 7  ;;  %v3059_v54 = vsel %vm489_vm1, %v10107_v26, %v2989_v45 }
 0x395   : > { %v2965_v55 = vsel %vm7443_vm14, %v2919_v16, 0  ;;  %v2922_v7 = vor.u32 %v2920_v5, %v2919_v16 }
 0x397   : > { %3046 = vrot.lane.b32.xlu2 %v2965_v55, %s5634_s30  ;;  %v2955_v39 = vsel %vm7443_vm14, 0, %v2922_v7  ;;  %v3027_v0 = vpop.permute.xlu2 %3026  ;;  %vm4846_vm14 = vcmask 1047556  }
 0x398   : > { %v3217_v6 = vld [vmem:[#allocation1] sm:$0xff] }
 0x399   : > { %3218 = vst [vmem:[#allocation1] ss:$9 sm:$0xff] %v8176_v61  ;;  %5342 = vmatmul.msk.bf16.vlgmr.msra.gmra.mxu2 %vm862_vm3, %v3217_v6  ;;  %3044 = vrot.lane.b32.xlu0 %v2955_v39, %s5634_s30  ;;  %v3023_v18 = vpop.permute.xlu1 %3022 }
 0x39a   : > { %v2987_v38 = vpop.permute.xlu0 %2986  ;;  %v8225_v52 = vsel %vm550_vm2, %v3059_v54, %v3023_v18 }
 0x39b   : > { %v3056_v50 = vsel %vm489_vm1, %v10106_v20, %v2987_v38 }
 0x39f   : > { %v3025_v47 = vpop.permute.xlu2 %3024 }
 0x3a1   : > { %v3021_v14 = vpop.permute.xlu1 %3020 }
 0x3a2   : > { %v8184_v27 = vsel %vm550_vm2, %v3056_v50, %v3021_v14 }
 0x3a3   : > { %v8187_v53 = vrot.slane %v8184_v27, 1  ;;  %v8190_v57 = vrot.slane %v8184_v27, 2  ;;  %v8193_v2 = vrot.slane %v8184_v27, 3  ;;  %3219 = vst [vmem:[#allocation1 + $0x1] ss:$9 sm:$0xff] %v8184_v27  ;;  %v8197_v24 = vrot.slane %v8184_v27, 4 }
 0x3a4   : > { %v8200_v9 = vrot.slane %v8184_v27, 5  ;;  %v8204_v40 = vrot.slane %v8184_v27, 6  ;;  %v8217_v22 = vrot.slane %v8184_v27, 7 }
 0x3a5   : > { %3221 = vst [vmem:[#allocation1 + $0x2] ss:$9 sm:$0xff] %v8187_v53 }
 0x3a6   : > { %3223 = vst [vmem:[#allocation1 + $0x3] ss:$9 sm:$0xff] %v8190_v57 }
 0x3a7   : > { %3225 = vst [vmem:[#allocation1 + $0x4] ss:$9 sm:$0xff] %v8193_v2  ;;  %v2995_v19 = vpop.permute.xlu2 %2994 }
 0x3a8   : > { %3227 = vst [vmem:[#allocation1 + $0x5] ss:$9 sm:$0xff] %v8197_v24  ;;  %v3068_v51 = vsel %vm489_vm1, %v7691_v31, %v2995_v19 }
 0x3a9   : > { %3229 = vst [vmem:[#allocation1 + $0x6] ss:$9 sm:$0xff] %v8200_v9  ;;  %v2991_v17 = vpop.permute.xlu1 %2990 }
 0x3aa   : > { %3231 = vst [vmem:[#allocation1 + $0x7] ss:$9 sm:$0xff] %v8204_v40  ;;  %v3062_v15 = vsel %vm489_vm1, %v7579_v34, %v2991_v17 }
 0x3ab   : > { %v8214_v4 = vsel %vm550_vm2, %v3062_v15, %v3025_v47 }
 0x3ac   : > { %v8222_v1 = vrot.slane %v8214_v4, 1  ;;  %v8229_v34 = vrot.slane %v8214_v4, 2  ;;  %v8234_v21 = vrot.slane %v8214_v4, 3  ;;  %v8237_v59 = vrot.slane %v8214_v4, 4 }
 0x3ad   : > { %v8241_v35 = vrot.slane %v8214_v4, 5  ;;  %v8249_v44 = vrot.slane %v8214_v4, 6  ;;  %v8256_v16 = vrot.slane %v8214_v4, 7 }
 0x3af   : > { %v2997_v38 = vpop.permute.xlu2 %2996 }
 0x3b1   : > { %v3232_v37 = vld [vmem:[#allocation1] sm:$0xff]  ;;  %v2993_v10 = vpop.permute.xlu1 %2992 }
 0x3b2   : > { %3234 = vst [vmem:[#allocation1] ss:$9 sm:$0xff] %v8217_v22  ;;  %5343 = vmatmul.msk.bf16.gmra.mxu2 %vm862_vm3, %v3232_v37  ;;  %v3065_v60 = vsel %vm489_vm1, %v10108_v32, %v2993_v10 }
 0x3b3   : > { %3235 = vst [vmem:[#allocation1 + $0x1] ss:$9 sm:$0xff] %v8225_v52  ;;  %v8265_v7 = vsel %vm550_vm2, %v3065_v60, %v3027_v0 }
 0x3b4   : > { %3236 = vst [vmem:[#allocation1 + $0x2] ss:$9 sm:$0xff] %v8214_v4 }
 0x3b5   : > { %3238 = vst [vmem:[#allocation1 + $0x3] ss:$9 sm:$0xff] %v8222_v1 }
 0x3b6   : > { %3240 = vst [vmem:[#allocation1 + $0x4] ss:$9 sm:$0xff] %v8229_v34 }
 0x3b7   : > { %3242 = vst [vmem:[#allocation1 + $0x5] ss:$9 sm:$0xff] %v8234_v21 }
 0x3b8   : > { %3244 = vst [vmem:[#allocation1 + $0x6] ss:$9 sm:$0xff] %v8237_v59 }
 0x3b9   : > { %3246 = vst [vmem:[#allocation1 + $0x7] ss:$9 sm:$0xff] %v8241_v35 }
 0x3bf   : > { %v3031_v8 = vpop.permute.xlu0 %3030 }
 0x3c0   : > { %v3247_v5 = vld [vmem:[#allocation1] sm:$0xff] }
 0x3c1   : > { %3249 = vst [vmem:[#allocation1] ss:$9 sm:$0xff] %v8249_v44  ;;  %5344 = vmatmul.msk.bf16.vlgmr.msra.gmra.mxu3 %vm862_vm3, %v3247_v5 }
 0x3c2   : > { %3251 = vst [vmem:[#allocation1 + $0x1] ss:$9 sm:$0xff] %v8256_v16 }
 0x3c3   : > { %3252 = vst [vmem:[#allocation1 + $0x2] ss:$9 sm:$0xff] %v8265_v7 }
 0x3c7   : > { %v3029_v30 = vpop.permute.xlu0 %3028 }
 0x3c8   : > { %v8261_v55 = vsel %vm550_vm2, %v3068_v51, %v3029_v30 }
 0x3c9   : > { %v8268_v48 = vrot.slane %v8261_v55, 1  ;;  %v8271_v31 = vrot.slane %v8261_v55, 2  ;;  %v8275_v63 = vrot.slane %v8261_v55, 3  ;;  %v8278_v39 = vrot.slane %v8261_v55, 4  ;;  %3253 = vst [vmem:[#allocation1 + $0x3] ss:$9 sm:$0xff] %v8261_v55 }
 0x3ca   : > { %v8288_v20 = vrot.slane %v8261_v55, 5  ;;  %v8294_v14 = vrot.slane %v8261_v55, 6  ;;  %v8297_v17 = vrot.slane %v8261_v55, 7 }
 0x3cb   : > { %3255 = vst [vmem:[#allocation1 + $0x4] ss:$9 sm:$0xff] %v8268_v48 }
 0x3cc   : > { %3257 = vst [vmem:[#allocation1 + $0x5] ss:$9 sm:$0xff] %v8271_v31 }
 0x3cd   : > { %3259 = vst [vmem:[#allocation1 + $0x6] ss:$9 sm:$0xff] %v8275_v63 }
 0x3ce   : > { %3261 = vst [vmem:[#allocation1 + $0x7] ss:$9 sm:$0xff] %v8278_v39 }
 0x3cf   : > { %v2999_v6 = vpop.permute.xlu0 %2998 }
 0x3d0   : > { %v3074_v45 = vsel %vm489_vm1, %v7802_v36, %v2999_v6  ;;  %v3071_v36 = vsel %vm489_vm1, %v7655_v23, %v2997_v38  ;;  %v5353_v23 = vld [vmem:[%s9639_s3 + $0x14] sm:$0xf] }
 0x3d1   : > { %v8308_v47 = vsel %vm550_vm2, %v3071_v36, %v3031_v8  ;;  %v3634_v37 = vunpack.c.l.b16 %v5353_v23  ;;  %v3037_v60 = vpop.permute.xlu2 %3036 }
 0x3d3   : > { %v3636_v10 = vpack.c.b16 %v3634_v37, %v3634_v37  ;;  %v5389_v37 = vld [vmem:[%s9639_s3 + $0x20] sm:$0xf] }
 0x3d5   : > { %v3262_v0 = vld [vmem:[#allocation1] sm:$0xff]  ;;  %v3657_v19 = vsel %vm887_vm0, %v3636_v10, 0  ;;  %v4210_v10 = vunpack.c.l.b16 %v5389_v37 }
 0x3d6   : > { %3264 = vst [vmem:[#allocation1] ss:$9 sm:$0xff] %v8288_v20  ;;  %5345 = vmatmul.msk.bf16.gmra.mxu3 %vm862_vm3, %v3262_v0 }
 0x3d7   : > { %v3033_v18 = vpop.permute.xlu1 %3032  ;;  %3266 = vst [vmem:[#allocation1 + $0x1] ss:$9 sm:$0xff] %v8294_v14  ;;  %3665 = vmatpush.bf16.msrb.mxu3 %v3657_v19 }
 0x3d8   : > { %v8291_v50 = vsel %vm550_vm2, %v3074_v45, %v3033_v18  ;;  %3268 = vst [vmem:[#allocation1 + $0x2] ss:$9 sm:$0xff] %v8297_v17  ;;  %v3001_v18 = vpop.permute.xlu0 %3000 }
 0x3d9   : > { %v8304_v15 = vrot.slane %v8291_v50, 1  ;;  %v8312_v26 = vrot.slane %v8291_v50, 2  ;;  %3269 = vst [vmem:[#allocation1 + $0x3] ss:$9 sm:$0xff] %v8308_v47  ;;  %v8316_v54 = vrot.slane %v8291_v50, 3  ;;  %v8329_v51 = vrot.slane %v8291_v50, 4  ;;  %v3007_v19 = vpop.permute.xlu2 %3006 }
 0x3da   : > { %3270 = vst [vmem:[#allocation1 + $0x4] ss:$9 sm:$0xff] %v8291_v50  ;;  %v8335_v30 = vrot.slane %v8291_v50, 5  ;;  %v8338_v45 = vrot.slane %v8291_v50, 6  ;;  %v3077_v23 = vsel %vm489_vm1, %v7771_v29, %v3001_v18 }
 0x3db   : > { %10109 = vst [vmem:[#allocation25_spill] sm:$0xff] %v8304_v15 }
 0x3dc   : > { %10110 = vst [vmem:[#allocation28_spill] sm:$0xff] %v8312_v26 }
 0x3dd   : > { %10111 = vst [vmem:[#allocation29_spill] sm:$0xff] %v8316_v54 }
 0x3de   : > { %3272 = vst [vmem:[#allocation1 + $0x5] ss:$9 sm:$0xff] %v8304_v15 }
 0x3df   : > { %3274 = vst [vmem:[#allocation1 + $0x6] ss:$9 sm:$0xff] %v8312_v26  ;;  %v3003_v8 = vpop.permute.xlu1 %3002 }
 0x3e0   : > { %3276 = vst [vmem:[#allocation1 + $0x7] ss:$9 sm:$0xff] %v8316_v54  ;;  %v3080_v32 = vsel %vm489_vm1, %v7883_v62, %v3003_v8  ;;  %v8342_v62 = vrot.slane %v8291_v50, 7 }
 0x3e1   : > { %10112 = vst [vmem:[#allocation30_spill] sm:$0xff] %v8329_v51  ;;  %v8332_v5 = vsel %vm550_vm2, %v3080_v32, %v3037_v60  ;;  %v4212_v32 = vpack.c.b16 %v4210_v10, %v4210_v10 }
 0x3e2   : > { %10113 = vst [vmem:[#allocation31_spill] sm:$0xff] %v8332_v5  ;;  %v8346_v38 = vrot.slane %v8332_v5, 1  ;;  %v8350_v36 = vrot.slane %v8332_v5, 2  ;;  %v8371_v18 = vrot.slane %v8332_v5, 3  ;;  %v8376_v37 = vrot.slane %v8332_v5, 4 }
 0x3e3   : > { %10114 = vst [vmem:[#allocation32_spill] sm:$0xff] %v8335_v30  ;;  %v4233_v29 = vsel %vm887_vm0, %v4212_v32, 0  ;;  %v8380_v10 = vrot.slane %v8332_v5, 5  ;;  %v3039_v32 = vpop.permute.xlu2 %3038  ;;  %v8386_v28 = vrot.slane %v8332_v5, 6  ;;  %vm4788_vm0 = vcmask 1046528  }
 0x3e4   : > { %10115 = vst [vmem:[#allocation27_spill] sm:$0xff] %v8338_v45  ;;  %4241 = vmatpush.bf16.msrb.mxu0 %v4233_v29  ;;  %v3086_v29 = vsel %vm489_vm1, %v7974_v46, %v3007_v19 }
 0x3e5   : > { %10116 = vst [vmem:[#allocation33_spill] sm:$0xff] %v8342_v62 }
 0x3e6   : > { %10117 = vst [vmem:[#allocation34_spill] sm:$0xff] %v8346_v38 }
 0x3e7   : > { %v3277_v6 = vld [vmem:[#allocation1] sm:$0xff]  ;;  %10118 = vst [vmem:[#allocation41_spill] sm:$0xff] %v8350_v36 }
 0x3e8   : > { %3279 = vst [vmem:[#allocation1] ss:$9 sm:$0xff] %v8329_v51  ;;  %5346 = vmatmul.msk.bf16.gmra.mxu3 %vm862_vm3, %v3277_v6  ;;  %v8368_v6 = vrot.slane %v8332_v5, 7 }
 0x3e9   : > { %3281 = vst [vmem:[#allocation1 + $0x1] ss:$9 sm:$0xff] %v8335_v30  ;;  %v3035_v0 = vpop.permute.xlu1 %3034 }
 0x3ea   : > { %3283 = vst [vmem:[#allocation1 + $0x2] ss:$9 sm:$0xff] %v8338_v45  ;;  %v8361_v8 = vsel %vm550_vm2, %v3077_v23, %v3035_v0 }
 0x3eb   : > { %3285 = vst [vmem:[#allocation1 + $0x3] ss:$9 sm:$0xff] %v8342_v62 }
 0x3ec   : > { %3287 = vst [vmem:[#allocation1 + $0x5] ss:$9 sm:$0xff] %v8332_v5 }
 0x3ed   : > { %3289 = vst [vmem:[#allocation1 + $0x6] ss:$9 sm:$0xff] %v8346_v38 }
 0x3ee   : > { %3291 = vst [vmem:[#allocation1 + $0x7] ss:$9 sm:$0xff] %v8350_v36 }
 0x3ef   : > { %3286 = vst [vmem:[#allocation1 + $0x4] ss:$9 sm:$0xff] %v8361_v8 }
 0x3f0   : > { %10119 = vst [vmem:[#allocation35_spill] sm:$0xff] %v8368_v6 }
 0x3f1   : > { %v3005_v60 = vpop.permute.xlu1 %3004  ;;  %10120 = vst [vmem:[#allocation36_spill] sm:$0xff] %v8371_v18 }
 0x3f2   : > { %v3083_v23 = vsel %vm489_vm1, %v7844_v3, %v3005_v60  ;;  %10121 = vst [vmem:[#allocation38_spill] sm:$0xff] %v8376_v37 }
 0x3f3   : > { %10122 = vst [vmem:[#allocation39_spill] sm:$0xff] %v8380_v10  ;;  %v8390_v3 = vsel %vm550_vm2, %v3083_v23, %v3039_v32 }
 0x3f4   : > { %10123 = vst [vmem:[#allocation40_spill] sm:$0xff] %v8386_v28 }
 0x3f5   : > { %10124 = vst [vmem:[#allocation42_spill] sm:$0xff] %v8390_v3 }
 0x3f6   : > { %v3292_v0 = vld [vmem:[#allocation1] sm:$0xff] }
 0x3f7   : > { %3302 = vst [vmem:[#allocation1 + $0x4] ss:$9 sm:$0xff] %v8368_v6 }
 0x3f8   : > { %3294 = vst [vmem:[#allocation1] ss:$9 sm:$0xff] %v8371_v18  ;;  %5347 = vmatmul.msk.bf16.gmra.mxu3 %vm862_vm3, %v3292_v0 }
 0x3f9   : > { %3296 = vst [vmem:[#allocation1 + $0x1] ss:$9 sm:$0xff] %v8376_v37 }
 0x3fa   : > { %3298 = vst [vmem:[#allocation1 + $0x2] ss:$9 sm:$0xff] %v8380_v10 }
 0x3fb   : > { %v3041_v60 = vpop.permute.xlu0 %3040  ;;  %3300 = vst [vmem:[#allocation1 + $0x3] ss:$9 sm:$0xff] %v8386_v28 }
 0x3fc   : > { %v8395_v6 = vsel %vm550_vm2, %v3086_v29, %v3041_v60  ;;  %3303 = vst [vmem:[#allocation1 + $0x5] ss:$9 sm:$0xff] %v8390_v3  ;;  %v3011_v29 = vpop.permute.xlu1 %3010 }
 0x3fd   : > { %10125 = vst [vmem:[#allocation43_spill] sm:$0xff] %v8395_v6  ;;  %v8399_v46 = vrot.slane %v8395_v6, 1  ;;  %v8405_v23 = vrot.slane %v8395_v6, 2  ;;  %v8408_v0 = vrot.slane %v8395_v6, 3  ;;  %v8411_v60 = vrot.slane %v8395_v6, 4 }
 0x3fe   : > { %3304 = vst [vmem:[#allocation1 + $0x6] ss:$9 sm:$0xff] %v8395_v6  ;;  %v8417_v28 = vrot.slane %v8395_v6, 5  ;;  %v8421_v10 = vrot.slane %v8395_v6, 6  ;;  %v3092_v37 = vsel %vm489_vm1, %v8070_v13, %v3011_v29  ;;  %v8427_v18 = vrot.slane %v8395_v6, 7 }
 0x3ff   : > { %10126 = vst [vmem:[#allocation44_spill] sm:$0xff] %v8399_v46 }
 0x400   : > { %3306 = vst [vmem:[#allocation1 + $0x7] ss:$9 sm:$0xff] %v8399_v46  ;;  %v3043_v46 = vpop.permute.xlu2 %3042 }
 0x401   : > { %10127 = vst [vmem:[#allocation45_spill] sm:$0xff] %v8405_v23 }
 0x402   : > { %10128 = vst [vmem:[#allocation47_spill] sm:$0xff] %v8408_v0 }
 0x403   : > { %v3009_v19 = vpop.permute.xlu0 %3008  ;;  %10129 = vst [vmem:[#allocation48_spill] sm:$0xff] %v8411_v60 }
 0x404   : > { %v3089_v3 = vsel %vm489_vm1, %v8066_v43, %v3009_v19  ;;  %10130 = vst [vmem:[#allocation49_spill] sm:$0xff] %v8417_v28  ;;  %v3013_v29 = vpop.permute.xlu1 %3012 }
 0x405   : > { %10131 = vst [vmem:[#allocation6_spill] sm:$0xff] %v8421_v10  ;;  %v8431_v43 = vsel %vm550_vm2, %v3089_v3, %v3043_v46 }
 0x406   : > { %10132 = vst [vmem:[#allocation10_spill] sm:$0xff] %v8427_v18 }
 0x407   : > { %v3307_v32 = vld [vmem:[#allocation1] sm:$0xff]  ;;  %10133 = vst [vmem:[#allocation5_spill] sm:$0xff] %v8431_v43 }
 0x408   : > { %3309 = vst [vmem:[#allocation1] ss:$9 sm:$0xff] %v8405_v23  ;;  %5348 = vmatmul.msk.bf16.gmra.mxu3 %vm862_vm3, %v3307_v32 }
 0x409   : > { %3311 = vst [vmem:[#allocation1 + $0x1] ss:$9 sm:$0xff] %v8408_v0 }
 0x40a   : > { %3313 = vst [vmem:[#allocation1 + $0x2] ss:$9 sm:$0xff] %v8411_v60 }
 0x40b   : > { %3315 = vst [vmem:[#allocation1 + $0x3] ss:$9 sm:$0xff] %v8417_v28  ;;  %v3045_v19 = vpop.permute.xlu0 %3044 }
 0x40c   : > { %3317 = vst [vmem:[#allocation1 + $0x4] ss:$9 sm:$0xff] %v8421_v10  ;;  %v8436_v0 = vsel %vm550_vm2, %v3092_v37, %v3045_v19  ;;  %v3095_v19 = vsel %vm489_vm1, %v8126_v41, %v3013_v29 }
 0x40d   : > { %3319 = vst [vmem:[#allocation1 + $0x5] ss:$9 sm:$0xff] %v8427_v18  ;;  %v8442_v13 = vrot.slane %v8436_v0, 1  ;;  %v8445_v3 = vrot.slane %v8436_v0, 2  ;;  %v8448_v10 = vrot.slane %v8436_v0, 3  ;;  %v8452_v37 = vrot.slane %v8436_v0, 4  ;;  %v3047_v18 = vpop.permute.xlu2 %3046 }
 0x40e   : > { %3320 = vst [vmem:[#allocation1 + $0x6] ss:$9 sm:$0xff] %v8431_v43  ;;  %v8456_v32 = vrot.slane %v8436_v0, 5  ;;  %v8462_v43 = vrot.slane %v8436_v0, 6 }
 0x40f   : > { %3321 = vst [vmem:[#allocation1 + $0x7] ss:$9 sm:$0xff] %v8436_v0 }
 0x410   : > { %10134 = vst [vmem:[#allocation9_spill] sm:$0xff] %v8442_v13 }
 0x411   : > { %10135 = vst [vmem:[#allocation54_spill] sm:$0xff] %v8448_v10 }
 0x416   : > { %v3322_v46 = vld [vmem:[#allocation1] sm:$0xff] }
 0x417   : > { %3324 = vst [vmem:[#allocation1] ss:$9 sm:$0xff] %v8442_v13  ;;  %v8466_v13 = vrot.slane %v8436_v0, 7 }
 0x418   : > { %3326 = vst [vmem:[#allocation1 + $0x1] ss:$9 sm:$0xff] %v8445_v3  ;;  %5349 = vmatmul.msk.bf16.gmra.mxu3 %vm862_vm3, %v3322_v46 }
 0x419   : > { %3328 = vst [vmem:[#allocation1 + $0x2] ss:$9 sm:$0xff] %v8448_v10  ;;  %v8472_v10 = vsel %vm550_vm2, %v3095_v19, %v3047_v18 }
 0x41a   : > { %3330 = vst [vmem:[#allocation1 + $0x3] ss:$9 sm:$0xff] %v8452_v37 }
 0x41b   : > { %3332 = vst [vmem:[#allocation1 + $0x4] ss:$9 sm:$0xff] %v8456_v32 }
 0x41c   : > { %3334 = vst [vmem:[#allocation1 + $0x5] ss:$9 sm:$0xff] %v8462_v43 }
 0x41d   : > { %3336 = vst [vmem:[#allocation1 + $0x6] ss:$9 sm:$0xff] %v8466_v13 }
 0x41e   : > { %3337 = vst [vmem:[#allocation1 + $0x7] ss:$9 sm:$0xff] %v8472_v10 }
 0x425   : > { %v3338_v41 = vld [vmem:[#allocation1] sm:$0xff] }
 0x426   : > { %3541 = vst [vmem:[#allocation1] ss:$9 sm:$0xff] %v8117_v42 }
 0x427   : > { %3543 = vst [vmem:[#allocation1 + $0x1] ss:$9 sm:$0xff] %v8135_v11 }
 0x428   : > { %3545 = vst [vmem:[#allocation1 + $0x2] ss:$9 sm:$0xff] %v8138_v12  ;;  %5350 = vmatmul.msk.bf16.gmra.mxu3 %vm862_vm3, %v3338_v41 }
 0x429   : > { %3547 = vst [vmem:[#allocation1 + $0x3] ss:$9 sm:$0xff] %v8142_v58 }
 0x42a   : > { %3549 = vst [vmem:[#allocation1 + $0x4] ss:$9 sm:$0xff] %v8120_v49 }
 0x42b   : > { %3551 = vst [vmem:[#allocation1 + $0x5] ss:$9 sm:$0xff] %v8146_v56 }
 0x42c   : > { %3553 = vst [vmem:[#allocation1 + $0x6] ss:$9 sm:$0xff] %v8152_v33 }
 0x42d   : > { %3555 = vst [vmem:[#allocation1 + $0x7] ss:$9 sm:$0xff] %v8157_v25 }
 0x434   : > { %v8485_v18 = vld [vmem:[#allocation1] sm:$0xff] }
 0x435   : > { %3557 = vst [vmem:[#allocation1] ss:$9 sm:$0xff] %v8176_v61 }
 0x436   : > { %3558 = vst [vmem:[#allocation1 + $0x1] ss:$9 sm:$0xff] %v8184_v27 }
 0x437   : > { %3559 = vst [vmem:[#allocation1 + $0x2] ss:$9 sm:$0xff] %v8187_v53 }
 0x438   : > { %3560 = vst [vmem:[#allocation1 + $0x3] ss:$9 sm:$0xff] %v8190_v57 }
 0x439   : > { %3561 = vst [vmem:[#allocation1 + $0x4] ss:$9 sm:$0xff] %v8193_v2 }
 0x43a   : > { %3562 = vst [vmem:[#allocation1 + $0x5] ss:$9 sm:$0xff] %v8197_v24 }
 0x43b   : > { %3563 = vst [vmem:[#allocation1 + $0x6] ss:$9 sm:$0xff] %v8200_v9 }
 0x43c   : > { %3564 = vst [vmem:[#allocation1 + $0x7] ss:$9 sm:$0xff] %v8204_v40 }
 0x443   : > { %v8495_v46 = vld [vmem:[#allocation1] sm:$0xff] }
 0x444   : > { %3566 = vst [vmem:[#allocation1] ss:$9 sm:$0xff] %v8217_v22 }
 0x445   : > { %3567 = vst [vmem:[#allocation1 + $0x1] ss:$9 sm:$0xff] %v8225_v52 }
 0x446   : > { %3568 = vst [vmem:[#allocation1 + $0x2] ss:$9 sm:$0xff] %v8214_v4 }
 0x447   : > { %3569 = vst [vmem:[#allocation1 + $0x3] ss:$9 sm:$0xff] %v8222_v1 }
 0x448   : > { %3570 = vst [vmem:[#allocation1 + $0x4] ss:$9 sm:$0xff] %v8229_v34 }
 0x449   : > { %3571 = vst [vmem:[#allocation1 + $0x5] ss:$9 sm:$0xff] %v8234_v21 }
 0x44a   : > { %3572 = vst [vmem:[#allocation1 + $0x6] ss:$9 sm:$0xff] %v8237_v59 }
 0x44b   : > { %3573 = vst [vmem:[#allocation1 + $0x7] ss:$9 sm:$0xff] %v8241_v35 }
 0x452   : > { %v8505_v29 = vld [vmem:[#allocation1] sm:$0xff] }
 0x453   : > { %3575 = vst [vmem:[#allocation1] ss:$9 sm:$0xff] %v8249_v44 }
 0x454   : > { %3576 = vst [vmem:[#allocation1 + $0x1] ss:$9 sm:$0xff] %v8256_v16 }
 0x455   : > { %3577 = vst [vmem:[#allocation1 + $0x2] ss:$9 sm:$0xff] %v8265_v7 }
 0x456   : > { %3578 = vst [vmem:[#allocation1 + $0x3] ss:$9 sm:$0xff] %v8261_v55 }
 0x457   : > { %3579 = vst [vmem:[#allocation1 + $0x4] ss:$9 sm:$0xff] %v8268_v48 }
 0x458   : > { %3580 = vst [vmem:[#allocation1 + $0x5] ss:$9 sm:$0xff] %v8271_v31 }
 0x459   : > { %3581 = vst [vmem:[#allocation1 + $0x6] ss:$9 sm:$0xff] %v8275_v63 }
 0x45a   : > { %3582 = vst [vmem:[#allocation1 + $0x7] ss:$9 sm:$0xff] %v8278_v39 }
 0x461   : > { %v8515_v19 = vld [vmem:[#allocation1] sm:$0xff] }
 0x462   : > { %3584 = vst [vmem:[#allocation1] ss:$9 sm:$0xff] %v8288_v20 }
 0x463   : > { %3585 = vst [vmem:[#allocation1 + $0x1] ss:$9 sm:$0xff] %v8294_v14 }
 0x464   : > { %3586 = vst [vmem:[#allocation1 + $0x2] ss:$9 sm:$0xff] %v8297_v17 }
 0x465   : > { %3587 = vst [vmem:[#allocation1 + $0x3] ss:$9 sm:$0xff] %v8308_v47 }
 0x466   : > { %3588 = vst [vmem:[#allocation1 + $0x4] ss:$9 sm:$0xff] %v8291_v50 }
 0x467   : > { %3589 = vst [vmem:[#allocation1 + $0x5] ss:$9 sm:$0xff] %v8304_v15  ;;  %v10137_v15 = vld [vmem:[#allocation38_spill] sm:$0xff] }
 0x468   : > { %3590 = vst [vmem:[#allocation1 + $0x6] ss:$9 sm:$0xff] %v8312_v26 }
 0x469   : > { %3591 = vst [vmem:[#allocation1 + $0x7] ss:$9 sm:$0xff] %v8316_v54  ;;  %v10136_v54 = vld [vmem:[#allocation36_spill] sm:$0xff] }
 0x470   : > { %v8525_v41 = vld [vmem:[#allocation1] sm:$0xff] }
 0x471   : > { %3593 = vst [vmem:[#allocation1] ss:$9 sm:$0xff] %v8329_v51  ;;  %v10138_v51 = vld [vmem:[#allocation39_spill] sm:$0xff] }
 0x472   : > { %3594 = vst [vmem:[#allocation1 + $0x1] ss:$9 sm:$0xff] %v8335_v30  ;;  %v10139_v30 = vld [vmem:[#allocation40_spill] sm:$0xff] }
 0x473   : > { %3595 = vst [vmem:[#allocation1 + $0x2] ss:$9 sm:$0xff] %v8338_v45  ;;  %v10140_v45 = vld [vmem:[#allocation35_spill] sm:$0xff] }
 0x474   : > { %3596 = vst [vmem:[#allocation1 + $0x3] ss:$9 sm:$0xff] %v8342_v62  ;;  %v10141_v62 = vld [vmem:[#allocation42_spill] sm:$0xff] }
 0x475   : > { %3597 = vst [vmem:[#allocation1 + $0x4] ss:$9 sm:$0xff] %v8361_v8 }
 0x476   : > { %3598 = vst [vmem:[#allocation1 + $0x5] ss:$9 sm:$0xff] %v8332_v5  ;;  %v10142_v5 = vld [vmem:[#allocation44_spill] sm:$0xff] }
 0x477   : > { %3599 = vst [vmem:[#allocation1 + $0x6] ss:$9 sm:$0xff] %v8346_v38 }
 0x478   : > { %3600 = vst [vmem:[#allocation1 + $0x7] ss:$9 sm:$0xff] %v8350_v36  ;;  %v10143_v36 = vld [vmem:[#allocation47_spill] sm:$0xff] }
 0x47f   : > { %v8535_v26 = vld [vmem:[#allocation1] sm:$0xff] }
 0x480   : > { %3602 = vst [vmem:[#allocation1] ss:$9 sm:$0xff] %v10136_v54 }
 0x481   : > { %3603 = vst [vmem:[#allocation1 + $0x1] ss:$9 sm:$0xff] %v10137_v15 }
 0x482   : > { %3604 = vst [vmem:[#allocation1 + $0x2] ss:$9 sm:$0xff] %v10138_v51  ;;  %v10144_v51 = vld [vmem:[#allocation6_spill] sm:$0xff] }
 0x483   : > { %3605 = vst [vmem:[#allocation1 + $0x3] ss:$9 sm:$0xff] %v10139_v30 }
 0x484   : > { %3606 = vst [vmem:[#allocation1 + $0x4] ss:$9 sm:$0xff] %v10140_v45  ;;  %v10145_v45 = vld [vmem:[#allocation10_spill] sm:$0xff] }
 0x485   : > { %3607 = vst [vmem:[#allocation1 + $0x5] ss:$9 sm:$0xff] %v10141_v62  ;;  %v5412_v62 = vld [vmem:[%s9639_s3 + $0xc] sm:$0xff] }
 0x486   : > { %3608 = vst [vmem:[#allocation1 + $0x6] ss:$9 sm:$0xff] %v8395_v6  ;;  %v8559_v6 = vpop.f32.mrf.mxu3  ;;  %3666 = vmatpush.bf16.msrb.mxu3 %v5412_v62 }
 0x487   : > { %3609 = vst [vmem:[#allocation1 + $0x7] ss:$9 sm:$0xff] %v10142_v5  ;;  %v5413_v5 = vld [vmem:[%s9639_s3 + $0x18] sm:$0xff] }
 0x488   : > { %4242 = vmatpush.bf16.msrb.mxu0 %v5413_v5 }
 0x489   : > { %5358 = vmatmul.msk.bf16.vlgmr.msrb.gmra.mxu3 %vm862_vm3, %v8485_v18 }
 0x48e   : > { %v8545_v38 = vld [vmem:[#allocation1] sm:$0xff] }
 0x48f   : > { %3611 = vst [vmem:[#allocation1] ss:$9 sm:$0xff] %v8405_v23  ;;  %v10146_v23 = vld [vmem:[#allocation5_spill] sm:$0xff] }
 0x490   : > { %3612 = vst [vmem:[#allocation1 + $0x1] ss:$9 sm:$0xff] %v10143_v36 }
 0x491   : > { %3613 = vst [vmem:[#allocation1 + $0x2] ss:$9 sm:$0xff] %v8411_v60  ;;  %v10148_v60 = vld [vmem:[#allocation54_spill] sm:$0xff] }
 0x492   : > { %3614 = vst [vmem:[#allocation1 + $0x3] ss:$9 sm:$0xff] %v8417_v28 }
 0x493   : > { %3615 = vst [vmem:[#allocation1 + $0x4] ss:$9 sm:$0xff] %v10144_v51  ;;  %v8565_v51 = vpop.f32.mrf.mxu3 }
 0x494   : > { %3616 = vst [vmem:[#allocation1 + $0x5] ss:$9 sm:$0xff] %v10145_v45  ;;  %v10147_v45 = vld [vmem:[#allocation9_spill] sm:$0xff] }
 0x495   : > { %3617 = vst [vmem:[#allocation1 + $0x6] ss:$9 sm:$0xff] %v10146_v23 }
 0x496   : > { %3618 = vst [vmem:[#allocation1 + $0x7] ss:$9 sm:$0xff] %v8436_v0 }
 0x499   : > { %5359 = vmatmul.msk.bf16.gmra.mxu3 %vm862_vm3, %v8495_v46 }
 0x49b   : > { %v8576_v5 = vpop.f32.mrf.mxu3 }
 0x49d   : > { %v8567_v28 = vld [vmem:[#allocation1] sm:$0xff] }
 0x49e   : > { %3620 = vst [vmem:[#allocation1] ss:$9 sm:$0xff] %v10147_v45 }
 0x49f   : > { %3621 = vst [vmem:[#allocation1 + $0x1] ss:$9 sm:$0xff] %v8445_v3 }
 0x4a0   : > { %3622 = vst [vmem:[#allocation1 + $0x2] ss:$9 sm:$0xff] %v10148_v60 }
 0x4a1   : > { %3623 = vst [vmem:[#allocation1 + $0x3] ss:$9 sm:$0xff] %v8452_v37 }
 0x4a2   : > { %3624 = vst [vmem:[#allocation1 + $0x4] ss:$9 sm:$0xff] %v8456_v32 }
 0x4a3   : > { %3625 = vst [vmem:[#allocation1 + $0x5] ss:$9 sm:$0xff] %v8462_v43  ;;  %v8584_v18 = vpop.f32.mrf.mxu3 }
 0x4a4   : > { %3626 = vst [vmem:[#allocation1 + $0x6] ss:$9 sm:$0xff] %v8466_v13 }
 0x4a5   : > { %3627 = vst [vmem:[#allocation1 + $0x7] ss:$9 sm:$0xff] %v8472_v10 }
 0x4a9   : > { %5360 = vmatmul.msk.bf16.gmra.mxu3 %vm862_vm3, %v8505_v29 }
 0x4ab   : > { %v8593_v46 = vpop.f32.mrf.mxu3 }
 0x4ac   : > { %v8581_v62 = vld [vmem:[#allocation1] sm:$0xff] }
 0x4ad   : > { %4117 = vst [vmem:[#allocation1] ss:$9 sm:$0xff] %v8117_v42 }
 0x4ae   : > { %4119 = vst [vmem:[#allocation1 + $0x1] ss:$9 sm:$0xff] %v8135_v11 }
 0x4af   : > { %4121 = vst [vmem:[#allocation1 + $0x2] ss:$9 sm:$0xff] %v8138_v12 }
 0x4b0   : > { %4123 = vst [vmem:[#allocation1 + $0x3] ss:$9 sm:$0xff] %v8142_v58 }
 0x4b1   : > { %4125 = vst [vmem:[#allocation1 + $0x4] ss:$9 sm:$0xff] %v8120_v49 }
 0x4b2   : > { %4127 = vst [vmem:[#allocation1 + $0x5] ss:$9 sm:$0xff] %v8146_v56 }
 0x4b3   : > { %4129 = vst [vmem:[#allocation1 + $0x6] ss:$9 sm:$0xff] %v8152_v33  ;;  %v8604_v49 = vpop.f32.mrf.mxu3 }
 0x4b4   : > { %4131 = vst [vmem:[#allocation1 + $0x7] ss:$9 sm:$0xff] %v8157_v25 }
 0x4b9   : > { %5361 = vmatmul.msk.bf16.gmra.mxu3 %vm862_vm3, %v8515_v19 }
 0x4bb   : > { %v4132_v42 = vld [vmem:[#allocation1] sm:$0xff]  ;;  %v8610_v12 = vpop.f32.mrf.mxu3 }
 0x4bc   : > { %5394 = vmatmul.msk.bf16.vlgmr.msrb.gmra.mxu0 %vm862_vm3, %v4132_v42  ;;  %4133 = vst [vmem:[#allocation1] ss:$9 sm:$0xff] %v8176_v61 }
 0x4bd   : > { %4134 = vst [vmem:[#allocation1 + $0x1] ss:$9 sm:$0xff] %v8184_v27  ;;  %v10149_v27 = vld [vmem:[#allocation25_spill] sm:$0xff] }
 0x4be   : > { %4135 = vst [vmem:[#allocation1 + $0x2] ss:$9 sm:$0xff] %v8187_v53  ;;  %v10150_v53 = vld [vmem:[#allocation28_spill] sm:$0xff] }
 0x4bf   : > { %4136 = vst [vmem:[#allocation1 + $0x3] ss:$9 sm:$0xff] %v8190_v57  ;;  %v10151_v57 = vld [vmem:[#allocation29_spill] sm:$0xff] }
 0x4c0   : > { %4137 = vst [vmem:[#allocation1 + $0x4] ss:$9 sm:$0xff] %v8193_v2 }
 0x4c1   : > { %4138 = vst [vmem:[#allocation1 + $0x5] ss:$9 sm:$0xff] %v8197_v24 }
 0x4c2   : > { %4139 = vst [vmem:[#allocation1 + $0x6] ss:$9 sm:$0xff] %v8200_v9  ;;  %v10152_v9 = vld [vmem:[#allocation30_spill] sm:$0xff] }
 0x4c3   : > { %4140 = vst [vmem:[#allocation1 + $0x7] ss:$9 sm:$0xff] %v8204_v40  ;;  %v8621_v58 = vpop.f32.mrf.mxu3  ;;  %v10153_v40 = vld [vmem:[#allocation32_spill] sm:$0xff] }
 0x4c9   : > { %5362 = vmatmul.msk.bf16.gmra.mxu3 %vm862_vm3, %v8525_v41 }
 0x4ca   : > { %v4141_v11 = vld [vmem:[#allocation1] sm:$0xff] }
 0x4cb   : > { %4142 = vst [vmem:[#allocation1] ss:$9 sm:$0xff] %v8217_v22  ;;  %v8631_v33 = vpop.f32.mrf.mxu3  ;;  %v10155_v22 = vld [vmem:[#allocation33_spill] sm:$0xff] }
 0x4cc   : > { %5395 = vmatmul.msk.bf16.gmra.mxu0 %vm862_vm3, %v4141_v11  ;;  %4143 = vst [vmem:[#allocation1 + $0x1] ss:$9 sm:$0xff] %v8225_v52  ;;  %v10156_v52 = vld [vmem:[#allocation31_spill] sm:$0xff] }
 0x4cd   : > { %4144 = vst [vmem:[#allocation1 + $0x2] ss:$9 sm:$0xff] %v8214_v4  ;;  %v10154_v4 = vld [vmem:[#allocation27_spill] sm:$0xff] }
 0x4ce   : > { %4145 = vst [vmem:[#allocation1 + $0x3] ss:$9 sm:$0xff] %v8222_v1 }
 0x4cf   : > { %4146 = vst [vmem:[#allocation1 + $0x4] ss:$9 sm:$0xff] %v8229_v34  ;;  %v10157_v34 = vld [vmem:[#allocation34_spill] sm:$0xff] }
 0x4d0   : > { %4147 = vst [vmem:[#allocation1 + $0x5] ss:$9 sm:$0xff] %v8234_v21  ;;  %v10158_v21 = vld [vmem:[#allocation41_spill] sm:$0xff] }
 0x4d1   : > { %4148 = vst [vmem:[#allocation1 + $0x6] ss:$9 sm:$0xff] %v8237_v59 }
 0x4d2   : > { %4149 = vst [vmem:[#allocation1 + $0x7] ss:$9 sm:$0xff] %v8241_v35 }
 0x4d3   : > { %v8638_v61 = vpop.f32.mrf.mxu3 }
 0x4d9   : > { %v4150_v56 = vld [vmem:[#allocation1] sm:$0xff]  ;;  %5363 = vmatmul.msk.bf16.gmra.mxu3 %vm862_vm3, %v8535_v26  ;;  %v3378_v26 = vpop.f32.mrf.mxu2 }
 0x4da   : > { %4151 = vst [vmem:[#allocation1] ss:$9 sm:$0xff] %v8249_v44  ;;  %v10159_v44 = vld [vmem:[#allocation39_spill] sm:$0xff] }
 0x4db   : > { %4152 = vst [vmem:[#allocation1 + $0x1] ss:$9 sm:$0xff] %v8256_v16  ;;  %v8649_v2 = vpop.f32.mrf.mxu3  ;;  %v10160_v16 = vld [vmem:[#allocation35_spill] sm:$0xff] }
 0x4dc   : > { %5396 = vmatmul.msk.bf16.gmra.mxu0 %vm862_vm3, %v4150_v56  ;;  %4153 = vst [vmem:[#allocation1 + $0x2] ss:$9 sm:$0xff] %v8265_v7  ;;  %v10162_v7 = vld [vmem:[#allocation43_spill] sm:$0xff] }
 0x4dd   : > { %4154 = vst [vmem:[#allocation1 + $0x3] ss:$9 sm:$0xff] %v8261_v55  ;;  %v10161_v55 = vld [vmem:[#allocation42_spill] sm:$0xff] }
 0x4de   : > { %4155 = vst [vmem:[#allocation1 + $0x4] ss:$9 sm:$0xff] %v8268_v48  ;;  %v10163_v48 = vld [vmem:[#allocation44_spill] sm:$0xff] }
 0x4df   : > { %4156 = vst [vmem:[#allocation1 + $0x5] ss:$9 sm:$0xff] %v8271_v31 }
 0x4e0   : > { %4157 = vst [vmem:[#allocation1 + $0x6] ss:$9 sm:$0xff] %v8275_v63 }
 0x4e1   : > { %4158 = vst [vmem:[#allocation1 + $0x7] ss:$9 sm:$0xff] %v8278_v39  ;;  %v10165_v39 = vld [vmem:[#allocation48_spill] sm:$0xff] }
 0x4e3   : > { %v8659_v1 = vpop.f32.mrf.mxu3 }
 0x4e8   : > { %v4159_v25 = vld [vmem:[#allocation1] sm:$0xff] }
 0x4e9   : > { %4160 = vst [vmem:[#allocation1] ss:$9 sm:$0xff] %v8288_v20  ;;  %5364 = vmatmul.msk.bf16.gmra.mxu3 %vm862_vm3, %v8545_v38  ;;  %v10166_v20 = vld [vmem:[#allocation49_spill] sm:$0xff] }
 0x4ea   : > { %4161 = vst [vmem:[#allocation1 + $0x1] ss:$9 sm:$0xff] %v8294_v14 }
 0x4eb   : > { %4162 = vst [vmem:[#allocation1 + $0x2] ss:$9 sm:$0xff] %v8297_v17  ;;  %v8664_v35 = vpop.f32.mrf.mxu3  ;;  %v10168_v17 = vld [vmem:[#allocation10_spill] sm:$0xff] }
 0x4ec   : > { %5397 = vmatmul.msk.bf16.gmra.mxu0 %vm862_vm3, %v4159_v25  ;;  %4163 = vst [vmem:[#allocation1 + $0x3] ss:$9 sm:$0xff] %v8308_v47 }
 0x4ed   : > { %4164 = vst [vmem:[#allocation1 + $0x4] ss:$9 sm:$0xff] %v8291_v50  ;;  %v10167_v50 = vld [vmem:[#allocation6_spill] sm:$0xff] }
 0x4ee   : > { %4165 = vst [vmem:[#allocation1 + $0x5] ss:$9 sm:$0xff] %v10149_v27  ;;  %v3442_v27 = vrot.slane %v3378_v26, 4 }
 0x4ef   : > { %4166 = vst [vmem:[#allocation1 + $0x6] ss:$9 sm:$0xff] %v10150_v53  ;;  %v3443_v53 = vrot.slane %v3378_v26, 6 }
 0x4f0   : > { %4167 = vst [vmem:[#allocation1 + $0x7] ss:$9 sm:$0xff] %v10151_v57 }
 0x4f3   : > { %v8677_v31 = vpop.f32.mrf.mxu3 }
 0x4f7   : > { %v4168_v24 = vld [vmem:[#allocation1] sm:$0xff] }
 0x4f8   : > { %4169 = vst [vmem:[#allocation1] ss:$9 sm:$0xff] %v10152_v9 }
 0x4f9   : > { %4170 = vst [vmem:[#allocation1 + $0x1] ss:$9 sm:$0xff] %v10153_v40  ;;  %5365 = vmatmul.msk.bf16.gmra.mxu3 %vm862_vm3, %v8567_v28  ;;  %v10164_v28 = vld [vmem:[#allocation45_spill] sm:$0xff] }
 0x4fa   : > { %4171 = vst [vmem:[#allocation1 + $0x2] ss:$9 sm:$0xff] %v10154_v4 }
 0x4fb   : > { %4172 = vst [vmem:[#allocation1 + $0x3] ss:$9 sm:$0xff] %v10155_v22 }
 0x4fc   : > { %5398 = vmatmul.msk.bf16.gmra.mxu0 %vm862_vm3, %v4168_v24  ;;  %4173 = vst [vmem:[#allocation1 + $0x4] ss:$9 sm:$0xff] %v8361_v8 }
 0x4fd   : > { %4174 = vst [vmem:[#allocation1 + $0x5] ss:$9 sm:$0xff] %v10156_v52 }
 0x4fe   : > { %4175 = vst [vmem:[#allocation1 + $0x6] ss:$9 sm:$0xff] %v10157_v34 }
 0x4ff   : > { %4176 = vst [vmem:[#allocation1 + $0x7] ss:$9 sm:$0xff] %v10158_v21 }
 0x506   : > { %v4177_v59 = vld [vmem:[#allocation1] sm:$0xff] }
 0x507   : > { %4178 = vst [vmem:[#allocation1] ss:$9 sm:$0xff] %v10136_v54 }
 0x508   : > { %4179 = vst [vmem:[#allocation1 + $0x1] ss:$9 sm:$0xff] %v10137_v15 }
 0x509   : > { %4180 = vst [vmem:[#allocation1 + $0x2] ss:$9 sm:$0xff] %v10159_v44  ;;  %5366 = vmatmul.msk.bf16.gmra.mxu3 %vm862_vm3, %v8581_v62 }
 0x50a   : > { %4181 = vst [vmem:[#allocation1 + $0x3] ss:$9 sm:$0xff] %v10139_v30 }
 0x50b   : > { %4182 = vst [vmem:[#allocation1 + $0x4] ss:$9 sm:$0xff] %v10160_v16 }
 0x50c   : > { %5399 = vmatmul.msk.bf16.gmra.mxu0 %vm862_vm3, %v4177_v59  ;;  %4183 = vst [vmem:[#allocation1 + $0x5] ss:$9 sm:$0xff] %v10161_v55  ;;  %v3668_v14 = vpop.f32.mrf.mxu3 }
 0x50d   : > { %4184 = vst [vmem:[#allocation1 + $0x6] ss:$9 sm:$0xff] %v10162_v7  ;;  %v3731_v30 = vrot.slane %v3668_v14, 2  ;;  %v3732_v38 = vrot.slane %v3668_v14, 4  ;;  %v3733_v8 = vrot.slane %v3668_v14, 6 }
 0x50e   : > { %4185 = vst [vmem:[#allocation1 + $0x7] ss:$9 sm:$0xff] %v10163_v48 }
 0x50f   : > { %v3793_v29 = vrot.slane %v3733_v8, 7 }
 0x511   : > { %v3795_v57 = vrot.slane %v3793_v29, 2 }
 0x514   : > { %v3670_v15 = vpop.f32.mrf.mxu3 }
 0x515   : > { %v4186_v63 = vld [vmem:[#allocation1] sm:$0xff]  ;;  %v3796_v19 = vrot.slane %v3670_v15, 7  ;;  %v3736_v24 = vrot.slane %v3670_v15, 6 }
 0x516   : > { %4187 = vst [vmem:[#allocation1] ss:$9 sm:$0xff] %v10164_v28 }
 0x517   : > { %4188 = vst [vmem:[#allocation1 + $0x1] ss:$9 sm:$0xff] %v10143_v36  ;;  %v3790_v36 = vrot.slane %v3732_v38, 7  ;;  %v3798_v48 = vrot.slane %v3796_v19, 2 }
 0x518   : > { %4189 = vst [vmem:[#allocation1 + $0x2] ss:$9 sm:$0xff] %v10165_v39  ;;  %v3797_v39 = vsel %vm6589_vm10, %v3795_v57, %v3796_v19 }
 0x519   : > { %4190 = vst [vmem:[#allocation1 + $0x3] ss:$9 sm:$0xff] %v10166_v20  ;;  %v3805_v20 = vrot.slane %v3736_v24, 7 }
 0x51a   : > { %4191 = vst [vmem:[#allocation1 + $0x4] ss:$9 sm:$0xff] %v10167_v50 }
 0x51b   : > { %4192 = vst [vmem:[#allocation1 + $0x5] ss:$9 sm:$0xff] %v10168_v17 }
 0x51c   : > { %5400 = vmatmul.msk.bf16.gmra.mxu0 %vm862_vm3, %v4186_v63  ;;  %4193 = vst [vmem:[#allocation1 + $0x6] ss:$9 sm:$0xff] %v10146_v23  ;;  %v8696_v54 = vpop.f32.mrf.mxu3  ;;  %v8701_v23 = vpop.f32.mrf.mxu2 }
 0x51d   : > { %4194 = vst [vmem:[#allocation1 + $0x7] ss:$9 sm:$0xff] %v8436_v0  ;;  %v3808_v38 = vrot.slane %v8696_v54, 7 }
 0x524   : > { %v4195_v47 = vld [vmem:[#allocation1] sm:$0xff]  ;;  %v8703_v0 = vpop.f32.mrf.mxu3  ;;  %v8716_v34 = vpop.f32.mrf.mxu2 }
 0x525   : > { %4196 = vst [vmem:[#allocation1] ss:$9 sm:$0xff] %v10147_v45  ;;  %v3787_v45 = vrot.slane %v3731_v30, 7  ;;  %v4052_v30 = vadd.f32 %v3797_v39, %v3443_v53  ;;  %v3740_v53 = vrot.slane %v8703_v0, 2  ;;  %v3741_v57 = vrot.slane %v8703_v0, 4 }
 0x526   : > { %4197 = vst [vmem:[#allocation1 + $0x1] ss:$9 sm:$0xff] %v8445_v3  ;;  %v3792_v3 = vrot.slane %v3790_v36, 2 }
 0x527   : > { %4198 = vst [vmem:[#allocation1 + $0x2] ss:$9 sm:$0xff] %v10148_v60  ;;  %v3789_v60 = vrot.slane %v3787_v45, 2 }
 0x528   : > { %4199 = vst [vmem:[#allocation1 + $0x3] ss:$9 sm:$0xff] %v8452_v37  ;;  %v3735_v37 = vrot.slane %v3670_v15, 4  ;;  %v3794_v25 = vsel %vm6589_vm10, %v3792_v3, %v3793_v29  ;;  %v3445_v3 = vrot.slane %v8701_v23, 4 }
 0x529   : > { %4200 = vst [vmem:[#allocation1 + $0x4] ss:$9 sm:$0xff] %v8456_v32  ;;  %v5367_v32 = vrot.slane %v3668_v14, 9  ;;  %v3791_v56 = vsel %vm6589_vm10, %v3789_v60, %v3790_v36  ;;  %v4051_v44 = vadd.f32 %v3794_v25, %v3442_v27  ;;  %v3444_v60 = vrot.slane %v8701_v23, 2 }
 0x52a   : > { %4201 = vst [vmem:[#allocation1 + $0x5] ss:$9 sm:$0xff] %v8462_v43  ;;  %v3734_v43 = vrot.slane %v3670_v15, 2  ;;  %v3802_v11 = vrot.slane %v3735_v37, 7  ;;  %v3446_v27 = vrot.slane %v8701_v23, 6 }
 0x52b   : > { %4202 = vst [vmem:[#allocation1 + $0x6] ss:$9 sm:$0xff] %v8466_v13  ;;  %v3441_v13 = vrot.slane %v3378_v26, 2  ;;  %v3788_v62 = vsel %vm6589_vm10, %v5367_v32, %v3787_v45 }
 0x52c   : > { %5401 = vmatmul.msk.bf16.gmra.mxu0 %vm862_vm3, %v4195_v47  ;;  %4203 = vst [vmem:[#allocation1 + $0x7] ss:$9 sm:$0xff] %v8472_v10  ;;  %v8710_v10 = vld [vmem:[%s9640_s4] ss:$0 sm:$0xff]  ;;  %v3799_v42 = vrot.slane %v3734_v43, 7  ;;  %v4049_v40 = vadd.f32 %v3788_v62, %v3378_v26  ;;  %v8718_v21 = vpop.f32.mrf.mxu3  ;;  %v3804_v28 = vrot.slane %v3802_v11, 2 }
 0x52d   : > { %v4050_v59 = vadd.f32 %v3791_v56, %v3441_v13  ;;  %v8721_v16 = vrot.slane %v8710_v10, 2  ;;  %v8724_v55 = vrot.slane %v8710_v10, 4  ;;  %v3807_v43 = vrot.slane %v3805_v20, 2 }
 0x52e   : > { %v3801_v63 = vrot.slane %v3799_v42, 2  ;;  %v3800_v45 = vsel %vm6589_vm10, %v3798_v48, %v3799_v42  ;;  %v3806_v8 = vsel %vm6589_vm10, %v3804_v28, %v3805_v20  ;;  %v8742_v32 = vrot.slane %v8710_v10, 6 }
 0x52f   : > { %v4055_v25 = vadd.f32 %v3806_v8, %v3445_v3  ;;  %v3809_v24 = vsel %vm6589_vm10, %v3807_v43, %v3808_v38  ;;  %v3454_v48 = vrot.slane %v8559_v6, 6  ;;  %v3742_v8 = vrot.slane %v8703_v0, 6 }
 0x530   : > { %v3803_v36 = vsel %vm6589_vm10, %v3801_v63, %v3802_v11  ;;  %v4053_v11 = vadd.f32 %v3800_v45, %v8701_v23  ;;  %v3449_v23 = vrot.slane %v8716_v34, 6  ;;  %v3458_v45 = vrot.slane %v8576_v5, 2 }
 0x531   : > { %v4054_v56 = vadd.f32 %v3803_v36, %v3444_v60  ;;  %v3459_v36 = vrot.slane %v8576_v5, 6 }
 0x533   : > { %v4204_v7 = vld [vmem:[#allocation1] sm:$0xff] }
 0x534   : > { %v8744_v42 = vpop.f32.mrf.mxu3 }
 0x539   : > { %v4244_v9 = vpop.f32.mrf.mxu0 }
 0x53a   : > { %v4307_v4 = vrot.slane %v4244_v9, 2  ;;  %v4308_v22 = vrot.slane %v4244_v9, 4  ;;  %v4309_v52 = vrot.slane %v4244_v9, 6  ;;  %v8752_v9 = vpop.f32.mrf.mxu2 }
 0x53b   : > { %v3450_v20 = vrot.slane %v8752_v9, 2 }
 0x53c   : > { %5402 = vmatmul.msk.bf16.gmra.mxu0 %vm862_vm3, %v4204_v7  ;;  %v4403_v50 = vadd.f32 %v4307_v4, %v4049_v40  ;;  %v4404_v14 = vadd.f32 %v4308_v22, %v4050_v59  ;;  %v4405_v17 = vadd.f32 %v4309_v52, %v4051_v44  ;;  %v3447_v59 = vrot.slane %v8716_v34, 2 }
 0x53d   : > { %v3448_v44 = vrot.slane %v8716_v34, 4  ;;  %v3453_v7 = vrot.slane %v8559_v6, 4 }
 0x53e   : > { %v4477_v15 = vadd.f32 %v8710_v10, %v4403_v50  ;;  %v4478_v47 = vadd.f32 %v8721_v16, %v4404_v14  ;;  %v4479_v26 = vadd.f32 %v8724_v55, %v4405_v17  ;;  %v8764_v50 = vrot.slane %v3740_v53, 7 }
 0x53f   : > { %v3824_v14 = vrot.slane %v3741_v57, 7  ;;  %v4056_v17 = vadd.f32 %v3809_v24, %v3446_v27  ;;  %v3830_v53 = vrot.slane %v8718_v21, 7 }
 0x540   : > { %4605 = vst [vmem:[#allocation1] ss:$4 sm:$0xff] %v4477_v15  ;;  %v3451_v15 = vrot.slane %v8752_v9, 4 }
 0x541   : > { %v4246_v37 = vpop.f32.mrf.mxu0  ;;  %4607 = vst [vmem:[#allocation1 + $0x1] ss:$4 sm:$0xff] %v4478_v47  ;;  %v3452_v47 = vrot.slane %v8752_v9, 6 }
 0x542   : > { %v4310_v29 = vrot.slane %v4246_v37, 2  ;;  %v4311_v13 = vrot.slane %v4246_v37, 4  ;;  %v4312_v19 = vrot.slane %v4246_v37, 6  ;;  %v4406_v62 = vadd.f32 %v4246_v37, %v4052_v30  ;;  %4609 = vst [vmem:[#allocation1 + $0x2] ss:$4 sm:$0xff] %v4479_v26 }
 0x543   : > { %v3455_v26 = vrot.slane %v8565_v51, 2  ;;  %v3456_v30 = vrot.slane %v8565_v51, 4 }
 0x544   : > { %v4407_v40 = vadd.f32 %v4310_v29, %v4053_v11  ;;  %v4408_v4 = vadd.f32 %v4311_v13, %v4054_v56  ;;  %v4409_v22 = vadd.f32 %v4312_v19, %v4055_v25  ;;  %v4480_v52 = vadd.f32 %v8742_v32, %v4406_v62  ;;  %v8779_v29 = vpop.f32.mrf.mxu3 }
 0x545   : > { %v3457_v13 = vrot.slane %v8565_v51, 6  ;;  %v3738_v62 = vrot.slane %v8696_v54, 4  ;;  %v3823_v11 = vrot.slane %v8764_v50, 2  ;;  %v3826_v56 = vrot.slane %v3824_v14, 2 }
 0x546   : > { %v4481_v63 = vadd.f32 %v8710_v10, %v4407_v40  ;;  %v4482_v28 = vadd.f32 %v8721_v16, %v4408_v4  ;;  %v4483_v39 = vadd.f32 %v8724_v55, %v4409_v22  ;;  %4611 = vst [vmem:[#allocation1 + $0x3] ss:$4 sm:$0xff] %v4480_v52  ;;  %v3827_v22 = vrot.slane %v3742_v8, 7 }
 0x547   : > { %v3747_v25 = vrot.slane %v8744_v42, 4 }
 0x548   : > { %4613 = vst [vmem:[#allocation1 + $0x20] ss:$4 sm:$0xff] %v4481_v63  ;;  %v3828_v40 = vsel %vm6589_vm10, %v3826_v56, %v3827_v22  ;;  %v3829_v56 = vrot.slane %v3827_v22, 2 }
 0x549   : > { %v8770_v38 = vpop.f32.mrf.mxu0  ;;  %4615 = vst [vmem:[#allocation1 + $0x21] ss:$4 sm:$0xff] %v4482_v28  ;;  %v4062_v27 = vadd.f32 %v3828_v40, %v3451_v15  ;;  %v3832_v28 = vrot.slane %v3830_v53, 2 }
 0x54a   : > { %v4410_v60 = vadd.f32 %v8770_v38, %v4056_v17  ;;  %4617 = vst [vmem:[#allocation1 + $0x22] ss:$4 sm:$0xff] %v4483_v39  ;;  %v3739_v39 = vrot.slane %v8696_v54, 6  ;;  %v3812_v17 = vrot.slane %v3738_v62, 7  ;;  %v3818_v62 = vrot.slane %v8703_v0, 7 }
 0x54b   : > { %v3831_v37 = vsel %vm6589_vm10, %v3829_v56, %v3830_v53 }
 0x54c   : > { %v4484_v57 = vadd.f32 %v8742_v32, %v4410_v60  ;;  %v3825_v60 = vsel %vm6589_vm10, %v3823_v11, %v3824_v14  ;;  %v8812_v8 = vpop.f32.mrf.mxu3  ;;  %v3814_v63 = vrot.slane %v3812_v17, 2  ;;  %v3815_v43 = vrot.slane %v3739_v39, 7 }
 0x54d   : > { %v4061_v52 = vadd.f32 %v3825_v60, %v3450_v20  ;;  %v5369_v11 = vrot.slane %v8696_v54, 11  ;;  %v5370_v20 = vrot.slane %v8718_v21, 9  ;;  %v3820_v56 = vrot.slane %v3818_v62, 2 }
 0x54e   : > { %4619 = vst [vmem:[#allocation1 + $0x23] ss:$4 sm:$0xff] %v4484_v57 }
 0x54f   : > { %v3813_v53 = vsel %vm6589_vm10, %v5369_v11, %v3812_v17  ;;  %v3834_v54 = vsel %vm6589_vm10, %v3832_v28, %v5370_v20  ;;  %v3748_v17 = vrot.slane %v8744_v42, 6  ;;  %v3822_v22 = vsel %vm6589_vm10, %v3820_v56, %v8764_v50 }
 0x550   : > { %v4057_v20 = vadd.f32 %v3813_v53, %v3447_v59  ;;  %v5372_v50 = vrot.slane %v8718_v21, 13  ;;  %v4060_v34 = vadd.f32 %v3822_v22, %v8752_v9 }
 0x551   : > { %v8805_v4 = vpop.f32.mrf.mxu0  ;;  %v3849_v53 = vrot.slane %v3748_v17, 7 }
 0x552   : > { %v4316_v24 = vrot.slane %v8805_v4, 4  ;;  %v4317_v14 = vrot.slane %v8805_v4, 6 }
 0x554   : > { %v4415_v19 = vadd.f32 %v4316_v24, %v4061_v52  ;;  %v4416_v57 = vadd.f32 %v4317_v14, %v4062_v27  ;;  %v8826_v27 = vrot.slane %v3747_v25, 7  ;;  %v4063_v52 = vadd.f32 %v3831_v37, %v3452_v47  ;;  %v8846_v37 = vpop.f32.mrf.mxu3 }
 0x555   : > { %v8830_v24 = vld.sshfl [vmem:[#allocation1 + $0x20] sm:$0xff pattern:$0x73625140]  ;;  %v3817_v14 = vrot.slane %v3815_v43, 2 }
 0x556   : > { %v4489_v39 = vadd.f32 %v8710_v10, %v4415_v19  ;;  %v4490_v0 = vadd.f32 %v8721_v16, %v4416_v57  ;;  %v3816_v19 = vsel %vm6589_vm10, %v3814_v63, %v3815_v43  ;;  %v4313_v57 = vrot.slane %v8770_v38, 4 }
 0x557   : > { %v4314_v43 = vrot.slane %v8770_v38, 6  ;;  %v4064_v63 = vadd.f32 %v3834_v54, %v8559_v6  ;;  %v3848_v60 = vrot.slane %v8826_v27, 2  ;;  %v4058_v40 = vadd.f32 %v3816_v19, %v3448_v44 }
 0x558   : > { %4626 = vst [vmem:[#allocation1 + $0x20] ss:$4 sm:$0xff] %v4489_v39  ;;  %v3745_v39 = vrot.slane %v8718_v21, 6  ;;  %v3746_v38 = vrot.slane %v8744_v42, 2  ;;  %v4411_v54 = vadd.f32 %v4313_v57, %v4057_v20  ;;  %v3852_v19 = vrot.slane %v8779_v29, 7 }
 0x559   : > { %v8839_v25 = vpop.f32.mrf.mxu0  ;;  %4627 = vst [vmem:[#allocation1 + $0x21] ss:$4 sm:$0xff] %v4490_v0  ;;  %v3749_v0 = vrot.slane %v8779_v29, 2  ;;  %v4412_v3 = vadd.f32 %v4314_v43, %v4058_v40  ;;  %v3850_v17 = vsel %vm6589_vm10, %v3848_v60, %v3849_v53  ;;  %v3487_v57 = vrot.slane %v8677_v31, 2 }
 0x55a   : > { %v4318_v28 = vrot.slane %v8839_v25, 2  ;;  %v4417_v11 = vadd.f32 %v8839_v25, %v4063_v52  ;;  %v3819_v52 = vsel %vm6589_vm10, %v3817_v14, %v3818_v62  ;;  %v4315_v14 = vrot.slane %v8805_v4, 2 }
 0x55b   : > { %v4059_v62 = vadd.f32 %v3819_v52, %v3449_v23  ;;  %v3837_v44 = vrot.slane %v3745_v39, 7  ;;  %v3840_v40 = vrot.slane %v8744_v42, 7  ;;  %v4485_v56 = vadd.f32 %v8710_v10, %v4411_v54 }
 0x55c   : > { %v4418_v15 = vadd.f32 %v4318_v28, %v4064_v63  ;;  %v4491_v59 = vadd.f32 %v8724_v55, %v4417_v11  ;;  %v3855_v28 = vrot.slane %v3749_v0, 7  ;;  %v3851_v60 = vrot.slane %v3849_v53, 2  ;;  %v8884_v63 = vpop.f32.mrf.mxu3 }
 0x55d   : > { %v4413_v11 = vadd.f32 %v8805_v4, %v4059_v62  ;;  %v4486_v43 = vadd.f32 %v8721_v16, %v4412_v3  ;;  %v4414_v21 = vadd.f32 %v4315_v14, %v4060_v34  ;;  %v4069_v42 = vadd.f32 %v3850_v17, %v3456_v30  ;;  %v8893_v3 = vld.sshfl [vmem:[#allocation1] sm:$0xff pattern:$0x73625140] }
 0x55e   : > { %v4492_v47 = vadd.f32 %v8742_v32, %v4418_v15  ;;  %4628 = vst [vmem:[#allocation1 + $0x22] ss:$4 sm:$0xff] %v4491_v59  ;;  %v8878_v15 = vrot.slane %v3746_v38, 7  ;;  %v3839_v9 = vrot.slane %v3837_v44, 2  ;;  %v3854_v22 = vrot.slane %v3852_v19, 2 }
 0x55f   : > { %v3838_v39 = vsel %vm6589_vm10, %v5372_v50, %v3837_v44  ;;  %v3488_v0 = vrot.slane %v8677_v31, 4  ;;  %v3842_v4 = vrot.slane %v3840_v40, 2  ;;  %v3853_v59 = vsel %vm6589_vm10, %v3851_v60, %v3852_v19  ;;  %4622 = vst [vmem:[#allocation1] ss:$4 sm:$0xff] %v4485_v56 }
 0x560   : > { %4629 = vst [vmem:[#allocation1 + $0x23] ss:$4 sm:$0xff] %v4492_v47  ;;  %v3857_v47 = vrot.slane %v3855_v28, 2  ;;  %v5373_v38 = vrot.slane %v8779_v29, 11  ;;  %v3752_v53 = vrot.slane %v8812_v8, 2  ;;  %v4487_v30 = vadd.f32 %v8724_v55, %v4413_v11 }
 0x561   : > { %v8876_v23 = vpop.f32.mrf.mxu0  ;;  %v3841_v54 = vsel %vm6589_vm10, %v3839_v9, %v3840_v40  ;;  %v3845_v62 = vrot.slane %v8878_v15, 2  ;;  %v4488_v14 = vadd.f32 %v8742_v32, %v4414_v21  ;;  %v4065_v44 = vadd.f32 %v3838_v39, %v3453_v7  ;;  %4623 = vst [vmem:[#allocation1 + $0x1] ss:$4 sm:$0xff] %v4486_v43 }
 0x562   : > { %v4322_v20 = vrot.slane %v8876_v23, 6  ;;  %v3862_v17 = vrot.slane %v8812_v8, 7  ;;  %v3856_v34 = vsel %vm6589_vm10, %v3854_v22, %v3855_v28  ;;  %v3859_v40 = vsel %vm6589_vm10, %v3857_v47, %v5373_v38  ;;  %4624 = vst [vmem:[#allocation1 + $0x2] ss:$4 sm:$0xff] %v4487_v30 }
 0x563   : > { %v4070_v56 = vadd.f32 %v3853_v59, %v3457_v13  ;;  %v5375_v11 = vrot.slane %v8779_v29, 15  ;;  %v3753_v7 = vrot.slane %v8812_v8, 4  ;;  %v4066_v60 = vadd.f32 %v3841_v54, %v3454_v48  ;;  %4625 = vst [vmem:[#allocation1 + $0x3] ss:$4 sm:$0xff] %v4488_v14 }
 0x564   : > { %v4423_v52 = vadd.f32 %v4322_v20, %v4069_v42  ;;  %v3754_v20 = vrot.slane %v8812_v8, 6  ;;  %v3865_v21 = vrot.slane %v3752_v53, 7  ;;  %v3756_v22 = vrot.slane %v8846_v37, 4  ;;  %v8920_v47 = vpop.f32.mrf.mxu3 }
 0x565   : > { %v3844_v29 = vsel %vm6589_vm10, %v3842_v4, %v8878_v15  ;;  %v4071_v13 = vadd.f32 %v3856_v34, %v8576_v5  ;;  %v4072_v6 = vadd.f32 %v3859_v40, %v3458_v45  ;;  %v3864_v48 = vrot.slane %v3862_v17, 2 }
 0x566   : > { %v4497_v19 = vadd.f32 %v8710_v10, %v4423_v52  ;;  %v3755_v8 = vrot.slane %v8846_v37, 2  ;;  %v4319_v39 = vrot.slane %v8839_v25, 6  ;;  %v3847_v52 = vsel %vm6589_vm10, %v3845_v62, %v8826_v27 }
 0x567   : > { %v8906_v50 = vld.sshfl [vmem:[#allocation1 + $0x20] sm:$0xff pattern:$0x73625140]  ;;  %v3868_v59 = vrot.slane %v3753_v7, 7  ;;  %v3867_v4 = vrot.slane %v3865_v21, 2  ;;  %v3871_v30 = vrot.slane %v3754_v20, 7  ;;  %v3863_v45 = vsel %vm6589_vm10, %v5375_v11, %v3862_v17 }
 0x568   : > { %4636 = vst [vmem:[#allocation1 + $0x20] ss:$4 sm:$0xff] %v4497_v19  ;;  %v4320_v54 = vrot.slane %v8876_v23, 2  ;;  %v3880_v14 = vrot.slane %v3756_v22, 7  ;;  %v4321_v19 = vrot.slane %v8876_v23, 4  ;;  %v3874_v27 = vrot.slane %v8846_v37, 7 }
 0x569   : > { %v4259_v43 = vpop.f32.mrf.mxu0  ;;  %v3877_v62 = vrot.slane %v3755_v8, 7  ;;  %v4419_v40 = vadd.f32 %v4319_v39, %v4065_v44  ;;  %v3870_v7 = vrot.slane %v3868_v59, 2  ;;  %v3758_v20 = vrot.slane %v8884_v63, 2 }
 0x56a   : > { %v4323_v42 = vrot.slane %v4259_v43, 2  ;;  %v4324_v28 = vrot.slane %v4259_v43, 4  ;;  %v4424_v9 = vadd.f32 %v4259_v43, %v4070_v56  ;;  %v4067_v56 = vadd.f32 %v3844_v29, %v8565_v51 }
 0x56b   : > { %v4068_v17 = vadd.f32 %v3847_v52, %v3455_v26  ;;  %v4420_v11 = vadd.f32 %v8876_v23, %v4066_v60  ;;  %v8952_v44 = vadd.f32 %v3863_v45, %v3459_v36  ;;  %v3882_v22 = vrot.slane %v3880_v14, 2  ;;  %v8975_v45 = vld.sshfl [vmem:[#allocation1] sm:$0xff pattern:$0x73625140] }
 0x56c   : > { %v4425_v38 = vadd.f32 %v4323_v42, %v4071_v13  ;;  %v4426_v53 = vadd.f32 %v4324_v28, %v4072_v6  ;;  %v4498_v15 = vadd.f32 %v8721_v16, %v4424_v9  ;;  %v3873_v42 = vrot.slane %v3871_v30, 2  ;;  %v8955_v51 = vpop.f32.mrf.mxu3 }
 0x56d   : > { %v4421_v28 = vadd.f32 %v4320_v54, %v4067_v56  ;;  %v3866_v9 = vsel %vm6589_vm10, %v3864_v48, %v3865_v21  ;;  %v3759_v29 = vrot.slane %v8884_v63, 4  ;;  %v4422_v26 = vadd.f32 %v4321_v19, %v4068_v17 }
 0x56e   : > { %v4499_v25 = vadd.f32 %v8724_v55, %v4425_v38  ;;  %v4500_v34 = vadd.f32 %v8742_v32, %v4426_v53  ;;  %4637 = vst [vmem:[#allocation1 + $0x21] ss:$4 sm:$0xff] %v4498_v15  ;;  %v3869_v23 = vsel %vm6589_vm10, %v3867_v4, %v3868_v59  ;;  %v3876_v60 = vrot.slane %v3874_v27, 2 }
 0x56f   : > { %v3879_v13 = vrot.slane %v3877_v62, 2  ;;  %v5376_v6 = vrot.slane %v8846_v37, 13  ;;  %v4493_v8 = vadd.f32 %v8710_v10, %v4419_v40  ;;  %v3760_v21 = vrot.slane %v8884_v63, 6 }
 0x570   : > { %4638 = vst [vmem:[#allocation1 + $0x22] ss:$4 sm:$0xff] %v4499_v25  ;;  %v3887_v5 = vrot.slane %v3758_v20, 7  ;;  %v4494_v36 = vadd.f32 %v8721_v16, %v4420_v11  ;;  %v3875_v48 = vsel %vm6589_vm10, %v3873_v42, %v3874_v27  ;;  %v4495_v39 = vadd.f32 %v8724_v55, %v4421_v28 }
 0x571   : > { %v8946_v43 = vpop.f32.mrf.mxu0  ;;  %4639 = vst [vmem:[#allocation1 + $0x23] ss:$4 sm:$0xff] %v4500_v34  ;;  %v3872_v52 = vsel %vm6589_vm10, %v3870_v7, %v3871_v30  ;;  %v4074_v59 = vadd.f32 %v3866_v9, %v8584_v18  ;;  %v10170_v38 = vrot.slane %v8584_v18, 2  ;;  %v3884_v53 = vsel %vm6589_vm10, %v3882_v22, %v5376_v6 }
 0x572   : > { %v5377_v15 = vrot.slane %v8884_v63, 9  ;;  %v3890_v4 = vrot.slane %v3759_v29, 7  ;;  %v4496_v54 = vadd.f32 %v8742_v32, %v4422_v26  ;;  %v3761_v19 = vrot.slane %v8920_v47, 2  ;;  %4632 = vst [vmem:[#allocation1] ss:$4 sm:$0xff] %v4493_v8 }
 0x573   : > { %v4075_v37 = vadd.f32 %v3869_v23, %v10170_v38  ;;  %v3878_v30 = vsel %vm6589_vm10, %v3876_v60, %v3877_v62  ;;  %v3881_v25 = vsel %vm6589_vm10, %v3879_v13, %v3880_v14  ;;  %v10171_v34 = vrot.slane %v8584_v18, 6  ;;  %4633 = vst [vmem:[#allocation1 + $0x1] ss:$4 sm:$0xff] %v4494_v36 }
 0x574   : > { %v3889_v40 = vrot.slane %v3887_v5, 2  ;;  %v8984_v56 = vrot.slane %v3760_v21, 7  ;;  %v3762_v63 = vrot.slane %v8920_v47, 4  ;;  %v3763_v7 = vrot.slane %v8920_v47, 6  ;;  %4634 = vst [vmem:[#allocation1 + $0x2] ss:$4 sm:$0xff] %v4495_v39  ;;  %v8996_v13 = vpop.f32.mrf.mxu3 }
 0x575   : > { %v4077_v27 = vadd.f32 %v3875_v48, %v10171_v34  ;;  %v3892_v28 = vrot.slane %v3890_v4, 2  ;;  %v4078_v14 = vadd.f32 %v3878_v30, %v8593_v46  ;;  %v10172_v9 = vrot.slane %v8593_v46, 2  ;;  %4635 = vst [vmem:[#allocation1 + $0x3] ss:$4 sm:$0xff] %v4496_v54 }
 0x576   : > { %v10173_v29 = vrot.slane %v8593_v46, 4  ;;  %v3896_v23 = vrot.slane %v8920_v47, 7  ;;  %v8994_v60 = vrot.slane %v3761_v19, 7  ;;  %v4325_v6 = vrot.slane %v8946_v43, 2 }
 0x577   : > { %v4079_v22 = vadd.f32 %v3881_v25, %v10172_v9  ;;  %v4692_v8 = vrot.slane %v8893_v3, 7  ;;  %v3902_v38 = vrot.slane %v3762_v63, 7  ;;  %v9001_v30 = vrot.slane %v3763_v7, 7 }
 0x578   : > { %v4080_v26 = vadd.f32 %v3884_v53, %v10173_v29  ;;  %v9003_v46 = vld.sshfl [vmem:[#allocation1 + $0x20] sm:$0xff pattern:$0x73625140]  ;;  %v10174_v47 = vrot.slane %v8584_v18, 4  ;;  %v4326_v54 = vrot.slane %v8946_v43, 4  ;;  %v4327_v19 = vrot.slane %v8946_v43, 6 }
 0x579   : > { %v4264_v20 = vpop.f32.mrf.mxu0  ;;  %v3888_v63 = vsel %vm6589_vm10, %v5377_v15, %v3887_v5  ;;  %v3891_v18 = vsel %vm6589_vm10, %v3889_v40, %v3890_v4  ;;  %v3765_v7 = vrot.slane %v8955_v51, 4  ;;  %v3898_v5 = vrot.slane %v3896_v23, 2 }
 0x57a   : > { %v4328_v17 = vrot.slane %v4264_v20, 2  ;;  %v4329_v11 = vrot.slane %v4264_v20, 4  ;;  %v4330_v42 = vrot.slane %v4264_v20, 6  ;;  %v4431_v62 = vadd.f32 %v4264_v20, %v4077_v27 }
 0x57b   : > { %v4076_v53 = vadd.f32 %v3872_v52, %v10174_v47  ;;  %v4427_v27 = vadd.f32 %v8946_v43, %v8952_v44  ;;  %v3894_v52 = vsel %vm6589_vm10, %v3892_v28, %v8984_v56  ;;  %v3766_v20 = vrot.slane %v8955_v51, 6  ;;  %v5512_v28 = vld [vmem:[%s5757_s26 + $0x30] sm:$0xff] }
 0x57c   : > { %v4432_v21 = vadd.f32 %v4328_v17, %v4078_v14  ;;  %v4433_v36 = vadd.f32 %v4329_v11, %v4079_v22  ;;  %v4434_v48 = vadd.f32 %v4330_v42, %v4080_v26  ;;  %v4505_v39 = vadd.f32 %v8710_v10, %v4431_v62 }
 0x57d   : > { %v4428_v17 = vadd.f32 %v4325_v6, %v4074_v59  ;;  %v4693_v43 = vrot.slane %v8830_v24, 7  ;;  %v3895_v44 = vrot.slane %v8984_v56, 2  ;;  %v3901_v15 = vrot.slane %v8994_v60, 2 }
 0x57e   : > { %v4506_v25 = vadd.f32 %v8721_v16, %v4432_v21  ;;  %v4507_v3 = vadd.f32 %v8724_v55, %v4433_v36  ;;  %v4508_v34 = vadd.f32 %v8742_v32, %v4434_v48  ;;  %4646 = vst [vmem:[#allocation1 + $0x20] ss:$4 sm:$0xff] %v4505_v39  ;;  %v4429_v4 = vadd.f32 %v4326_v54, %v4075_v37  ;;  %v9044_v48 = vpop.f32.mrf.mxu3 }
 0x57f   : > { %v3904_v40 = vrot.slane %v3902_v38, 2  ;;  %v3907_v42 = vrot.slane %v9001_v30, 2  ;;  %v4430_v62 = vadd.f32 %v4327_v19, %v4076_v53  ;;  %v9030_v14 = vadd.f32 %v5512_v28, %v4692_v8 }
 0x580   : > { %4647 = vst [vmem:[#allocation1 + $0x21] ss:$4 sm:$0xff] %v4506_v25  ;;  %v4501_v59 = vadd.f32 %v8710_v10, %v4427_v27  ;;  %v4081_v9 = vadd.f32 %v3888_v63, %v8604_v49  ;;  %v10175_v22 = vrot.slane %v8604_v49, 2  ;;  %v10176_v29 = vrot.slane %v8604_v49, 4 }
 0x581   : > { %v9023_v11 = vpop.f32.mrf.mxu0  ;;  %4648 = vst [vmem:[#allocation1 + $0x22] ss:$4 sm:$0xff] %v4507_v3  ;;  %v3912_v37 = vrot.slane %v3765_v7, 7  ;;  %v3915_v6 = vrot.slane %v3766_v20, 7  ;;  %v4502_v21 = vadd.f32 %v8721_v16, %v4428_v17  ;;  %v4694_v36 = vsel %vm1408_vm4, %v4692_v8, %v4693_v43 }
 0x582   : > { %4649 = vst [vmem:[#allocation1 + $0x23] ss:$4 sm:$0xff] %v4508_v34  ;;  %v4082_v56 = vadd.f32 %v3891_v18, %v10175_v22  ;;  %v9038_v26 = vadd.f32 %v3894_v52, %v10176_v29  ;;  %v4503_v39 = vadd.f32 %v8724_v55, %v4429_v4  ;;  %v3897_v47 = vsel %vm6589_vm10, %v3895_v44, %v3896_v23  ;;  %v9058_v34 = vld.sshfl [vmem:[#allocation1] sm:$0xff pattern:$0x73625140] }
 0x583   : > { %v3900_v53 = vsel %vm6589_vm10, %v3898_v5, %v8994_v60  ;;  %v3903_v54 = vsel %vm6589_vm10, %v3901_v15, %v3902_v38  ;;  %v3767_v19 = vrot.slane %v8996_v13, 2  ;;  %v3768_v25 = vrot.slane %v8996_v13, 4  ;;  %4642 = vst [vmem:[#allocation1] ss:$4 sm:$0xff] %v4501_v59  ;;  %v5513_v38 = vld [vmem:[%s5757_s26 + $0x38] sm:$0xff] }
 0x584   : > { %v3769_v8 = vrot.slane %v8996_v13, 6  ;;  %v4504_v3 = vadd.f32 %v8742_v32, %v4430_v62  ;;  %v3908_v27 = vrot.slane %v8955_v51, 7  ;;  %v3906_v23 = vsel %vm6589_vm10, %v3904_v40, %v9001_v30  ;;  %4643 = vst [vmem:[#allocation1 + $0x1] ss:$4 sm:$0xff] %v4502_v21 }
 0x585   : > { %v4695_v60 = vrot.slane %v8975_v45, 7  ;;  %v9066_v63 = vadd.f32 %v5513_v38, %v4694_v36  ;;  %v5379_v18 = vrot.slane %v8955_v51, 11  ;;  %v3914_v52 = vrot.slane %v3912_v37, 2  ;;  %4644 = vst [vmem:[#allocation1 + $0x2] ss:$4 sm:$0xff] %v4503_v39 }
 0x586   : > { %v3917_v7 = vrot.slane %v3915_v6, 2  ;;  %v4789_v17 = vrot.slane %v9030_v14, 1  ;;  %v3918_v44 = vrot.slane %v8996_v13, 7  ;;  %v10177_v30 = vrot.slane %v8604_v49, 6  ;;  %4645 = vst [vmem:[#allocation1 + $0x3] ss:$4 sm:$0xff] %v4504_v3 }
 0x587   : > { %v4085_v45 = vadd.f32 %v3900_v53, %v8610_v12  ;;  %v10178_v15 = vrot.slane %v8610_v12, 2  ;;  %v3921_v51 = vrot.slane %v3767_v19, 7  ;;  %v3924_v40 = vrot.slane %v3768_v25, 7  ;;  %v5514_v14 = vld [vmem:[%s5757_s26 + $0x48] sm:$0xff] }
 0x588   : > { %v4084_v5 = vadd.f32 %v3897_v47, %v10177_v30  ;;  %v9080_v62 = vrot.slane %v3769_v8, 7  ;;  %v10179_v28 = vrot.slane %v8610_v12, 4  ;;  %v4331_v13 = vrot.slane %v9023_v11, 2 }
 0x589   : > { %v9069_v20 = vpop.f32.mrf.mxu0  ;;  %v9078_v4 = vadd.f32 %v3903_v54, %v10178_v15  ;;  %v3909_v49 = vsel %vm6589_vm10, %v3907_v42, %v3908_v27  ;;  %v9088_v22 = vadd.f32 %v5514_v14, %v4695_v60  ;;  %v9806_v29 = vrot.slane %v9066_v63, 1  ;;  %v9102_v27 = vpop.f32.mrf.mxu3 }
 0x58a   : > { %v4087_v59 = vadd.f32 %v3906_v23, %v10179_v28  ;;  %v4332_v21 = vrot.slane %v9023_v11, 4  ;;  %v3913_v36 = vsel %vm6589_vm10, %v5379_v18, %v3912_v37  ;;  %v3916_v39 = vsel %vm6589_vm10, %v3914_v52, %v3915_v6 }
 0x58b   : > { %v9807_v47 = vrot.slane %v8906_v50, 7  ;;  %v3920_v53 = vrot.slane %v3918_v44, 2  ;;  %v4333_v54 = vrot.slane %v9023_v11, 6  ;;  %v3919_v42 = vsel %vm6589_vm10, %v3917_v7, %v3918_v44 }
 0x58c   : > { %v3923_v19 = vrot.slane %v3921_v51, 2  ;;  %v3926_v25 = vrot.slane %v3924_v40, 2  ;;  %v3929_v8 = vrot.slane %v9080_v62, 2  ;;  %v3772_v3 = vrot.slane %v9044_v48, 6 }
 0x58d   : > { %v4435_v37 = vadd.f32 %v4331_v13, %v4081_v9  ;;  %v10180_v6 = vrot.slane %v8610_v12, 6  ;;  %v10181_v38 = vrot.slane %v8621_v58, 2  ;;  %v10182_v11 = vrot.slane %v8621_v58, 4 }
 0x58e   : > { %v4436_v7 = vadd.f32 %v4332_v21, %v4082_v56  ;;  %v10183_v30 = vrot.slane %v8621_v58, 6  ;;  %v4697_v12 = vsel %vm1408_vm4, %v4695_v60, %v9807_v47  ;;  %v9126_v9 = vsel %vm4788_vm0, %v4789_v17, %v9806_v29 }
 0x58f   : > { %v4088_v23 = vadd.f32 %v3909_v49, %v10180_v6  ;;  %v9108_v18 = vadd.f32 %v3913_v36, %v10181_v38  ;;  %v9112_v52 = vadd.f32 %v3916_v39, %v10182_v11  ;;  %v3930_v28 = vrot.slane %v9044_v48, 7 }
 0x590   : > { %v9118_v15 = vadd.f32 %v3919_v42, %v10183_v30  ;;  %v5380_v13 = vrot.slane %v9044_v48, 9  ;;  %v4437_v56 = vadd.f32 %v4333_v54, %v9038_v26  ;;  %v4794_v49 = vrot.slane %v9088_v22, 1 }
 0x591   : > { %v9114_v44 = vpop.f32.mrf.mxu0  ;;  %v5382_v58 = vrot.slane %v9044_v48, 13  ;;  %v3937_v14 = vrot.slane %v3772_v3, 7  ;;  %v4438_v21 = vadd.f32 %v9069_v20, %v4084_v5  ;;  %v3922_v60 = vsel %vm6589_vm10, %v3920_v53, %v3921_v51 }
 0x592   : > { %v3773_v36 = vrot.slane %v9102_v27, 2  ;;  %v4509_v17 = vadd.f32 %v8710_v10, %v4435_v37  ;;  %v4334_v39 = vrot.slane %v9069_v20, 2  ;;  %v3925_v42 = vsel %vm6589_vm10, %v3923_v19, %v3924_v40 }
 0x593   : > { %v4510_v26 = vadd.f32 %v8721_v16, %v4436_v7  ;;  %v4335_v54 = vrot.slane %v9069_v20, 4  ;;  %v4336_v48 = vrot.slane %v9069_v20, 6  ;;  %v3928_v5 = vsel %vm6589_vm10, %v3926_v25, %v9080_v62  ;;  %v9153_v20 = vld.sshfl [vmem:[#allocation1] sm:$0xff pattern:$0x73625140] }
 0x594   : > { %v3774_v51 = vrot.slane %v9102_v27, 4  ;;  %v3775_v53 = vrot.slane %v9102_v27, 6  ;;  %v3940_v3 = vrot.slane %v9102_v27, 7  ;;  %v4511_v37 = vadd.f32 %v8724_v55, %v4437_v56  ;;  %4652 = vst [vmem:[#allocation1] ss:$4 sm:$0xff] %v4509_v17 }
 0x595   : > { %v3932_v40 = vrot.slane %v3930_v28, 2  ;;  %v3939_v19 = vrot.slane %v3937_v14, 2  ;;  %v4512_v6 = vadd.f32 %v8742_v32, %v4438_v21  ;;  %v4092_v38 = vadd.f32 %v3922_v60, %v8631_v33  ;;  %4653 = vst [vmem:[#allocation1 + $0x1] ss:$4 sm:$0xff] %v4510_v26  ;;  %v5515_v60 = vld [vmem:[%s5757_s26 + $0x50] sm:$0xff] }
 0x596   : > { %v3943_v11 = vrot.slane %v3773_v36, 7  ;;  %v4439_v7 = vadd.f32 %v4334_v39, %v4085_v45  ;;  %v10184_v62 = vrot.slane %v8631_v33, 2  ;;  %v10185_v30 = vrot.slane %v8631_v33, 4  ;;  %4654 = vst [vmem:[#allocation1 + $0x2] ss:$4 sm:$0xff] %v4511_v37 }
 0x597   : > { %v4440_v56 = vadd.f32 %v4335_v54, %v9078_v4  ;;  %v4441_v29 = vadd.f32 %v4336_v48, %v4087_v59  ;;  %v4698_v21 = vrot.slane %v9058_v34, 7  ;;  %v9168_v36 = vadd.f32 %v5515_v60, %v4697_v12  ;;  %4655 = vst [vmem:[#allocation1 + $0x3] ss:$4 sm:$0xff] %v4512_v6 }
 0x598   : > { %v9157_v25 = vadd.f32 %v3925_v42, %v10184_v62  ;;  %v9161_v27 = vadd.f32 %v3928_v5, %v10185_v30  ;;  %v3942_v45 = vrot.slane %v3940_v3, 2  ;;  %v3946_v39 = vrot.slane %v3774_v51, 7  ;;  %v9170_v62 = vpop.f32.mrf.mxu3 }
 0x599   : > { %v9164_v47 = vpop.f32.mrf.mxu0  ;;  %v3949_v42 = vrot.slane %v3775_v53, 7  ;;  %v3931_v17 = vsel %vm6589_vm10, %v3929_v8, %v3930_v28  ;;  %v4337_v4 = vrot.slane %v9114_v44, 4  ;;  %v4442_v59 = vadd.f32 %v9114_v44, %v4088_v23  ;;  %v5516_v53 = vld [vmem:[%s5757_s26 + $0x60] sm:$0xff] }
 0x59a   : > { %v3934_v34 = vsel %vm6589_vm10, %v3932_v40, %v5380_v13  ;;  %v4848_v12 = vrot.slane %v9126_v9, 4  ;;  %v3945_v26 = vrot.slane %v3943_v11, 2  ;;  %v4513_v54 = vadd.f32 %v8710_v10, %v4439_v7  ;;  %v9197_v7 = vld.sshfl [vmem:[#allocation1 + $0x20] sm:$0xff pattern:$0x73625140] }
 0x59b   : > { %v4338_v48 = vrot.slane %v9114_v44, 6  ;;  %v3938_v5 = vsel %vm6589_vm10, %v5382_v58, %v3937_v14  ;;  %v4514_v8 = vadd.f32 %v8721_v16, %v4440_v56  ;;  %v4515_v28 = vadd.f32 %v8724_v55, %v4441_v29 }
 0x59c   : > { %v10186_v23 = vrot.slane %v8631_v33, 6  ;;  %v9188_v13 = vadd.f32 %v5516_v53, %v4698_v21  ;;  %v3948_v37 = vrot.slane %v3946_v39, 2  ;;  %v3951_v40 = vrot.slane %v3949_v42, 2  ;;  %4656 = vst [vmem:[#allocation1 + $0x20] ss:$4 sm:$0xff] %v4513_v54 }
 0x59d   : > { %v3941_v6 = vsel %vm6589_vm10, %v3939_v19, %v3940_v3  ;;  %v3944_v44 = vsel %vm6589_vm10, %v3942_v45, %v3943_v11  ;;  %v4443_v58 = vadd.f32 %v4337_v4, %v9108_v18  ;;  %v4516_v14 = vadd.f32 %v8742_v32, %v4442_v59  ;;  %4657 = vst [vmem:[#allocation1 + $0x21] ss:$4 sm:$0xff] %v4514_v8 }
 0x59e   : > { %v4095_v51 = vadd.f32 %v3931_v17, %v10186_v23  ;;  %v4339_v29 = vrot.slane %v9164_v47, 2  ;;  %v4699_v33 = vrot.slane %v9003_v46, 7  ;;  %v3776_v30 = vrot.slane %v9170_v62, 2  ;;  %4658 = vst [vmem:[#allocation1 + $0x22] ss:$4 sm:$0xff] %v4515_v28 }
 0x59f   : > { %v4444_v56 = vadd.f32 %v4338_v48, %v9112_v52  ;;  %v4340_v60 = vrot.slane %v9164_v47, 4  ;;  %v3947_v3 = vsel %vm6589_vm10, %v3945_v26, %v3946_v39  ;;  %v3952_v18 = vrot.slane %v9170_v62, 7  ;;  %4659 = vst [vmem:[#allocation1 + $0x23] ss:$4 sm:$0xff] %v4516_v14 }
 0x5a0   : > { %v4341_v19 = vrot.slane %v9164_v47, 6  ;;  %v4445_v11 = vadd.f32 %v9164_v47, %v9118_v15  ;;  %v4096_v45 = vadd.f32 %v3934_v34, %v8638_v61  ;;  %v10187_v4 = vrot.slane %v8638_v61, 4  ;;  %v9220_v53 = vpop.f32.mrf.mxu3 }
 0x5a1   : > { %v4276_v17 = vpop.f32.mrf.mxu0  ;;  %v3950_v59 = vsel %vm6589_vm10, %v3948_v37, %v3949_v42  ;;  %v10188_v39 = vrot.slane %v8638_v61, 6  ;;  %v4099_v54 = vadd.f32 %v3944_v44, %v8649_v2  ;;  %v4517_v48 = vadd.f32 %v8710_v10, %v4443_v58 }
 0x5a2   : > { %v4097_v52 = vadd.f32 %v3938_v5, %v10187_v4  ;;  %v4446_v23 = vadd.f32 %v4339_v29, %v4092_v38  ;;  %v4342_v47 = vrot.slane %v4276_v17, 2  ;;  %v10189_v15 = vrot.slane %v8649_v2, 2  ;;  %v9235_v29 = vld.sshfl [vmem:[#allocation1] sm:$0xff pattern:$0x73625140] }
 0x5a3   : > { %v4098_v26 = vadd.f32 %v3941_v6, %v10188_v39  ;;  %v3955_v8 = vrot.slane %v3776_v30, 7  ;;  %v4518_v5 = vadd.f32 %v8721_v16, %v4444_v56  ;;  %v4447_v61 = vadd.f32 %v4340_v60, %v9157_v25  ;;  %4662 = vst [vmem:[#allocation1] ss:$4 sm:$0xff] %v4517_v48  ;;  %v5517_v60 = vld [vmem:[%s5757_s26 + $0x68] sm:$0xff] }
 0x5a4   : > { %v4100_v34 = vadd.f32 %v3947_v3, %v10189_v15  ;;  %v4700_v42 = vsel %vm1408_vm4, %v4698_v21, %v4699_v33  ;;  %v3954_v28 = vrot.slane %v3952_v18, 2  ;;  %v5383_v10 = vrot.slane %v9170_v62, 11 }
 0x5a5   : > { %v4448_v38 = vadd.f32 %v4341_v19, %v9161_v27  ;;  %v4519_v37 = vadd.f32 %v8724_v55, %v4445_v11  ;;  %v5385_v6 = vrot.slane %v9170_v62, 15  ;;  %v4449_v44 = vadd.f32 %v4276_v17, %v4095_v51  ;;  %v9246_v11 = vld [vmem:[%s9640_s4] ss:$0 sm:$0xff]  ;;  %4663 = vst [vmem:[#allocation1 + $0x1] ss:$4 sm:$0xff] %v4518_v5 }
 0x5a6   : > { %v10190_v58 = vrot.slane %v8649_v2, 4  ;;  %v3953_v25 = vsel %vm6589_vm10, %v3951_v40, %v3952_v18  ;;  %v4520_v21 = vadd.f32 %v8742_v32, %v4446_v23  ;;  %v4343_v30 = vrot.slane %v4276_v17, 6 }
 0x5a7   : > { %v4450_v56 = vadd.f32 %v4342_v47, %v4096_v45  ;;  %v9239_v27 = vadd.f32 %v5517_v60, %v4700_v42  ;;  %v3957_v3 = vrot.slane %v3955_v8, 2  ;;  %v3779_v19 = vrot.slane %v9220_v53, 2  ;;  %4664 = vst [vmem:[#allocation1 + $0x2] ss:$4 sm:$0xff] %v4519_v37 }
 0x5a8   : > { %v4101_v14 = vadd.f32 %v3950_v59, %v10190_v58  ;;  %v3780_v51 = vrot.slane %v9220_v53, 4  ;;  %v4521_v40 = vadd.f32 %v9246_v11, %v4447_v61  ;;  %v3781_v18 = vrot.slane %v9220_v53, 6  ;;  %v9259_v58 = vld.sshfl [vmem:[#allocation1 + $0x20] sm:$0xff pattern:$0x73625140] }
 0x5a9   : > { %v4522_v45 = vadd.f32 %v8721_v16, %v4448_v38  ;;  %v4279_v17 = vpop.f32.mrf.mxu0  ;;  %v3956_v4 = vsel %vm6589_vm10, %v3954_v28, %v3955_v8  ;;  %v4701_v59 = vrot.slane %v9153_v20, 7  ;;  %v3962_v39 = vrot.slane %v9220_v53, 7  ;;  %4665 = vst [vmem:[#allocation1 + $0x3] ss:$4 sm:$0xff] %v4520_v21  ;;  %v5519_v21 = vld [vmem:[%s5757_s26 + $0x78] sm:$0xff] }
 0x5aa   : > { %v4523_v48 = vadd.f32 %v8724_v55, %v4449_v44  ;;  %v4344_v23 = vrot.slane %v4279_v17, 2  ;;  %v4345_v47 = vrot.slane %v4279_v17, 4  ;;  %v4451_v15 = vadd.f32 %v4343_v30, %v4097_v52  ;;  %4666 = vst [vmem:[#allocation1 + $0x20] ss:$4 sm:$0xff] %v4521_v40 }
 0x5ab   : > { %v4524_v5 = vadd.f32 %v8742_v32, %v4450_v56  ;;  %v4346_v61 = vrot.slane %v4279_v17, 6  ;;  %v10191_v42 = vrot.slane %v8649_v2, 6  ;;  %v9261_v8 = vrot.slane %v3779_v19, 7  ;;  %4667 = vst [vmem:[#allocation1 + $0x21] ss:$4 sm:$0xff] %v4522_v45 }
 0x5ac   : > { %v3968_v20 = vrot.slane %v3780_v51, 7  ;;  %v4452_v28 = vadd.f32 %v4279_v17, %v4098_v26  ;;  %v4795_v53 = vrot.slane %v9168_v36, 1  ;;  %v4453_v37 = vadd.f32 %v4344_v23, %v4099_v54  ;;  %4668 = vst [vmem:[#allocation1 + $0x22] ss:$4 sm:$0xff] %v4523_v48 }
 0x5ad   : > { %v4102_v38 = vadd.f32 %v3953_v25, %v10191_v42  ;;  %v3959_v52 = vsel %vm6589_vm10, %v3957_v3, %v5383_v10  ;;  %v4103_v44 = vadd.f32 %v3956_v4, %v8659_v1  ;;  %v4702_v2 = vrot.slane %v9197_v7, 7  ;;  %v9268_v25 = vpop.f32.mrf.mxu3  ;;  %4669 = vst [vmem:[#allocation1 + $0x23] ss:$4 sm:$0xff] %v4524_v5 }
 0x5ae   : > { %v4454_v30 = vadd.f32 %v4345_v47, %v4100_v34  ;;  %v9271_v56 = vadd.f32 %v5519_v21, %v4701_v59  ;;  %v4799_v26 = vrot.slane %v9188_v13, 1  ;;  %v4800_v60 = vrot.slane %v9239_v27, 1 }
 0x5af   : > { %v3964_v54 = vrot.slane %v3962_v39, 2  ;;  %v3971_v19 = vrot.slane %v3781_v18, 7  ;;  %v4525_v10 = vadd.f32 %v9246_v11, %v4451_v15  ;;  %v4455_v3 = vadd.f32 %v4346_v61, %v4101_v14 }
 0x5b0   : > { %v3967_v51 = vrot.slane %v9261_v8, 2  ;;  %v3970_v40 = vrot.slane %v3968_v20, 2  ;;  %v4526_v45 = vadd.f32 %v8721_v16, %v4452_v28  ;;  %v10192_v34 = vrot.slane %v8659_v1, 2  ;;  %v9287_v61 = vld.sshfl [vmem:[#allocation1] sm:$0xff pattern:$0x73625140] }
 0x5b1   : > { %v3782_v4 = vrot.slane %v9268_v25, 2  ;;  %v3783_v13 = vrot.slane %v9268_v25, 4  ;;  %v4527_v48 = vadd.f32 %v8724_v55, %v4453_v37  ;;  %v4281_v23 = vpop.f32.mrf.mxu0  ;;  %v4703_v14 = vsel %vm1408_vm4, %v4701_v59, %v4702_v2  ;;  %4672 = vst [vmem:[#allocation1] ss:$4 sm:$0xff] %v4525_v10 }
 0x5b2   : > { %v4104_v17 = vadd.f32 %v3959_v52, %v10192_v34  ;;  %v4528_v18 = vadd.f32 %v8742_v32, %v4454_v30  ;;  %v4347_v47 = vrot.slane %v4281_v23, 2  ;;  %v4348_v15 = vrot.slane %v4281_v23, 4  ;;  %4673 = vst [vmem:[#allocation1 + $0x1] ss:$4 sm:$0xff] %v4526_v45 }
 0x5b3   : > { %v4456_v5 = vadd.f32 %v4281_v23, %v4102_v38  ;;  %v3974_v42 = vrot.slane %v9268_v25, 7  ;;  %v4529_v28 = vadd.f32 %v9246_v11, %v4455_v3  ;;  %v3963_v37 = vsel %vm6589_vm10, %v5385_v6, %v3962_v39  ;;  %4674 = vst [vmem:[#allocation1 + $0x2] ss:$4 sm:$0xff] %v4527_v48  ;;  %v5520_v39 = vld [vmem:[%s5757_s26 + $0x80] sm:$0xff] }
 0x5b4   : > { %v9300_v59 = vsel %vm4788_vm0, %v4794_v49, %v4795_v53  ;;  %v4457_v38 = vadd.f32 %v4347_v47, %v4103_v44  ;;  %v4458_v52 = vadd.f32 %v4348_v15, %v4104_v17  ;;  %v3966_v21 = vsel %vm6589_vm10, %v3964_v54, %v9261_v8  ;;  %v9315_v8 = vld.sshfl [vmem:[#allocation1 + $0x20] sm:$0xff pattern:$0x73625140]  ;;  %4675 = vst [vmem:[#allocation1 + $0x3] ss:$4 sm:$0xff] %v4528_v18 }
 0x5b5   : > { %v4530_v30 = vadd.f32 %v8721_v16, %v4456_v5  ;;  %v3977_v62 = vrot.slane %v3782_v4, 7  ;;  %v3980_v3 = vrot.slane %v3783_v13, 7  ;;  %v3969_v6 = vsel %vm6589_vm10, %v3967_v51, %v3968_v20  ;;  %4676 = vst [vmem:[#allocation1 + $0x20] ss:$4 sm:$0xff] %v4529_v28 }
 0x5b6   : > { %v9309_v22 = vadd.f32 %v5520_v39, %v4703_v14  ;;  %v3973_v49 = vrot.slane %v3971_v19, 2  ;;  %v4531_v44 = vadd.f32 %v8724_v55, %v4457_v38  ;;  %v4532_v10 = vadd.f32 %v8742_v32, %v4458_v52 }
 0x5b7   : > { %v3972_v34 = vsel %vm6589_vm10, %v3970_v40, %v3971_v19  ;;  %v3976_v54 = vrot.slane %v3974_v42, 2  ;;  %v10193_v45 = vrot.slane %v8659_v1, 6  ;;  %v9322_v51 = vsel %vm4788_vm0, %v4799_v26, %v4800_v60  ;;  %4677 = vst [vmem:[#allocation1 + $0x21] ss:$4 sm:$0xff] %v4530_v30 }
 0x5b8   : > { %v4804_v17 = vrot.slane %v9271_v56, 1  ;;  %v4106_v4 = vadd.f32 %v3966_v21, %v8664_v35  ;;  %v10194_v13 = vrot.slane %v8664_v35, 2  ;;  %v3975_v40 = vsel %vm6589_vm10, %v3973_v49, %v3974_v42  ;;  %4678 = vst [vmem:[#allocation1 + $0x22] ss:$4 sm:$0xff] %v4531_v44 }
 0x5b9   : > { %v4105_v20 = vadd.f32 %v3963_v37, %v10193_v45  ;;  %v3979_v48 = vrot.slane %v3977_v62, 2  ;;  %v3982_v1 = vrot.slane %v3980_v3, 2  ;;  %v10195_v23 = vrot.slane %v8664_v35, 4  ;;  %v4284_v18 = vpop.f32.mrf.mxu0  ;;  %4679 = vst [vmem:[#allocation1 + $0x23] ss:$4 sm:$0xff] %v4532_v10 }
 0x5ba   : > { %v4107_v19 = vadd.f32 %v3969_v6, %v10194_v13  ;;  %v4805_v26 = vrot.slane %v9309_v22, 1  ;;  %v4349_v47 = vrot.slane %v4284_v18, 2  ;;  %v4350_v56 = vrot.slane %v4284_v18, 4 }
 0x5bb   : > { %v4108_v14 = vadd.f32 %v3972_v34, %v10195_v23  ;;  %v4351_v15 = vrot.slane %v4284_v18, 6  ;;  %v4459_v5 = vadd.f32 %v4284_v18, %v4105_v20  ;;  %v5386_v28 = vrot.slane %v9268_v25, 13  ;;  %v4680_v25 = vld.sshfl [vmem:[#allocation1] sm:$0xff pattern:$0x73625140] }
 0x5bc   : > { %v3978_v42 = vsel %vm6589_vm10, %v3976_v54, %v3977_v62  ;;  %v10196_v37 = vrot.slane %v8664_v35, 6  ;;  %v5635_v52 = vmov 1983009808   ;;  %v4460_v21 = vadd.f32 %v4349_v47, %v4106_v4 }
 0x5bd   : > { %v4851_v30 = vunpack.c.l.s4 %v5635_v52  ;;  %v4461_v6 = vadd.f32 %v4350_v56, %v4107_v19  ;;  %v4462_v39 = vadd.f32 %v4351_v15, %v4108_v14  ;;  %v4533_v49 = vadd.f32 %v9246_v11, %v4459_v5 }
 0x5be   : > { %v4109_v38 = vadd.f32 %v3975_v40, %v10196_v37  ;;  %v3984_v44 = vsel %vm6589_vm10, %v3982_v1, %v5386_v28  ;;  %v3981_v10 = vsel %vm6589_vm10, %v3979_v48, %v3980_v3  ;;  %v4705_v34 = vrot.slane %v9259_v58, 7 }
 0x5bf   : > { %v9347_v35 = vsel %vm4788_vm0, %v4804_v17, %v4805_v26  ;;  %v4534_v62 = vadd.f32 %v8721_v16, %v4460_v21  ;;  %v4535_v54 = vadd.f32 %v8724_v55, %v4461_v6  ;;  %v4536_v45 = vadd.f32 %v8742_v32, %v4462_v39  ;;  %4682 = vst [vmem:[#allocation1] ss:$4 sm:$0xff] %v4533_v49 }
 0x5c0   : > { %v4704_v20 = vrot.slane %v9235_v29, 7  ;;  %v4845_v41 = vrot.slane %v9322_v51, 4  ;;  %v9354_v3 = vunpack.c.0.s8 %v4851_v30  ;;  %v4860_v4 = vrot.slane %v9300_v59, 4  ;;  %v4681_v48 = vld.sshfl [vmem:[#allocation1 + $0x20] sm:$0xff pattern:$0x73625140] }
 0x5c1   : > { %v4110_v13 = vadd.f32 %v3978_v42, %v8677_v31  ;;  %v4111_v17 = vadd.f32 %v3981_v10, %v3487_v57  ;;  %v4112_v19 = vadd.f32 %v3984_v44, %v3488_v0  ;;  %4683 = vst [vmem:[#allocation1 + $0x1] ss:$4 sm:$0xff] %v4534_v62  ;;  %v4849_v29 = vsel %vm4846_vm14, %v9322_v51, %v4848_v12  ;;  %v4286_v40 = vpop.f32.mrf.mxu0  ;;  %v5521_v31 = vld [vmem:[%s5757_s26 + $0x70] sm:$0x3]  ;;  %v5523_v10 = vld [vmem:[%s5757_s26 + $0xc8] sm:$0xff] }
 0x5c2   : > { %4684 = vst [vmem:[#allocation1 + $0x2] ss:$4 sm:$0xff] %v4535_v54  ;;  %v4706_v1 = vsel %vm1408_vm4, %v4704_v20, %v4705_v34  ;;  %v4861_v23 = vsel %vm4846_vm14, %v9347_v35, %v4860_v4  ;;  %v5636_v57 = vmov 1934713408   ;;  %v9374_v0 = vadd.f32 %v5521_v31, %v4699_v33  ;;  %v5524_v54 = vld [vmem:[%s5757_s26 + $0x90] sm:$0xff] }
 0x5c3   : > { %v4899_v14 = vunpack.c.l.s4 %v5636_v57  ;;  %v4352_v18 = vrot.slane %v4286_v40, 2  ;;  %v4353_v12 = vrot.slane %v4286_v40, 4  ;;  %v4354_v51 = vrot.slane %v4286_v40, 6  ;;  %4685 = vst [vmem:[#allocation1 + $0x3] ss:$4 sm:$0xff] %v4536_v45  ;;  %v5525_v45 = vld [vmem:[%s5757_s26 + $0xc0] sm:$0xff] }
 0x5c4   : > { %v4463_v47 = vadd.f32 %v4286_v40, %v4109_v38  ;;  %v4708_v56 = vrot.slane %v9315_v8, 7  ;;  %v4710_v15 = vrot.slane %v4680_v25, 7  ;;  %v4711_v5 = vrot.slane %v4681_v48, 7  ;;  %v5522_v38 = vld [vmem:[%s5757_s26 + $0x98] sm:$0xff]  ;;  %v5527_v48 = vld [vmem:[%s5757_s26 + $0x88] sm:$0x3] }
 0x5c5   : > { %v4857_v28 = vperm.slane %v4849_v29, %v9354_v3  ;;  %v4464_v42 = vadd.f32 %v4352_v18, %v4110_v13  ;;  %v4465_v37 = vadd.f32 %v4353_v12, %v4111_v17  ;;  %v4466_v52 = vadd.f32 %v4354_v51, %v4112_v19  ;;  %v5526_v19 = vld [vmem:[%s5757_s26 + $0xb0] sm:$0xff]  ;;  %v5530_v18 = vld [vmem:[%s5757_s26 + $0xa8] sm:$0xff] }
 0x5c6   : > { %v4537_v46 = vadd.f32 %v9246_v11, %v4463_v47  ;;  %v4707_v33 = vrot.slane %v9287_v61, 7  ;;  %v4712_v30 = vsel %vm1408_vm4, %v4710_v15, %v4711_v5  ;;  %v9382_v21 = vadd.f32 %v5522_v38, %v4706_v1 }
 0x5c7   : > { %v4869_v6 = vperm.slane %v4861_v23, %v9354_v3  ;;  %v4538_v39 = vadd.f32 %v8721_v16, %v4464_v42  ;;  %v4539_v49 = vadd.f32 %v8724_v55, %v4465_v37  ;;  %v4540_v44 = vadd.f32 %v8742_v32, %v4466_v52  ;;  %v5528_v23 = vld [vmem:[%s5757_s26 + $0x40] sm:$0x3] }
 0x5c8   : > { %4686 = vst [vmem:[#allocation1 + $0x20] ss:$4 sm:$0xff] %v4537_v46  ;;  %v9389_v11 = vadd.f32 %v5523_v10, %v4712_v30  ;;  %v4709_v61 = vsel %vm1408_vm4, %v4707_v33, %v4708_v56  ;;  %v4858_v25 = vrot.slane %v9347_v35, 4  ;;  %v4908_v62 = vrot.slane %v4857_v28, 4  ;;  %v5532_v10 = vld [vmem:[%s5757_s26 + $0xa0] sm:$0x3] }
 0x5c9   : > { %4687 = vst [vmem:[#allocation1 + $0x21] ss:$4 sm:$0xff] %v4538_v39  ;;  %v4752_v16 = vadd.f32 %v5524_v54, %v4704_v20  ;;  %v4758_v55 = vadd.f32 %v5525_v45, %v4710_v15  ;;  %v9397_v32 = vunpack.c.0.s8 %v4899_v14  ;;  %v4847_v4 = vsel %vm4846_vm14, %v4845_v41, %v9126_v9  ;;  %v5529_v14 = vld [vmem:[%s5757_s26 + $0xd0] sm:$0x3]  ;;  %v5531_v15 = vld [vmem:[%s5757_s26 + $0x58] sm:$0x3] }
 0x5ca   : > { %4688 = vst [vmem:[#allocation1 + $0x22] ss:$4 sm:$0xff] %v4539_v49  ;;  %v4909_v13 = vsel %vm4846_vm14, %v4869_v6, %v4908_v62  ;;  %v4906_v17 = vrot.slane %v4869_v6, 4  ;;  %v4802_v35 = vrot.slane %v9374_v0, 1  ;;  %v9404_v29 = vadd.f32 %v5526_v19, %v4709_v61 }
 0x5cb   : > { %4689 = vst [vmem:[#allocation1 + $0x23] ss:$4 sm:$0xff] %v4540_v44  ;;  %v4810_v20 = vrot.slane %v9382_v21, 1  ;;  %v4820_v40 = vrot.slane %v9389_v11, 1  ;;  %v4751_v9 = vadd.f32 %v5527_v48, %v4702_v2  ;;  %v9412_v41 = vperm.slane %v4847_v4, %v9354_v3 }
 0x5cc   : > { %v4859_v1 = vsel %vm4846_vm14, %v4858_v25, %v9300_v59  ;;  %v4742_v57 = vadd.f32 %v5528_v23, %v4693_v43  ;;  %v4760_v31 = vadd.f32 %v5529_v14, %v4711_v5  ;;  %v4690_v0 = vld.sshfl [vmem:[#allocation1] sm:$0xff pattern:$0x73625140]  ;;  %v4755_v12 = vadd.f32 %v5530_v18, %v4707_v33 }
 0x5cd   : > { %v4809_v51 = vrot.slane %v4752_v16, 1  ;;  %v4819_v47 = vrot.slane %v4758_v55, 1  ;;  %v9422_v7 = vperm.slane %v4909_v13, %v9397_v32  ;;  %v4907_v2 = vsel %vm4846_vm14, %v4906_v17, %v4857_v28  ;;  %v5533_v16 = vld [vmem:[%s5757_s26 + $0xd8] sm:$0xff] }
 0x5ce   : > { %v10197_v42 = vrot.slane %v8906_v50, 7  ;;  %v9431_v24 = vsel %vm4788_vm0, %v4800_v60, %v4802_v35  ;;  %v4815_v5 = vrot.slane %v9404_v29, 1  ;;  %v4807_v52 = vrot.slane %v4751_v9, 1  ;;  %v5534_v55 = vld [vmem:[%s5757_s26 + $0xb8] sm:$0x3]  ;;  %v5536_v29 = vld [vmem:[%s5757_s26 + $0xe0] sm:$0xff] }
 0x5cf   : > { %v4811_v43 = vsel %vm4788_vm0, %v4809_v51, %v4810_v20  ;;  %v4821_v37 = vsel %vm4788_vm0, %v4819_v47, %v4820_v40  ;;  %v4713_v28 = vrot.slane %v4690_v0, 7  ;;  %v9439_v46 = vperm.slane %v4859_v1, %v9354_v3 }
 0x5d0   : > { %v4745_v59 = vadd.f32 %v5531_v15, %v10197_v42  ;;  %v4792_v50 = vrot.slane %v4742_v57, 1  ;;  %v4822_v27 = vrot.slane %v4760_v31, 1  ;;  %v4814_v33 = vrot.slane %v4755_v12, 1 }
 0x5d1   : > { %v4956_v60 = vrot.slane %v9422_v7, 4  ;;  %v4896_v30 = vrot.slane %v9412_v41, 4  ;;  %v4958_v38 = vrot.slane %v9431_v24, 4  ;;  %v4870_v39 = vrot.slane %v4821_v37, 4 }
 0x5d2   : > { %v4691_v6 = vld.sshfl [vmem:[#allocation1 + $0x20] sm:$0xff pattern:$0x73625140]  ;;  %v4872_v49 = vrot.slane %v4811_v43, 4  ;;  %v9445_v44 = vperm.slane %v4907_v2, %v9397_v32  ;;  %v4754_v11 = vadd.f32 %v5532_v10, %v4705_v34  ;;  %v4816_v25 = vsel %vm4788_vm0, %v4814_v33, %v4815_v5 }
 0x5d3   : > { %v4714_v61 = vrot.slane %v4691_v6, 7  ;;  %v4797_v62 = vrot.slane %v4745_v59, 1  ;;  %v9454_v54 = vsel %vm4788_vm0, %v4805_v26, %v4807_v52  ;;  %v4761_v45 = vadd.f32 %v5533_v16, %v4713_v28  ;;  %v5535_v26 = vld [vmem:[%s5757_s26 + $0xe8] sm:$0x3]  ;;  %s5637_s26 = smov 56  }
 0x5d4   : > { %v4757_v4 = vadd.f32 %v5534_v55, %v4708_v56  ;;  %v10198_v13 = vrot.slane %v9066_v63, 1  ;;  %v9466_v34 = vsel %vm4788_vm0, %v4820_v40, %v4822_v27  ;;  %v4873_v22 = vsel %vm4846_vm14, %v4821_v37, %v4872_v49 }
 0x5d5   : > { %v4715_v17 = vsel %vm1408_vm4, %v4713_v28, %v4714_v61  ;;  %v4763_v35 = vadd.f32 %v5535_v26, %v4714_v61  ;;  %v4871_v56 = vsel %vm4846_vm14, %v4870_v39, %v4811_v43  ;;  %v4812_v63 = vrot.slane %v4754_v11, 1 }
 0x5d6   : > { %v9463_v58 = vsel %vm4788_vm0, %v10198_v13, %v4792_v50  ;;  %v4762_v8 = vadd.f32 %v5536_v29, %v4715_v17  ;;  %v4970_v48 = vrot.slane %v9454_v54, 4  ;;  %v4897_v40 = vsel %vm4846_vm14, %v9439_v46, %v4896_v30 }
 0x5d7   : > { %v4959_v19 = vsel %vm4846_vm14, %v4958_v38, %v9463_v58  ;;  %v4894_v9 = vrot.slane %v9439_v46, 4  ;;  %v4827_v1 = vrot.slane %v4763_v35, 1  ;;  %v4982_v23 = vrot.slane %v9466_v34, 4 }
 0x5d8   : > { %v4824_v57 = vrot.slane %v4761_v45, 1  ;;  %v4825_v14 = vrot.slane %v4762_v8, 1  ;;  %v4881_v31 = vperm.slane %v4873_v22, %v9354_v3  ;;  %v4817_v0 = vrot.slane %v4757_v4, 1 }
 0x5d9   : > { %v4884_v18 = vrot.slane %v4816_v25, 4  ;;  %v4877_v12 = vperm.slane %v4871_v56, %v9354_v3  ;;  %v9485_v51 = vsel %vm4788_vm0, %v4795_v53, %v4797_v62  ;;  %v4965_v47 = vperm.slane %v4959_v19, %v9354_v3 }
 0x5da   : > { %v4826_v2 = vsel %vm4788_vm0, %v4824_v57, %v4825_v14  ;;  %v9492_v15 = vsel %vm4788_vm0, %v4810_v20, %v4812_v63  ;;  %v4828_v42 = vsel %vm4788_vm0, %v4825_v14, %v4827_v1  ;;  %v4971_v59 = vsel %vm4846_vm14, %v4970_v48, %v9485_v51 }
 0x5db   : > { %v4885_v43 = vsel %vm4846_vm14, %v4826_v2, %v4884_v18  ;;  %v4882_v36 = vrot.slane %v4826_v2, 4  ;;  %v4983_v53 = vsel %vm4846_vm14, %v4982_v23, %v9492_v15  ;;  %v4994_v37 = vrot.slane %v4828_v42, 4 }
 0x5dc   : > { %v4893_v52 = vperm.slane %v4885_v43, %v9354_v3  ;;  %v4932_v28 = vrot.slane %v4881_v31, 4  ;;  %v9502_v21 = vperm.slane %v4897_v40, %v9397_v32  ;;  %v4818_v20 = vsel %vm4788_vm0, %v4815_v5, %v4817_v0 }
 0x5dd   : > { %v4883_v46 = vsel %vm4846_vm14, %v4882_v36, %v4816_v25  ;;  %v4920_v50 = vrot.slane %v4877_v12, 4  ;;  %v4977_v27 = vperm.slane %v4971_v59, %v9354_v3  ;;  %v4995_v33 = vsel %vm4846_vm14, %v4994_v37, %v4818_v20 }
 0x5de   : > { %v4933_v30 = vsel %vm4846_vm14, %v4893_v52, %v4932_v28  ;;  %v4930_v38 = vrot.slane %v4893_v52, 4  ;;  %v4889_v6 = vperm.slane %v4883_v46, %v9354_v3  ;;  %v4989_v39 = vperm.slane %v4983_v53, %v9354_v3 }
 0x5df   : > { %v4941_v49 = vperm.slane %v4933_v30, %v9397_v32  ;;  %v4952_v10 = vrot.slane %v9445_v44, 4  ;;  %v4895_v5 = vsel %vm4846_vm14, %v4894_v9, %v9412_v41  ;;  %v5008_v11 = vrot.slane %v4965_v47, 4 }
 0x5e0   : > { %v4931_v61 = vsel %vm4846_vm14, %v4930_v38, %v4881_v31  ;;  %v4921_v25 = vsel %vm4846_vm14, %v4889_v6, %v4920_v50  ;;  %v4918_v62 = vrot.slane %v4889_v6, 4  ;;  %v5001_v16 = vperm.slane %v4995_v33, %v9354_v3 }
 0x5e1   : > { %v4957_v45 = vsel %vm4846_vm14, %v4941_v49, %v4956_v60  ;;  %v4937_v55 = vperm.slane %v4931_v61, %v9397_v32  ;;  %v4929_v4 = vperm.slane %v4921_v25, %v9397_v32  ;;  %v4948_v13 = vrot.slane %v9502_v21, 4 }
 0x5e2   : > { %5095 = vrot.lane.b32.xlu0 %v4957_v45, %s5637_s26  ;;  %v4919_v41 = vsel %vm4846_vm14, %v4918_v62, %v4877_v12  ;;  %v5009_v17 = vsel %vm4846_vm14, %v4977_v27, %v5008_v11  ;;  %v5032_v22 = vrot.slane %v4989_v39, 4  ;;  %v9529_v19 = vperm.slane %v4895_v5, %v9397_v32  ;;  %s5649_s26 = smov 112  }
 0x5e3   : > { %v4953_v26 = vsel %vm4846_vm14, %v4937_v55, %v4952_v10  ;;  %v4949_v35 = vsel %vm4846_vm14, %v4929_v4, %v4948_v13  ;;  %v4996_v60 = vrot.slane %v4818_v20, 4  ;;  %v9533_v8 = vperm.slane %v4919_v41, %v9397_v32 }
 0x5e4   : > { %5087 = vrot.lane.b32.xlu1 %v4953_v26, %s5638_s16  ;;  %5079 = vrot.lane.b32.xlu2 %v4949_v35, %s5639_s17  ;;  %v5033_v29 = vsel %vm4846_vm14, %v5001_v16, %v5032_v22  ;;  %v5017_v56 = vperm.slane %v5009_v17, %v9397_v32  ;;  %v5006_v48 = vrot.slane %v4977_v27, 4  ;;  %v4944_v40 = vrot.slane %v9529_v19, 4  ;;  %s5404_s16 = sshll.u32 %s5619_s22, 1  ;;  %s229_s17 = sand.u32 1, %s5607_s19  }
 0x5e5   : > { %v4997_v63 = vsel %vm4846_vm14, %v4828_v42, %v4996_v60  ;;  %v5041_v9 = vperm.slane %v5033_v29, %v9397_v32  ;;  %v4954_v1 = vrot.slane %v4941_v49, 4  ;;  %v5030_v23 = vrot.slane %v5001_v16, 4 }
 0x5e6   : > { %v5005_v57 = vperm.slane %v4997_v63, %v9354_v3  ;;  %v4945_v14 = vsel %vm4846_vm14, %v9533_v8, %v4944_v40  ;;  %v4972_v31 = vrot.slane %v9485_v51, 4  ;;  %v4984_v0 = vrot.slane %v9492_v15, 4 }
 0x5e7   : > { %v5060_v18 = vrot.slane %v5017_v56, 4  ;;  %v5007_v12 = vsel %vm4846_vm14, %v5006_v48, %v4965_v47  ;;  %v4955_v42 = vsel %vm4846_vm14, %v4954_v1, %v9422_v7  ;;  %v5031_v51 = vsel %vm4846_vm14, %v5030_v23, %v4989_v39 }
 0x5e8   : > { %v4973_v59 = vsel %vm4846_vm14, %v9454_v54, %v4972_v31  ;;  %v4985_v43 = vsel %vm4846_vm14, %v9466_v34, %v4984_v0  ;;  %v5042_v15 = vrot.slane %v5005_v57, 4  ;;  %v4950_v36 = vrot.slane %v4937_v55, 4 }
 0x5e9   : > { %v5061_v2 = vsel %vm4846_vm14, %v5041_v9, %v5060_v18  ;;  %v5013_v47 = vperm.slane %v5007_v12, %v9397_v32  ;;  %v4981_v53 = vperm.slane %v4973_v59, %v9354_v3  ;;  %v4993_v7 = vperm.slane %v4985_v43, %v9354_v3 }
 0x5ea   : > { %5071 = vrot.lane.b32.xlu0 %v4945_v14, %s5633_s27  ;;  %v5037_v37 = vperm.slane %v5031_v51, %v9397_v32  ;;  %v4946_v54 = vrot.slane %v4929_v4, 4  ;;  %v4960_v52 = vrot.slane %v9463_v58, 4  ;;  %v4951_v28 = vsel %vm4846_vm14, %v4950_v36, %v9445_v44  ;;  %s5642_s27 = smov 32  }
 0x5eb   : > { %v5043_v34 = vsel %vm4846_vm14, %v5042_v15, %v4993_v7  ;;  %v5056_v20 = vrot.slane %v5013_v47, 4  ;;  %v5018_v50 = vrot.slane %v4981_v53, 4  ;;  %v5058_v58 = vrot.slane %v5041_v9, 4 }
 0x5ec   : > { %5111 = vrot.lane.b32.xlu1 %v5061_v2, %s5640_s8  ;;  %5091 = vrot.lane.b32.xlu2 %v4955_v42, %s5641_s9  ;;  %v4961_v46 = vsel %vm4846_vm14, %v9431_v24, %v4960_v52  ;;  %v4947_v33 = vsel %vm4846_vm14, %v4946_v54, %v9502_v21  ;;  %v5049_v30 = vperm.slane %v5043_v34, %v9397_v32  ;;  %v5044_v24 = vrot.slane %v4993_v7, 4  ;;  %s5169_s8 = sadd.s32 %s5615_s21, %s5404_s16  ;;  %s5255_s9 = sshll.u32 %s229_s17, 3 }
 0x5ed   : > { %v5057_v27 = vsel %vm4846_vm14, %v5037_v37, %v5056_v20  ;;  %v4969_v44 = vperm.slane %v4961_v46, %v9354_v3  ;;  %v5054_v39 = vrot.slane %v5037_v37, 4  ;;  %v5059_v5 = vsel %vm4846_vm14, %v5058_v58, %v5017_v56  ;;  %s231_s21 = scalar_lea.vmem [#allocation2], %s5255_s9  ;;  %s5557_s9 = scalar_lea.hbm %s9641_s5, 32 }
 0x5ee   : > { %v5062_v6 = vrot.slane %v5049_v30, 4  ;;  %v5045_v10 = vsel %vm4846_vm14, %v5005_v57, %v5044_v24  ;;  %v4942_v29 = vrot.slane %v9533_v8, 4  ;;  %vm5133_vm4 = vcmask 261120  }
 0x5ef   : > { %v5019_v38 = vsel %vm4846_vm14, %v5018_v50, %v4969_v44  ;;  %v5020_v49 = vrot.slane %v4969_v44, 4  ;;  %v5055_v3 = vsel %vm4846_vm14, %v5054_v39, %v5013_v47  ;;  %v5053_v25 = vperm.slane %v5045_v10, %v9397_v32 }
 0x5f0   : > { %v5025_v21 = vperm.slane %v5019_v38, %v9397_v32  ;;  %v4943_v48 = vsel %vm4846_vm14, %v4942_v29, %v9529_v19  ;;  %vm5135_vm10 = vcmask 326656  }
 0x5f1   : > { %v5021_v11 = vsel %vm4846_vm14, %v4981_v53, %v5020_v49  ;;  %v5066_v45 = vrot.slane %v5053_v25, 4 }
 0x5f2   : > { %5083 = vrot.lane.b32.xlu0 %v4951_v28, %s5642_s27  ;;  %v5063_v61 = vsel %vm4846_vm14, %v5062_v6, %v5025_v21  ;;  %v5029_v62 = vperm.slane %v5021_v11, %v9397_v32  ;;  %v5064_v16 = vrot.slane %v5025_v21, 4  ;;  %s5405_s27 = sshll.u32 %s5169_s8, 3 }
 0x5f4   : > { %5103 = vrot.lane.b32.xlu2 %v5057_v27, %s5643_s10  ;;  %5075 = vrot.lane.b32.xlu1 %v4947_v33, %s5634_s30  ;;  %s5645_s30 = smov 96   ;;  %v5065_v55 = vsel %vm4846_vm14, %v5049_v30, %v5064_v16  ;;  %v5068_v4 = vrot.slane %v5029_v62, 4  ;;  %v5067_v41 = vsel %vm4846_vm14, %v5066_v45, %v5029_v62 }
 0x5f6   : > { %v5069_v13 = vsel %vm4846_vm14, %v5053_v25, %v5068_v4 }
 0x5fa   : > { %5107 = vrot.lane.b32.xlu0 %v5059_v5, %s5644_s12  ;;  %s5171_s12 = scalar_lea.hbm %s9641_s5, %s5405_s27 }
 0x5fc   : > { %5115 = vrot.lane.b32.xlu2 %v5063_v61, %s5645_s30  ;;  %5099 = vrot.lane.b32.xlu1 %v5055_v3, %s5646_s13  ;;  %s5173_s30 = sshll.u32 %s231_s21, 4  ;;  %s5175_s13 = sshll.u32 %s5171_s12, 4  ;;  %s5174_s30 = int_to_ptr.vmem [resolvable:$true] %s5173_s30  ;;  %s5176_s13 = int_to_ptr.hbm [resolvable:$true] %s5175_s13 }
 0x602   : > { %5119 = vrot.lane.b32.xlu0 %v5065_v55, %s5647_s14  ;;  %s5159_s14 = scalar_lea.sflag [#allocation3], %s229_s17 }
 0x604   : > { %5127 = vrot.lane.b32.xlu2 %v5069_v13, %s5648_s15  ;;  %5123 = vrot.lane.b32.xlu1 %v5067_v41, %s5649_s26  ;;  %s5551_s15 = sshra.s32 %s5176_s13, 4  ;;  %s5552_s15 = int_to_ptr.hbm [resolvable:$true] %s5551_s15 }
 0x605   : > { %s5553_s26 = scalar_lea.hbm %s5552_s15, 8  ;;  %p5558_p2 = scmp.lt.s32.totalorder %s5552_s15, %s9641_s5 }
 0x606   : > { %p5554_p13 = scmp.ne.s32.totalorder %s5552_s15, %s5553_s26  ;;  %p5559_p4 = scmp.lt.s32.totalorder %s5557_s9, %s5553_s26 }
 0x608   : > { %p5555_p0 = pnand %p5554_p13, %p5731_p3  ;;  %p5560_p5 = por %p5559_p4, %p5558_p2 }
 0x60a   : > { %p5556_p1 = pneg %p5555_p0 }
 0x60c   : > { %p5561_p6 = pnand %p5560_p5, %p5556_p1 }
 0x63e   : > { %v5080_v17 = vpop.permute.xlu2 %5079 }
 0x646   : > { %v5092_v32 = vpop.permute.xlu2 %5091 }
 0x64e   : > { %v5104_v56 = vpop.permute.xlu2 %5103 }
 0x654   : > { %v5096_v22 = vpop.permute.xlu0 %5095 }
 0x656   : > { %v5088_v26 = vpop.permute.xlu1 %5087  ;;  %v5116_v19 = vpop.permute.xlu2 %5115 }
 0x65c   : > { %v5072_v35 = vpop.permute.xlu0 %5071 }
 0x65d   : > { %v5130_v40 = vsel %vm489_vm1, %v4943_v48, %v5072_v35  ;;  %vm5143_vm1 = vcmask 588800  }
 0x65e   : > { %v5112_v60 = vpop.permute.xlu1 %5111  ;;  %v5128_v47 = vpop.permute.xlu2 %5127 }
 0x664   : > { %v5084_v63 = vpop.permute.xlu0 %5083 }
 0x666   : > { %v5076_v9 = vpop.permute.xlu1 %5075 }
 0x667   : > { %v5131_v1 = vsel %vm550_vm2, %v5130_v40, %v5076_v9  ;;  %vm5147_vm2 = vcmask 719872  }
 0x668   : > { %v5132_v23 = vsel %vm862_vm3, %v5131_v1, %v5080_v17  ;;  %vm5149_vm3 = vcmask 785408  }
 0x669   : > { %v5134_v8 = vsel %vm5133_vm4, %v5132_v23, %v5084_v63 }
 0x66a   : > { %v5136_v57 = vsel %vm5135_vm10, %v5134_v8, %v5088_v26 }
 0x66b   : > { %v5138_v14 = vsel %vm5137_vm15, %v5136_v57, %v5092_v32 }
 0x66c   : > { %v5108_v31 = vpop.permute.xlu0 %5107  ;;  %v5140_v18 = vsel %vm5139_vm5, %v5138_v14, %v5096_v22 }
 0x66e   : > { %v5100_v0 = vpop.permute.xlu1 %5099 }
 0x66f   : > { %v5142_v12 = vsel %vm5141_vm6, %v5140_v18, %v5100_v0 }
 0x670   : > { %v5144_v2 = vsel %vm5143_vm1, %v5142_v12, %v5104_v56 }
 0x671   : > { %v5146_v42 = vsel %vm5145_vm7, %v5144_v2, %v5108_v31 }
 0x672   : > { %v5148_v59 = vsel %vm5147_vm2, %v5146_v42, %v5112_v60 }
 0x673   : > { %v5150_v43 = vsel %vm5149_vm3, %v5148_v59, %v5116_v19 }
 0x674   : > { %v5120_v51 = vpop.permute.xlu0 %5119 }
 0x675   : > { %v5152_v15 = vsel %vm5151_vm8, %v5150_v43, %v5120_v51 }
 0x676   : > { %v5124_v36 = vpop.permute.xlu1 %5123 }
 0x677   : > { %v5154_v53 = vsel %vm5153_vm9, %v5152_v15, %v5124_v36 }
 0x678   : > { %v5156_v7 = vsel %vm5155_vm11, %v5154_v53, %v5128_v47 }
 0x679   : > { %5157 = vst [vmem:[%s231_s21] sm:$0xff] %v5156_v7 }
 0x67a   : > { %5564 = shalt.err (!%p5561_p6)
}
 0x67b   : > { %5421 = dma.vmem_to_hbm [thread:$0]  (%p5731_p3), %s5174_s30, 128, %s5176_s13, %s5159_s14  }
 0x67c PF: > { %p5427_p7 = scmp.ge.s32.totalorder %s5631_s25, 2  ;;  %s5187_s17 = sand.u32 1, %s5603_s18  }
 0x67d   : > { %s5188_s10 = scalar_lea.sflag [#allocation3], %s5187_s17 }
 0x67e   : > { %p5424_p9 = pnand %p5427_p7, %p5740_p8 }
 0x680   : > { %p5425_p10 = pneg %p5424_p9 }
 0x682   : > { %5598 = dma.done.wait (%p5425_p10), %s5188_s10, 128  }
 0x683   : > { %5600 = vsyncadd (%p5425_p10), %s5188_s10, 4294967168  ;;  %s18_s25 = sadd.s32 1, %s5631_s25   ;;  %s10199_s18 = smov %s5607_s19 }
 0x684   : > { %p15_p11 = scmp.ge.s32.totalorder %s18_s25, 6   ;;  %s10200_s19 = smov %s5611_s20 }
 0x685   : > { %s10201_s20 = smov %s5749_s11  ;;  %s10202_s21 = smov %s5623_s23 }
 0x686   : > { %s10203_s22 = smov %s5627_s24  ;;  %s10204_s23 = smov %s10207_s28 }
 0x687   : > { %s10205_s24 = smov %s10211_s29  ;;  %17 = sbr.rel (!%p15_p11) target bundleno = 5 (0x5), region = 136 }
 0x68c   :  { %5194 = vsyncpa [#allocation3], 1 }
 0x68d   :  { %5196 = vsyncpa [#allocation3 + $0x1], 1 }

</bundles_post_ra>
